<compile_context>
chip_gen: v7x
topology: tpu7x:2x2x1
jax: 0.10.0
libtpu: 0.0.40
codegen_flags: <defaults>
</compile_context>

<pallas_src>
import math

import numpy as np
import jax
import jax.numpy as jnp
from jax.experimental import pallas as pl
from jax.experimental.pallas import tpu as pltpu


# ----------------------------------------------------------------------------
# In-kernel math helpers
# ----------------------------------------------------------------------------
def _gelu(x):
    # exact (erf) GELU, matching torch.nn.GELU(approximate='none')
    return 0.5 * x * (1.0 + jax.lax.erf(x * (1.0 / math.sqrt(2.0))))


# ----------------------------------------------------------------------------
# Pallas kernel.
# grid = (token_tiles, vocab_column_tiles), vocab innermost.
# flags_ref: SMEM scalar-prefetch (n_token_tiles, 3) int32 — per-tile tier
# presence (tokens are pre-sorted by tier, so most tiles are single-tier and
# skip 2 of the 3 stage-2 matmuls).
# ----------------------------------------------------------------------------
def _sparse_proj_kernel(flags_ref,
                        h_ref, strat_ref,
                        wf_ref,
                        ws1_ref, bs1_ref, ws2_ref, bs2_ref,
                        wm1_ref, bm1_ref, wm2_ref, bm2_ref,
                        wv1_ref, bv1_ref, wv2_ref, bv2_ref,
                        out_ref,
                        hs_sc, hm_sc, hf_sc, acc_sc):
    i = pl.program_id(0)   # token tile
    j = pl.program_id(1)   # vocab column tile (innermost)

    has_min = flags_ref[i, 0] > 0
    has_sp = flags_ref[i, 1] > 0
    has_full = flags_ref[i, 2] > 0

    # ---- stage 1: vocab-column independent, compute once per token tile ----
    @pl.when(j == 0)
    def _():
        h = h_ref[...]                                           # (tm, D)
        # vocabulary focuser first Linear + GELU (always needed)
        hf_sc[...] = _gelu(
            jnp.dot(h, wv1_ref[...], preferred_element_type=jnp.float32)
            + bv1_ref[...]).astype(hf_sc.dtype)

        @pl.when(has_sp)
        def _():
            hs_sc[...] = _gelu(
                jnp.dot(h, ws1_ref[...], preferred_element_type=jnp.float32)
                + bs1_ref[...]).astype(hs_sc.dtype)

        @pl.when(has_min)
        def _():
            hm_sc[...] = (
                jnp.dot(h, wm1_ref[...], preferred_element_type=jnp.float32)
                + bm1_ref[...]).astype(hm_sc.dtype)

    # ---- stage 2: this vocab-column tile, only the tiers present ----------
    strat = strat_ref[...]                                       # (tm, 1) int32
    acc_sc[...] = jnp.zeros_like(acc_sc)

    @pl.when(has_full)
    def _():
        lf = jnp.dot(h_ref[...], wf_ref[...],
                     preferred_element_type=jnp.float32)
        acc_sc[...] += jnp.where(strat == 2, lf, 0.0)

    @pl.when(has_sp)
    def _():
        ls = (jnp.dot(hs_sc[...], ws2_ref[...],
                      preferred_element_type=jnp.float32) + bs2_ref[...])
        acc_sc[...] += jnp.where(strat == 1, ls, 0.0)

    @pl.when(has_min)
    def _():
        lm = (jnp.dot(hm_sc[...], wm2_ref[...],
                      preferred_element_type=jnp.float32) + bm2_ref[...])
        acc_sc[...] += jnp.where(strat == 0, lm, 0.0)

    # vocabulary focusing (applied to every token)
    vf = jax.nn.sigmoid(
        jnp.dot(hf_sc[...], wv2_ref[...],
                preferred_element_type=jnp.float32) + bv2_ref[...])
    out_ref[...] = (acc_sc[...] * (1.0 + vf)).astype(out_ref.dtype)


# ----------------------------------------------------------------------------
# Strategy determination (glue, plain JAX — mirrors the PyTorch module)
# ----------------------------------------------------------------------------
def _strategy_from_attention(attention_weights, high_thr, med_thr):
    tok_att = attention_weights.sum(axis=-1)                     # [B, S]
    max_att = tok_att.max(axis=-1, keepdims=True)
    norm = tok_att / (max_att + 1e-8)
    return jnp.where(norm >= high_thr, 2,
                     jnp.where(norm >= med_thr, 1, 0)).astype(jnp.int32)


def _strategy_from_content(hidden_states, params):
    g = _gelu(hidden_states @ params["w_g1"] + params["b_g1"])
    gate = g @ params["w_g2"] + params["b_g2"]   # softmax is monotone: argmax of logits
    return jnp.argmax(gate, axis=-1).astype(jnp.int32)


# ----------------------------------------------------------------------------
# Wrapper helpers
# ----------------------------------------------------------------------------
def _round_up(x, m):
    return (x + m - 1) // m * m


def _pick_tn(V, target, align=256):
    """256-aligned column tile; prefers larger tiles unless padding blows up."""
    target = max(align, (target // align) * align)
    cands = list(range(align, target + 1, align))
    pads = [(-V) % t for t in cands]
    min_pad = min(pads)
    best = align
    for t, p in zip(cands, pads):
        if p <= min_pad + max(1, V // 8):
            best = t            # largest acceptable tile wins
    return best


def _default_vmem_limit():
    # ~75% of this generation's physical VMEM (64 MiB v7x, 128 MiB v5e/v6e)
    try:
        info = pltpu.get_tpu_info()
        cap = getattr(info, "vmem_capacity_bytes", None)
        if cap:
            return int(cap * 0.75)
    except Exception:
        pass
    return 48 * 1024 * 1024


# ----------------------------------------------------------------------------
# Wrapper
# ----------------------------------------------------------------------------
def sparse_output_projection(hidden_states, params, attention_weights=None,
                             high_thr=0.7, med_thr=0.3,
                             tm=256, tn_target=512,
                             compute_dtype=jnp.bfloat16,
                             out_dtype=jnp.bfloat16,
                             vmem_limit_bytes=None):
    B, S, D = hidden_states.shape
    V = params["w_full"].shape[1]
    V4, V8, V10 = V // 4, V // 8, V // 10

    if vmem_limit_bytes is None:
        vmem_limit_bytes = _default_vmem_limit()

    # ---- strategy selection (cheap glue, plain JAX) ----
    if attention_weights is not None:
        strat = _strategy_from_attention(attention_weights, high_thr, med_thr)
    else:
        strat = _strategy_from_content(hidden_states, params)

    N = B * S
    h = hidden_states.reshape(N, D).astype(compute_dtype)
    strat_flat = strat.reshape(N).astype(jnp.int32)

    # ---- token tiling (clamp for small inputs; >=2 tiles for v7x 2 TCs) ----
    tm = max(8, min(tm, _round_up(N, 8)))
    if N > 8 and (N + tm - 1) // tm < 2:
        tm = _round_up((N + 1) // 2, 8)
    pad_n = (-N) % tm
    if pad_n:
        h = jnp.pad(h, ((0, pad_n), (0, 0)))
        strat_flat = jnp.pad(strat_flat, (0, pad_n))   # pads take the cheap tier-0 path
    Np = N + pad_n
    n_tok_tiles = Np // tm

    # ---- sparsity: group tokens by tier (MoE-style), per-tile tier flags ----
    perm = jnp.argsort(strat_flat)
    inv_perm = jnp.argsort(perm)
    h_sorted = jnp.take(h, perm, axis=0)
    strat_sorted = jnp.take(strat_flat, perm, axis=0)
    tier_tiles = strat_sorted.reshape(n_tok_tiles, tm)
    flags = jnp.stack([jnp.any(tier_tiles == t, axis=1) for t in range(3)],
                      axis=1).astype(jnp.int32)              # (n_tok_tiles, 3)
    strat_sorted = strat_sorted.reshape(Np, 1)

    # ---- vocab column tiling: pad V to a multiple of a 256-aligned tile ----
    tn = _pick_tn(V, tn_target)
    Vp = _round_up(V, tn)
    pad_v = Vp - V

    def pad_cols(x):
        return jnp.pad(x, ((0, 0), (0, pad_v))) if pad_v else x

    # bf16 weights halve HBM->VMEM traffic and feed the MXU at full rate;
    # biases stay f32 (added to the f32 accumulators).
    w = {k: params[k].astype(compute_dtype)
         for k in ("w_full", "w_s1", "w_s2", "w_m1", "w_m2", "w_v1", "w_v2")}
    b = {k: params[k].astype(jnp.float32)
         for k in ("b_s1", "b_s2", "b_m1", "b_m2", "b_v1", "b_v2")}
    for k in ("w_full", "w_s2", "w_m2", "w_v2"):
        w[k] = pad_cols(w[k])
    for k in ("b_s2", "b_m2", "b_v2"):
        b[k] = pad_cols(b[k])

    grid = (n_tok_tiles, Vp // tn)   # vocab axis innermost (stage-1 scratch reuse)

    def tok_map(i, j, flags):
        return (i, 0)                # per-token-tile block, revisited across v tiles

    def const_map(i, j, flags):
        return (0, 0)                # grid-invariant (stage-1 weights / biases)

    def col_map(i, j, flags):
        return (0, j)                # streamed vocab-column tiles

    def run(single_buffer):
        mode = pl.Buffered(1) if single_buffer else None

        def const_spec(shape):
            if mode is None:
                return pl.BlockSpec(shape, const_map)
            return pl.BlockSpec(shape, const_map, pipeline_mode=mode)

        in_specs = [
            pl.BlockSpec((tm, D), tok_map),            # hidden tile
            pl.BlockSpec((tm, 1), tok_map),            # strategy tile
            pl.BlockSpec((D, tn), col_map),            # w_full columns
            const_spec((D, V4)),                       # w_s1 (resident)
            const_spec((1, V4)),                       # b_s1
            pl.BlockSpec((V4, tn), col_map),           # w_s2 columns
            pl.BlockSpec((1, tn), col_map),            # b_s2 slice
            const_spec((D, V8)),                       # w_m1 (resident)
            const_spec((1, V8)),                       # b_m1
            pl.BlockSpec((V8, tn), col_map),           # w_m2 columns
            pl.BlockSpec((1, tn), col_map),            # b_m2 slice
            const_spec((D, V10)),                      # w_v1 (resident)
            const_spec((1, V10)),                      # b_v1
            pl.BlockSpec((V10, tn), col_map),          # w_v2 columns
            pl.BlockSpec((1, tn), col_map),            # b_v2 slice
        ]

        return pl.pallas_call(
            _sparse_proj_kernel,
            out_shape=jax.ShapeDtypeStruct((Np, Vp), out_dtype),
            grid_spec=pltpu.PrefetchScalarGridSpec(
                num_scalar_prefetch=1,
                grid=grid,
                in_specs=in_specs,
                out_specs=pl.BlockSpec((tm, tn), lambda i, j, flags: (i, j)),
                scratch_shapes=[
                    pltpu.VMEM((tm, V4), compute_dtype),   # cached sparse stage-1
                    pltpu.VMEM((tm, V8), compute_dtype),   # cached minimal stage-1
                    pltpu.VMEM((tm, V10), compute_dtype),  # cached focuser stage-1
                    pltpu.VMEM((tm, tn), jnp.float32),     # tier-select accumulator
                ]),
            compiler_params=pltpu.CompilerParams(
                dimension_semantics=("parallel", "arbitrary"),
                vmem_limit_bytes=vmem_limit_bytes),
        )(flags, h_sorted, strat_sorted,
          w["w_full"],
          w["w_s1"], b["b_s1"], w["w_s2"], b["b_s2"],
          w["w_m1"], b["b_m1"], w["w_m2"], b["b_m2"],
          w["w_v1"], b["b_v1"], w["w_v2"], b["b_v2"])

    try:
        out = run(single_buffer=True)
    except Exception:
        # Safety net: fall back to default double-buffered invariant blocks.
        out = run(single_buffer=False)

    # un-sort tokens, drop token/vocab padding
    out = jnp.take(out, inv_perm, axis=0)[:N, :V]
    return out.reshape(B, S, V)


# ----------------------------------------------------------------------------
# Pure-JAX f32 reference (module semantics, for correctness check)
# ----------------------------------------------------------------------------
def reference(hidden_states, params, attention_weights=None,
              high_thr=0.7, med_thr=0.3):
    if attention_weights is not None:
        strat = _strategy_from_attention(attention_weights, high_thr, med_thr)
    else:
        strat = _strategy_from_content(hidden_states, params)
    h = hidden_states.astype(jnp.float32)
    lf = h @ params["w_full"]
    ls = _gelu(h @ params["w_s1"] + params["b_s1"]) @ params["w_s2"] + params["b_s2"]
    lm = (h @ params["w_m1"] + params["b_m1"]) @ params["w_m2"] + params["b_m2"]
    vf = jax.nn.sigmoid(
        _gelu(h @ params["w_v1"] + params["b_v1"]) @ params["w_v2"] + params["b_v2"])
    s = strat[..., None]
    sel = jnp.where(s == 2, lf, jnp.where(s == 1, ls, lm))
    return sel * (1.0 + vf)


# ----------------------------------------------------------------------------
# Deterministic parameter construction (synthetic; no checkpoint load)
# ----------------------------------------------------------------------------
def make_params(key, model_dim, vocab_size):
    D, V = model_dim, vocab_size
    V4, V8, V10, H = V // 4, V // 8, V // 10, D // 2
    keys = jax.random.split(key, 16)

    def lin(k, fan_in, fan_out):
        return (jax.random.normal(k, (fan_in, fan_out), jnp.float32)
                / math.sqrt(fan_in))

    def bias(k, fan_out):
        return jax.random.normal(k, (1, fan_out), jnp.float32) * 0.01

    return {
        "w_full": lin(keys[0], D, V),                               # bias=False
        "w_s1": lin(keys[1], D, V4),   "b_s1": bias(keys[2], V4),
        "w_s2": lin(keys[3], V4, V),   "b_s2": bias(keys[4], V),
        "w_m1": lin(keys[5], D, V8),   "b_m1": bias(keys[6], V8),
        "w_m2": lin(keys[7], V8, V),   "b_m2": bias(keys[8], V),
        "w_v1": lin(keys[9], D, V10),  "b_v1": bias(keys[10], V10),
        "w_v2": lin(keys[11], V10, V), "b_v2": bias(keys[12], V),
        "w_g1": lin(keys[13], D, H),   "b_g1": bias(keys[14], H),
        "w_g2": lin(keys[15], H, 3),   "b_g2": jnp.zeros((1, 3), jnp.float32),
    }


def _to_np_f32(x):
    return np.asarray(x.astype(jnp.float32))


if __name__ == "__main__":
    # V divisible by 4, 8, 10; small shapes for the self-contained test.
    B, S, D, V, NUM_SPLATS = 2, 8, 64, 640, 6

    key = jax.random.PRNGKey(0)
    k_h, k_a, k_p = jax.random.split(key, 3)
    hidden_states = jax.random.normal(k_h, (B, S, D), jnp.float32)
    attention_weights = jax.random.uniform(k_a, (B, S, NUM_SPLATS), jnp.float32)
    params = make_params(k_p, D, V)

    ref = reference(hidden_states, params, attention_weights)

    # f32 compute/output path: validates the module semantics tightly.
    out_f32 = sparse_output_projection(hidden_states, params, attention_weights,
                                       compute_dtype=jnp.float32,
                                       out_dtype=jnp.float32)
    out_f32 = jax.block_until_ready(out_f32)
    assert out_f32.shape == (B, S, V)
    np.testing.assert_allclose(_to_np_f32(out_f32), _to_np_f32(ref),
                               atol=2e-2, rtol=2e-2)

    # default perf path: bf16 MXU feed + bf16 output.
    out_bf16 = sparse_output_projection(hidden_states, params, attention_weights)
    out_bf16 = jax.block_until_ready(out_bf16)
    np.testing.assert_allclose(_to_np_f32(out_bf16), _to_np_f32(ref),
                               atol=1.5e-1, rtol=1.5e-1)

    # content-gated path (attention_weights=None uses the attention_gate MLP)
    out2 = sparse_output_projection(hidden_states, params, None,
                                    compute_dtype=jnp.float32,
                                    out_dtype=jnp.float32)
    out2 = jax.block_until_ready(out2)
    ref2 = reference(hidden_states, params, None)
    np.testing.assert_allclose(_to_np_f32(out2), _to_np_f32(ref2),
                               atol=2e-2, rtol=2e-2)

    print("KERNEL_OK")
</pallas_src>

<mosaic_0001>
module attributes {stable_mosaic.version = 11 : i64} {
  func.func @_sparse_proj_kernel(%arg0: i32, %arg1: i32, %arg2: memref<2x3xi32, #tpu.memory_space<smem>>, %arg3: memref<8x64xf32, #tpu.memory_space<vmem>>, %arg4: memref<8x1xi32, #tpu.memory_space<vmem>>, %arg5: memref<64x256xf32, #tpu.memory_space<vmem>>, %arg6: memref<64x160xf32, #tpu.memory_space<vmem>>, %arg7: memref<1x160xf32, #tpu.memory_space<vmem>>, %arg8: memref<160x256xf32, #tpu.memory_space<vmem>>, %arg9: memref<1x256xf32, #tpu.memory_space<vmem>>, %arg10: memref<64x80xf32, #tpu.memory_space<vmem>>, %arg11: memref<1x80xf32, #tpu.memory_space<vmem>>, %arg12: memref<80x256xf32, #tpu.memory_space<vmem>>, %arg13: memref<1x256xf32, #tpu.memory_space<vmem>>, %arg14: memref<64x64xf32, #tpu.memory_space<vmem>>, %arg15: memref<1x64xf32, #tpu.memory_space<vmem>>, %arg16: memref<64x256xf32, #tpu.memory_space<vmem>>, %arg17: memref<1x256xf32, #tpu.memory_space<vmem>>, %arg18: memref<8x256xf32, #tpu.memory_space<vmem>>, %arg19: memref<8x160xf32, #tpu.memory_space<vmem>>, %arg20: memref<8x80xf32, #tpu.memory_space<vmem>>, %arg21: memref<8x64xf32, #tpu.memory_space<vmem>>, %arg22: memref<8x256xf32, #tpu.memory_space<vmem>>) attributes {dimension_semantics = [#tpu.dimension_semantics<parallel>, #tpu.dimension_semantics<arbitrary>], iteration_bounds = array<i64: 2, 3>, scalar_prefetch = 1 : i64, scratch_operands = 4 : i64, tpu.core_type = #tpu.core_type<tc>, window_params = [{transform_indices = @transform_0, window_bounds = array<i64: 8, 64>}, {transform_indices = @transform_1, window_bounds = array<i64: 8, 1>}, {transform_indices = @transform_2, window_bounds = array<i64: 64, 256>}, {pipeline_mode = #tpu.pipeline_mode<synchronous>, transform_indices = @transform_3, window_bounds = array<i64: 64, 160>}, {pipeline_mode = #tpu.pipeline_mode<synchronous>, transform_indices = @transform_4, window_bounds = array<i64: 1, 160>}, {transform_indices = @transform_5, window_bounds = array<i64: 160, 256>}, {transform_indices = @transform_6, window_bounds = array<i64: 1, 256>}, {pipeline_mode = #tpu.pipeline_mode<synchronous>, transform_indices = @transform_7, window_bounds = array<i64: 64, 80>}, {pipeline_mode = #tpu.pipeline_mode<synchronous>, transform_indices = @transform_8, window_bounds = array<i64: 1, 80>}, {transform_indices = @transform_9, window_bounds = array<i64: 80, 256>}, {transform_indices = @transform_10, window_bounds = array<i64: 1, 256>}, {pipeline_mode = #tpu.pipeline_mode<synchronous>, transform_indices = @transform_11, window_bounds = array<i64: 64, 64>}, {pipeline_mode = #tpu.pipeline_mode<synchronous>, transform_indices = @transform_12, window_bounds = array<i64: 1, 64>}, {transform_indices = @transform_13, window_bounds = array<i64: 64, 256>}, {transform_indices = @transform_14, window_bounds = array<i64: 1, 256>}, {transform_indices = @transform_15, window_bounds = array<i64: 8, 256>}]} {
    %0 = arith.index_cast %arg0 : i32 to index
    %c0 = arith.constant 0 : index
    %1 = memref.load %arg2[%0, %c0] : memref<2x3xi32, #tpu.memory_space<smem>>
    %c0_i32 = arith.constant 0 : i32
    %2 = arith.cmpi sgt, %1, %c0_i32 : i32
    %3 = arith.index_cast %arg0 : i32 to index
    %c1 = arith.constant 1 : index
    %4 = memref.load %arg2[%3, %c1] : memref<2x3xi32, #tpu.memory_space<smem>>
    %c0_i32_0 = arith.constant 0 : i32
    %5 = arith.cmpi sgt, %4, %c0_i32_0 : i32
    %6 = arith.index_cast %arg0 : i32 to index
    %c2 = arith.constant 2 : index
    %7 = memref.load %arg2[%6, %c2] : memref<2x3xi32, #tpu.memory_space<smem>>
    %c0_i32_1 = arith.constant 0 : i32
    %8 = arith.cmpi sgt, %7, %c0_i32_1 : i32
    %c0_i32_2 = arith.constant 0 : i32
    %9 = arith.cmpi eq, %arg1, %c0_i32_2 : i32
    %10 = arith.extui %9 : i1 to i32
    %c0_i32_3 = arith.constant 0 : i32
    %11 = arith.cmpi ne, %10, %c0_i32_3 : i32
    scf.if %11 {
      %c0_24 = arith.constant 0 : index
      %c0_25 = arith.constant 0 : index
      %37 = vector.load %arg3[%c0_24, %c0_25] : memref<8x64xf32, #tpu.memory_space<vmem>>, vector<8x64xf32>
      %c0_26 = arith.constant 0 : index
      %c0_27 = arith.constant 0 : index
      %38 = vector.load %arg14[%c0_26, %c0_27] : memref<64x64xf32, #tpu.memory_space<vmem>>, vector<64x64xf32>
      %cst_28 = arith.constant dense<0.000000e+00> : vector<8x64xf32>
      %39 = tpu.matmul %37, %38, %cst_28 {dimension_numbers = #tpu.dot_dimension_numbers<[1], [0], [0], [1], [0, 0, 1, 1], [], []>} : vector<8x64xf32>, vector<64x64xf32>, vector<8x64xf32> -> vector<8x64xf32>
      %c0_29 = arith.constant 0 : index
      %c0_30 = arith.constant 0 : index
      %40 = vector.load %arg15[%c0_29, %c0_30] : memref<1x64xf32, #tpu.memory_space<vmem>>, vector<1x64xf32>
      %41 = vector.broadcast %40 : vector<1x64xf32> to vector<8x64xf32>
      %42 = arith.addf %39, %41 : vector<8x64xf32>
      %cst_31 = arith.constant 5.000000e-01 : f32
      %43 = vector.broadcast %cst_31 : f32 to vector<8x64xf32>
      %44 = arith.mulf %43, %42 : vector<8x64xf32>
      %cst_32 = arith.constant 0.707106769 : f32
      %45 = vector.broadcast %cst_32 : f32 to vector<8x64xf32>
      %46 = arith.mulf %42, %45 : vector<8x64xf32>
      %47 = math.erf %46 : vector<8x64xf32>
      %cst_33 = arith.constant 1.000000e+00 : f32
      %48 = vector.broadcast %cst_33 : f32 to vector<8x64xf32>
      %49 = arith.addf %48, %47 : vector<8x64xf32>
      %50 = arith.mulf %44, %49 : vector<8x64xf32>
      %c0_34 = arith.constant 0 : index
      %c0_35 = arith.constant 0 : index
      %51 = vector.load %arg21[%c0_34, %c0_35] : memref<8x64xf32, #tpu.memory_space<vmem>>, vector<8x64xf32>
      tpu.vector_store %arg21[%c0_34, %c0_35], %50 {strides = array<i32>} : memref<8x64xf32, #tpu.memory_space<vmem>>, vector<8x64xf32>,
      %52 = arith.extui %5 : i1 to i32
      %c0_i32_36 = arith.constant 0 : i32
      %53 = arith.cmpi ne, %52, %c0_i32_36 : i32
      scf.if %53 {
        %c0_38 = arith.constant 0 : index
        %c0_39 = arith.constant 0 : index
        %56 = vector.load %arg6[%c0_38, %c0_39] : memref<64x160xf32, #tpu.memory_space<vmem>>, vector<64x160xf32>
        %cst_40 = arith.constant dense<0.000000e+00> : vector<8x160xf32>
        %57 = tpu.matmul %37, %56, %cst_40 {dimension_numbers = #tpu.dot_dimension_numbers<[1], [0], [0], [1], [0, 0, 1, 1], [], []>} : vector<8x64xf32>, vector<64x160xf32>, vector<8x160xf32> -> vector<8x160xf32>
        %c0_41 = arith.constant 0 : index
        %c0_42 = arith.constant 0 : index
        %58 = vector.load %arg7[%c0_41, %c0_42] : memref<1x160xf32, #tpu.memory_space<vmem>>, vector<1x160xf32>
        %59 = vector.broadcast %58 : vector<1x160xf32> to vector<8x160xf32>
        %60 = arith.addf %57, %59 : vector<8x160xf32>
        %cst_43 = arith.constant 5.000000e-01 : f32
        %61 = vector.broadcast %cst_43 : f32 to vector<8x160xf32>
        %62 = arith.mulf %61, %60 : vector<8x160xf32>
        %cst_44 = arith.constant 0.707106769 : f32
        %63 = vector.broadcast %cst_44 : f32 to vector<8x160xf32>
        %64 = arith.mulf %60, %63 : vector<8x160xf32>
        %65 = math.erf %64 : vector<8x160xf32>
        %cst_45 = arith.constant 1.000000e+00 : f32
        %66 = vector.broadcast %cst_45 : f32 to vector<8x160xf32>
        %67 = arith.addf %66, %65 : vector<8x160xf32>
        %68 = arith.mulf %62, %67 : vector<8x160xf32>
        %c0_46 = arith.constant 0 : index
        %c0_47 = arith.constant 0 : index
        %69 = vector.load %arg19[%c0_46, %c0_47] : memref<8x160xf32, #tpu.memory_space<vmem>>, vector<8x160xf32>
        tpu.vector_store %arg19[%c0_46, %c0_47], %68 {strides = array<i32>} : memref<8x160xf32, #tpu.memory_space<vmem>>, vector<8x160xf32>,
      } else {
      }
      %54 = arith.extui %2 : i1 to i32
      %c0_i32_37 = arith.constant 0 : i32
      %55 = arith.cmpi ne, %54, %c0_i32_37 : i32
      scf.if %55 {
        %c0_38 = arith.constant 0 : index
        %c0_39 = arith.constant 0 : index
        %56 = vector.load %arg10[%c0_38, %c0_39] : memref<64x80xf32, #tpu.memory_space<vmem>>, vector<64x80xf32>
        %cst_40 = arith.constant dense<0.000000e+00> : vector<8x80xf32>
        %57 = tpu.matmul %37, %56, %cst_40 {dimension_numbers = #tpu.dot_dimension_numbers<[1], [0], [0], [1], [0, 0, 1, 1], [], []>} : vector<8x64xf32>, vector<64x80xf32>, vector<8x80xf32> -> vector<8x80xf32>
        %c0_41 = arith.constant 0 : index
        %c0_42 = arith.constant 0 : index
        %58 = vector.load %arg11[%c0_41, %c0_42] : memref<1x80xf32, #tpu.memory_space<vmem>>, vector<1x80xf32>
        %59 = vector.broadcast %58 : vector<1x80xf32> to vector<8x80xf32>
        %60 = arith.addf %57, %59 : vector<8x80xf32>
        %c0_43 = arith.constant 0 : index
        %c0_44 = arith.constant 0 : index
        %61 = vector.load %arg20[%c0_43, %c0_44] : memref<8x80xf32, #tpu.memory_space<vmem>>, vector<8x80xf32>
        tpu.vector_store %arg20[%c0_43, %c0_44], %60 {strides = array<i32>} : memref<8x80xf32, #tpu.memory_space<vmem>>, vector<8x80xf32>,
      } else {
      }
    } else {
    }
    %c0_4 = arith.constant 0 : index
    %c0_5 = arith.constant 0 : index
    %12 = vector.load %arg4[%c0_4, %c0_5] : memref<8x1xi32, #tpu.memory_space<vmem>>, vector<8x1xi32>
    %cst = arith.constant 0.000000e+00 : f32
    %13 = vector.broadcast %cst : f32 to vector<8x256xf32>
    %c0_6 = arith.constant 0 : index
    %c0_7 = arith.constant 0 : index
    %14 = vector.load %arg22[%c0_6, %c0_7] : memref<8x256xf32, #tpu.memory_space<vmem>>, vector<8x256xf32>
    tpu.vector_store %arg22[%c0_6, %c0_7], %13 {strides = array<i32>} : memref<8x256xf32, #tpu.memory_space<vmem>>, vector<8x256xf32>,
    %15 = arith.extui %8 : i1 to i32
    %c0_i32_8 = arith.constant 0 : i32
    %16 = arith.cmpi ne, %15, %c0_i32_8 : i32
    scf.if %16 {
      %c0_24 = arith.constant 0 : index
      %c0_25 = arith.constant 0 : index
      %37 = vector.load %arg3[%c0_24, %c0_25] : memref<8x64xf32, #tpu.memory_space<vmem>>, vector<8x64xf32>
      %c0_26 = arith.constant 0 : index
      %c0_27 = arith.constant 0 : index
      %38 = vector.load %arg5[%c0_26, %c0_27] : memref<64x256xf32, #tpu.memory_space<vmem>>, vector<64x256xf32>
      %cst_28 = arith.constant dense<0.000000e+00> : vector<8x256xf32>
      %39 = tpu.matmul %37, %38, %cst_28 {dimension_numbers = #tpu.dot_dimension_numbers<[1], [0], [0], [1], [0, 0, 1, 1], [], []>} : vector<8x64xf32>, vector<64x256xf32>, vector<8x256xf32> -> vector<8x256xf32>
      %c0_29 = arith.constant 0 : index
      %c0_30 = arith.constant 0 : index
      %40 = vector.load %arg22[%c0_29, %c0_30] : memref<8x256xf32, #tpu.memory_space<vmem>>, vector<8x256xf32>
      %c2_i32 = arith.constant 2 : i32
      %41 = vector.broadcast %c2_i32 : i32 to vector<8x1xi32>
      %42 = arith.cmpi eq, %12, %41 : vector<8x1xi32>
      %cst_31 = arith.constant 0.000000e+00 : f32
      %43 = vector.shape_cast %42 : vector<8x1xi1> to vector<8x1xi1>
      %44 = vector.broadcast %43 : vector<8x1xi1> to vector<8x256xi1>
      %45 = vector.broadcast %cst_31 : f32 to vector<8x256xf32>
      %46 = arith.select %44, %39, %45 : vector<8x256xi1>, vector<8x256xf32>
      %47 = arith.addf %40, %46 : vector<8x256xf32>
      %c0_32 = arith.constant 0 : index
      %c0_33 = arith.constant 0 : index
      %48 = vector.load %arg22[%c0_32, %c0_33] : memref<8x256xf32, #tpu.memory_space<vmem>>, vector<8x256xf32>
      tpu.vector_store %arg22[%c0_32, %c0_33], %47 {strides = array<i32>} : memref<8x256xf32, #tpu.memory_space<vmem>>, vector<8x256xf32>,
    } else {
    }
    %17 = arith.extui %5 : i1 to i32
    %c0_i32_9 = arith.constant 0 : i32
    %18 = arith.cmpi ne, %17, %c0_i32_9 : i32
    scf.if %18 {
      %c0_24 = arith.constant 0 : index
      %c0_25 = arith.constant 0 : index
      %37 = vector.load %arg19[%c0_24, %c0_25] : memref<8x160xf32, #tpu.memory_space<vmem>>, vector<8x160xf32>
      %c0_26 = arith.constant 0 : index
      %c0_27 = arith.constant 0 : index
      %38 = vector.load %arg8[%c0_26, %c0_27] : memref<160x256xf32, #tpu.memory_space<vmem>>, vector<160x256xf32>
      %cst_28 = arith.constant dense<0.000000e+00> : vector<8x256xf32>
      %39 = tpu.matmul %37, %38, %cst_28 {dimension_numbers = #tpu.dot_dimension_numbers<[1], [0], [0], [1], [0, 0, 1, 1], [], []>} : vector<8x160xf32>, vector<160x256xf32>, vector<8x256xf32> -> vector<8x256xf32>
      %c0_29 = arith.constant 0 : index
      %c0_30 = arith.constant 0 : index
      %40 = vector.load %arg9[%c0_29, %c0_30] : memref<1x256xf32, #tpu.memory_space<vmem>>, vector<1x256xf32>
      %41 = vector.broadcast %40 : vector<1x256xf32> to vector<8x256xf32>
      %42 = arith.addf %39, %41 : vector<8x256xf32>
      %c0_31 = arith.constant 0 : index
      %c0_32 = arith.constant 0 : index
      %43 = vector.load %arg22[%c0_31, %c0_32] : memref<8x256xf32, #tpu.memory_space<vmem>>, vector<8x256xf32>
      %c1_i32 = arith.constant 1 : i32
      %44 = vector.broadcast %c1_i32 : i32 to vector<8x1xi32>
      %45 = arith.cmpi eq, %12, %44 : vector<8x1xi32>
      %cst_33 = arith.constant 0.000000e+00 : f32
      %46 = vector.shape_cast %45 : vector<8x1xi1> to vector<8x1xi1>
      %47 = vector.broadcast %46 : vector<8x1xi1> to vector<8x256xi1>
      %48 = vector.broadcast %cst_33 : f32 to vector<8x256xf32>
      %49 = arith.select %47, %42, %48 : vector<8x256xi1>, vector<8x256xf32>
      %50 = arith.addf %43, %49 : vector<8x256xf32>
      %c0_34 = arith.constant 0 : index
      %c0_35 = arith.constant 0 : index
      %51 = vector.load %arg22[%c0_34, %c0_35] : memref<8x256xf32, #tpu.memory_space<vmem>>, vector<8x256xf32>
      tpu.vector_store %arg22[%c0_34, %c0_35], %50 {strides = array<i32>} : memref<8x256xf32, #tpu.memory_space<vmem>>, vector<8x256xf32>,
    } else {
    }
    %19 = arith.extui %2 : i1 to i32
    %c0_i32_10 = arith.constant 0 : i32
    %20 = arith.cmpi ne, %19, %c0_i32_10 : i32
    scf.if %20 {
      %c0_24 = arith.constant 0 : index
      %c0_25 = arith.constant 0 : index
      %37 = vector.load %arg20[%c0_24, %c0_25] : memref<8x80xf32, #tpu.memory_space<vmem>>, vector<8x80xf32>
      %c0_26 = arith.constant 0 : index
      %c0_27 = arith.constant 0 : index
      %38 = vector.load %arg12[%c0_26, %c0_27] : memref<80x256xf32, #tpu.memory_space<vmem>>, vector<80x256xf32>
      %cst_28 = arith.constant dense<0.000000e+00> : vector<8x256xf32>
      %39 = tpu.matmul %37, %38, %cst_28 {dimension_numbers = #tpu.dot_dimension_numbers<[1], [0], [0], [1], [0, 0, 1, 1], [], []>} : vector<8x80xf32>, vector<80x256xf32>, vector<8x256xf32> -> vector<8x256xf32>
      %c0_29 = arith.constant 0 : index
      %c0_30 = arith.constant 0 : index
      %40 = vector.load %arg13[%c0_29, %c0_30] : memref<1x256xf32, #tpu.memory_space<vmem>>, vector<1x256xf32>
      %41 = vector.broadcast %40 : vector<1x256xf32> to vector<8x256xf32>
      %42 = arith.addf %39, %41 : vector<8x256xf32>
      %c0_31 = arith.constant 0 : index
      %c0_32 = arith.constant 0 : index
      %43 = vector.load %arg22[%c0_31, %c0_32] : memref<8x256xf32, #tpu.memory_space<vmem>>, vector<8x256xf32>
      %c0_i32_33 = arith.constant 0 : i32
      %44 = vector.broadcast %c0_i32_33 : i32 to vector<8x1xi32>
      %45 = arith.cmpi eq, %12, %44 : vector<8x1xi32>
      %cst_34 = arith.constant 0.000000e+00 : f32
      %46 = vector.shape_cast %45 : vector<8x1xi1> to vector<8x1xi1>
      %47 = vector.broadcast %46 : vector<8x1xi1> to vector<8x256xi1>
      %48 = vector.broadcast %cst_34 : f32 to vector<8x256xf32>
      %49 = arith.select %47, %42, %48 : vector<8x256xi1>, vector<8x256xf32>
      %50 = arith.addf %43, %49 : vector<8x256xf32>
      %c0_35 = arith.constant 0 : index
      %c0_36 = arith.constant 0 : index
      %51 = vector.load %arg22[%c0_35, %c0_36] : memref<8x256xf32, #tpu.memory_space<vmem>>, vector<8x256xf32>
      tpu.vector_store %arg22[%c0_35, %c0_36], %50 {strides = array<i32>} : memref<8x256xf32, #tpu.memory_space<vmem>>, vector<8x256xf32>,
    } else {
    }
    %c0_11 = arith.constant 0 : index
    %c0_12 = arith.constant 0 : index
    %21 = vector.load %arg21[%c0_11, %c0_12] : memref<8x64xf32, #tpu.memory_space<vmem>>, vector<8x64xf32>
    %c0_13 = arith.constant 0 : index
    %c0_14 = arith.constant 0 : index
    %22 = vector.load %arg16[%c0_13, %c0_14] : memref<64x256xf32, #tpu.memory_space<vmem>>, vector<64x256xf32>
    %cst_15 = arith.constant dense<0.000000e+00> : vector<8x256xf32>
    %23 = tpu.matmul %21, %22, %cst_15 {dimension_numbers = #tpu.dot_dimension_numbers<[1], [0], [0], [1], [0, 0, 1, 1], [], []>} : vector<8x64xf32>, vector<64x256xf32>, vector<8x256xf32> -> vector<8x256xf32>
    %c0_16 = arith.constant 0 : index
    %c0_17 = arith.constant 0 : index
    %24 = vector.load %arg17[%c0_16, %c0_17] : memref<1x256xf32, #tpu.memory_space<vmem>>, vector<1x256xf32>
    %25 = vector.broadcast %24 : vector<1x256xf32> to vector<8x256xf32>
    %26 = arith.addf %23, %25 : vector<8x256xf32>
    %27 = arith.negf %26 : vector<8x256xf32>
    %28 = math.exp %27 : vector<8x256xf32>
    %cst_18 = arith.constant 1.000000e+00 : f32
    %29 = vector.broadcast %cst_18 : f32 to vector<8x256xf32>
    %30 = arith.addf %29, %28 : vector<8x256xf32>
    %31 = arith.divf %29, %30 : vector<8x256xf32>
    %c0_19 = arith.constant 0 : index
    %c0_20 = arith.constant 0 : index
    %32 = vector.load %arg22[%c0_19, %c0_20] : memref<8x256xf32, #tpu.memory_space<vmem>>, vector<8x256xf32>
    %cst_21 = arith.constant 1.000000e+00 : f32
    %33 = vector.broadcast %cst_21 : f32 to vector<8x256xf32>
    %34 = arith.addf %33, %31 : vector<8x256xf32>
    %35 = arith.mulf %32, %34 : vector<8x256xf32>
    %c0_22 = arith.constant 0 : index
    %c0_23 = arith.constant 0 : index
    %36 = vector.load %arg18[%c0_22, %c0_23] : memref<8x256xf32, #tpu.memory_space<vmem>>, vector<8x256xf32>
    tpu.vector_store %arg18[%c0_22, %c0_23], %35 {strides = array<i32>} : memref<8x256xf32, #tpu.memory_space<vmem>>, vector<8x256xf32>,
    return
  }
  func.func @transform_0(%arg0: i32, %arg1: i32, %arg2: memref<2x3xi32, #tpu.memory_space<smem>>) -> (i32, i32) {
    %c0_i32 = arith.constant 0 : i32
    %c0_i32_0 = arith.constant 0 : i32
    return %arg0, %c0_i32 : i32, i32
  }
  func.func @transform_1(%arg0: i32, %arg1: i32, %arg2: memref<2x3xi32, #tpu.memory_space<smem>>) -> (i32, i32) {
    %c0_i32 = arith.constant 0 : i32
    %c0_i32_0 = arith.constant 0 : i32
    return %arg0, %c0_i32 : i32, i32
  }
  func.func @transform_2(%arg0: i32, %arg1: i32, %arg2: memref<2x3xi32, #tpu.memory_space<smem>>) -> (i32, i32) {
    %c0_i32 = arith.constant 0 : i32
    %c0_i32_0 = arith.constant 0 : i32
    return %c0_i32, %arg1 : i32, i32
  }
  func.func @transform_3(%arg0: i32, %arg1: i32, %arg2: memref<2x3xi32, #tpu.memory_space<smem>>) -> (i32, i32) {
    %c0_i32 = arith.constant 0 : i32
    %c0_i32_0 = arith.constant 0 : i32
    %c0_i32_1 = arith.constant 0 : i32
    return %c0_i32, %c0_i32_0 : i32, i32
  }
  func.func @transform_4(%arg0: i32, %arg1: i32, %arg2: memref<2x3xi32, #tpu.memory_space<smem>>) -> (i32, i32) {
    %c0_i32 = arith.constant 0 : i32
    %c0_i32_0 = arith.constant 0 : i32
    %c0_i32_1 = arith.constant 0 : i32
    return %c0_i32, %c0_i32_0 : i32, i32
  }
  func.func @transform_5(%arg0: i32, %arg1: i32, %arg2: memref<2x3xi32, #tpu.memory_space<smem>>) -> (i32, i32) {
    %c0_i32 = arith.constant 0 : i32
    %c0_i32_0 = arith.constant 0 : i32
    return %c0_i32, %arg1 : i32, i32
  }
  func.func @transform_6(%arg0: i32, %arg1: i32, %arg2: memref<2x3xi32, #tpu.memory_space<smem>>) -> (i32, i32) {
    %c0_i32 = arith.constant 0 : i32
    %c0_i32_0 = arith.constant 0 : i32
    return %c0_i32, %arg1 : i32, i32
  }
  func.func @transform_7(%arg0: i32, %arg1: i32, %arg2: memref<2x3xi32, #tpu.memory_space<smem>>) -> (i32, i32) {
    %c0_i32 = arith.constant 0 : i32
    %c0_i32_0 = arith.constant 0 : i32
    %c0_i32_1 = arith.constant 0 : i32
    return %c0_i32, %c0_i32_0 : i32, i32
  }
  func.func @transform_8(%arg0: i32, %arg1: i32, %arg2: memref<2x3xi32, #tpu.memory_space<smem>>) -> (i32, i32) {
    %c0_i32 = arith.constant 0 : i32
    %c0_i32_0 = arith.constant 0 : i32
    %c0_i32_1 = arith.constant 0 : i32
    return %c0_i32, %c0_i32_0 : i32, i32
  }
  func.func @transform_9(%arg0: i32, %arg1: i32, %arg2: memref<2x3xi32, #tpu.memory_space<smem>>) -> (i32, i32) {
    %c0_i32 = arith.constant 0 : i32
    %c0_i32_0 = arith.constant 0 : i32
    return %c0_i32, %arg1 : i32, i32
  }
  func.func @transform_10(%arg0: i32, %arg1: i32, %arg2: memref<2x3xi32, #tpu.memory_space<smem>>) -> (i32, i32) {
    %c0_i32 = arith.constant 0 : i32
    %c0_i32_0 = arith.constant 0 : i32
    return %c0_i32, %arg1 : i32, i32
  }
  func.func @transform_11(%arg0: i32, %arg1: i32, %arg2: memref<2x3xi32, #tpu.memory_space<smem>>) -> (i32, i32) {
    %c0_i32 = arith.constant 0 : i32
    %c0_i32_0 = arith.constant 0 : i32
    %c0_i32_1 = arith.constant 0 : i32
    return %c0_i32, %c0_i32_0 : i32, i32
  }
  func.func @transform_12(%arg0: i32, %arg1: i32, %arg2: memref<2x3xi32, #tpu.memory_space<smem>>) -> (i32, i32) {
    %c0_i32 = arith.constant 0 : i32
    %c0_i32_0 = arith.constant 0 : i32
    %c0_i32_1 = arith.constant 0 : i32
    return %c0_i32, %c0_i32_0 : i32, i32
  }
  func.func @transform_13(%arg0: i32, %arg1: i32, %arg2: memref<2x3xi32, #tpu.memory_space<smem>>) -> (i32, i32) {
    %c0_i32 = arith.constant 0 : i32
    %c0_i32_0 = arith.constant 0 : i32
    return %c0_i32, %arg1 : i32, i32
  }
  func.func @transform_14(%arg0: i32, %arg1: i32, %arg2: memref<2x3xi32, #tpu.memory_space<smem>>) -> (i32, i32) {
    %c0_i32 = arith.constant 0 : i32
    %c0_i32_0 = arith.constant 0 : i32
    return %c0_i32, %arg1 : i32, i32
  }
  func.func @transform_15(%arg0: i32, %arg1: i32, %arg2: memref<2x3xi32, #tpu.memory_space<smem>>) -> (i32, i32) {
    %c0_i32 = arith.constant 0 : i32
    return %arg0, %arg1 : i32, i32
  }
}

module attributes {stable_mosaic.version = 11 : i64} {
  func.func @_sparse_proj_kernel(%arg0: i32, %arg1: i32, %arg2: memref<2x3xi32, #tpu.memory_space<smem>>, %arg3: memref<8x64xf32, #tpu.memory_space<vmem>>, %arg4: memref<8x1xi32, #tpu.memory_space<vmem>>, %arg5: memref<64x256xf32, #tpu.memory_space<vmem>>, %arg6: memref<64x160xf32, #tpu.memory_space<vmem>>, %arg7: memref<1x160xf32, #tpu.memory_space<vmem>>, %arg8: memref<160x256xf32, #tpu.memory_space<vmem>>, %arg9: memref<1x256xf32, #tpu.memory_space<vmem>>, %arg10: memref<64x80xf32, #tpu.memory_space<vmem>>, %arg11: memref<1x80xf32, #tpu.memory_space<vmem>>, %arg12: memref<80x256xf32, #tpu.memory_space<vmem>>, %arg13: memref<1x256xf32, #tpu.memory_space<vmem>>, %arg14: memref<64x64xf32, #tpu.memory_space<vmem>>, %arg15: memref<1x64xf32, #tpu.memory_space<vmem>>, %arg16: memref<64x256xf32, #tpu.memory_space<vmem>>, %arg17: memref<1x256xf32, #tpu.memory_space<vmem>>, %arg18: memref<8x256xf32, #tpu.memory_space<vmem>>, %arg19: memref<8x160xf32, #tpu.memory_space<vmem>>, %arg20: memref<8x80xf32, #tpu.memory_space<vmem>>, %arg21: memref<8x64xf32, #tpu.memory_space<vmem>>, %arg22: memref<8x256xf32, #tpu.memory_space<vmem>>) attributes {dimension_semantics = [#tpu.dimension_semantics<parallel>, #tpu.dimension_semantics<arbitrary>], iteration_bounds = array<i64: 2, 3>, scalar_prefetch = 1 : i64, scratch_operands = 4 : i64, tpu.core_type = #tpu.core_type<tc>, window_params = [{transform_indices = @transform_0, window_bounds = array<i64: 8, 64>}, {transform_indices = @transform_1, window_bounds = array<i64: 8, 1>}, {transform_indices = @transform_2, window_bounds = array<i64: 64, 256>}, {pipeline_mode = #tpu.pipeline_mode<synchronous>, transform_indices = @transform_3, window_bounds = array<i64: 64, 160>}, {pipeline_mode = #tpu.pipeline_mode<synchronous>, transform_indices = @transform_4, window_bounds = array<i64: 1, 160>}, {transform_indices = @transform_5, window_bounds = array<i64: 160, 256>}, {transform_indices = @transform_6, window_bounds = array<i64: 1, 256>}, {pipeline_mode = #tpu.pipeline_mode<synchronous>, transform_indices = @transform_7, window_bounds = array<i64: 64, 80>}, {pipeline_mode = #tpu.pipeline_mode<synchronous>, transform_indices = @transform_8, window_bounds = array<i64: 1, 80>}, {transform_indices = @transform_9, window_bounds = array<i64: 80, 256>}, {transform_indices = @transform_10, window_bounds = array<i64: 1, 256>}, {pipeline_mode = #tpu.pipeline_mode<synchronous>, transform_indices = @transform_11, window_bounds = array<i64: 64, 64>}, {pipeline_mode = #tpu.pipeline_mode<synchronous>, transform_indices = @transform_12, window_bounds = array<i64: 1, 64>}, {transform_indices = @transform_13, window_bounds = array<i64: 64, 256>}, {transform_indices = @transform_14, window_bounds = array<i64: 1, 256>}, {transform_indices = @transform_15, window_bounds = array<i64: 8, 256>}]} {
    %0 = arith.index_cast %arg0 : i32 to index
    %c0 = arith.constant 0 : index
    %1 = memref.load %arg2[%0, %c0] : memref<2x3xi32, #tpu.memory_space<smem>>
    %c0_i32 = arith.constant 0 : i32
    %2 = arith.cmpi sgt, %1, %c0_i32 : i32
    %3 = arith.index_cast %arg0 : i32 to index
    %c1 = arith.constant 1 : index
    %4 = memref.load %arg2[%3, %c1] : memref<2x3xi32, #tpu.memory_space<smem>>
    %c0_i32_0 = arith.constant 0 : i32
    %5 = arith.cmpi sgt, %4, %c0_i32_0 : i32
    %6 = arith.index_cast %arg0 : i32 to index
    %c2 = arith.constant 2 : index
    %7 = memref.load %arg2[%6, %c2] : memref<2x3xi32, #tpu.memory_space<smem>>
    %c0_i32_1 = arith.constant 0 : i32
    %8 = arith.cmpi sgt, %7, %c0_i32_1 : i32
    %c0_i32_2 = arith.constant 0 : i32
    %9 = arith.cmpi eq, %arg1, %c0_i32_2 : i32
    %10 = arith.extui %9 : i1 to i32
    %c0_i32_3 = arith.constant 0 : i32
    %11 = arith.cmpi ne, %10, %c0_i32_3 : i32
    scf.if %11 {
      %c0_24 = arith.constant 0 : index
      %c0_25 = arith.constant 0 : index
      %37 = vector.load %arg3[%c0_24, %c0_25] : memref<8x64xf32, #tpu.memory_space<vmem>>, vector<8x64xf32>
      %c0_26 = arith.constant 0 : index
      %c0_27 = arith.constant 0 : index
      %38 = vector.load %arg14[%c0_26, %c0_27] : memref<64x64xf32, #tpu.memory_space<vmem>>, vector<64x64xf32>
      %cst_28 = arith.constant dense<0.000000e+00> : vector<8x64xf32>
      %39 = tpu.matmul %37, %38, %cst_28 {dimension_numbers = #tpu.dot_dimension_numbers<[1], [0], [0], [1], [0, 0, 1, 1], [], []>} : vector<8x64xf32>, vector<64x64xf32>, vector<8x64xf32> -> vector<8x64xf32>
      %c0_29 = arith.constant 0 : index
      %c0_30 = arith.constant 0 : index
      %40 = vector.load %arg15[%c0_29, %c0_30] : memref<1x64xf32, #tpu.memory_space<vmem>>, vector<1x64xf32>
      %41 = vector.broadcast %40 : vector<1x64xf32> to vector<8x64xf32>
      %42 = arith.addf %39, %41 : vector<8x64xf32>
      %cst_31 = arith.constant 5.000000e-01 : f32
      %43 = vector.broadcast %cst_31 : f32 to vector<8x64xf32>
      %44 = arith.mulf %43, %42 : vector<8x64xf32>
      %cst_32 = arith.constant 0.707106769 : f32
      %45 = vector.broadcast %cst_32 : f32 to vector<8x64xf32>
      %46 = arith.mulf %42, %45 : vector<8x64xf32>
      %47 = math.erf %46 : vector<8x64xf32>
      %cst_33 = arith.constant 1.000000e+00 : f32
      %48 = vector.broadcast %cst_33 : f32 to vector<8x64xf32>
      %49 = arith.addf %48, %47 : vector<8x64xf32>
      %50 = arith.mulf %44, %49 : vector<8x64xf32>
      %c0_34 = arith.constant 0 : index
      %c0_35 = arith.constant 0 : index
      %51 = vector.load %arg21[%c0_34, %c0_35] : memref<8x64xf32, #tpu.memory_space<vmem>>, vector<8x64xf32>
      tpu.vector_store %arg21[%c0_34, %c0_35], %50 {strides = array<i32>} : memref<8x64xf32, #tpu.memory_space<vmem>>, vector<8x64xf32>,
      %52 = arith.extui %5 : i1 to i32
      %c0_i32_36 = arith.constant 0 : i32
      %53 = arith.cmpi ne, %52, %c0_i32_36 : i32
      scf.if %53 {
        %c0_38 = arith.constant 0 : index
        %c0_39 = arith.constant 0 : index
        %56 = vector.load %arg6[%c0_38, %c0_39] : memref<64x160xf32, #tpu.memory_space<vmem>>, vector<64x160xf32>
        %cst_40 = arith.constant dense<0.000000e+00> : vector<8x160xf32>
        %57 = tpu.matmul %37, %56, %cst_40 {dimension_numbers = #tpu.dot_dimension_numbers<[1], [0], [0], [1], [0, 0, 1, 1], [], []>} : vector<8x64xf32>, vector<64x160xf32>, vector<8x160xf32> -> vector<8x160xf32>
        %c0_41 = arith.constant 0 : index
        %c0_42 = arith.constant 0 : index
        %58 = vector.load %arg7[%c0_41, %c0_42] : memref<1x160xf32, #tpu.memory_space<vmem>>, vector<1x160xf32>
        %59 = vector.broadcast %58 : vector<1x160xf32> to vector<8x160xf32>
        %60 = arith.addf %57, %59 : vector<8x160xf32>
        %cst_43 = arith.constant 5.000000e-01 : f32
        %61 = vector.broadcast %cst_43 : f32 to vector<8x160xf32>
        %62 = arith.mulf %61, %60 : vector<8x160xf32>
        %cst_44 = arith.constant 0.707106769 : f32
        %63 = vector.broadcast %cst_44 : f32 to vector<8x160xf32>
        %64 = arith.mulf %60, %63 : vector<8x160xf32>
        %65 = math.erf %64 : vector<8x160xf32>
        %cst_45 = arith.constant 1.000000e+00 : f32
        %66 = vector.broadcast %cst_45 : f32 to vector<8x160xf32>
        %67 = arith.addf %66, %65 : vector<8x160xf32>
        %68 = arith.mulf %62, %67 : vector<8x160xf32>
        %c0_46 = arith.constant 0 : index
        %c0_47 = arith.constant 0 : index
        %69 = vector.load %arg19[%c0_46, %c0_47] : memref<8x160xf32, #tpu.memory_space<vmem>>, vector<8x160xf32>
        tpu.vector_store %arg19[%c0_46, %c0_47], %68 {strides = array<i32>} : memref<8x160xf32, #tpu.memory_space<vmem>>, vector<8x160xf32>,
      } else {
      }
      %54 = arith.extui %2 : i1 to i32
      %c0_i32_37 = arith.constant 0 : i32
      %55 = arith.cmpi ne, %54, %c0_i32_37 : i32
      scf.if %55 {
        %c0_38 = arith.constant 0 : index
        %c0_39 = arith.constant 0 : index
        %56 = vector.load %arg10[%c0_38, %c0_39] : memref<64x80xf32, #tpu.memory_space<vmem>>, vector<64x80xf32>
        %cst_40 = arith.constant dense<0.000000e+00> : vector<8x80xf32>
        %57 = tpu.matmul %37, %56, %cst_40 {dimension_numbers = #tpu.dot_dimension_numbers<[1], [0], [0], [1], [0, 0, 1, 1], [], []>} : vector<8x64xf32>, vector<64x80xf32>, vector<8x80xf32> -> vector<8x80xf32>
        %c0_41 = arith.constant 0 : index
        %c0_42 = arith.constant 0 : index
        %58 = vector.load %arg11[%c0_41, %c0_42] : memref<1x80xf32, #tpu.memory_space<vmem>>, vector<1x80xf32>
        %59 = vector.broadcast %58 : vector<1x80xf32> to vector<8x80xf32>
        %60 = arith.addf %57, %59 : vector<8x80xf32>
        %c0_43 = arith.constant 0 : index
        %c0_44 = arith.constant 0 : index
        %61 = vector.load %arg20[%c0_43, %c0_44] : memref<8x80xf32, #tpu.memory_space<vmem>>, vector<8x80xf32>
        tpu.vector_store %arg20[%c0_43, %c0_44], %60 {strides = array<i32>} : memref<8x80xf32, #tpu.memory_space<vmem>>, vector<8x80xf32>,
      } else {
      }
    } else {
    }
    %c0_4 = arith.constant 0 : index
    %c0_5 = arith.constant 0 : index
    %12 = vector.load %arg4[%c0_4, %c0_5] : memref<8x1xi32, #tpu.memory_space<vmem>>, vector<8x1xi32>
    %cst = arith.constant 0.000000e+00 : f32
    %13 = vector.broadcast %cst : f32 to vector<8x256xf32>
    %c0_6 = arith.constant 0 : index
    %c0_7 = arith.constant 0 : index
    %14 = vector.load %arg22[%c0_6, %c0_7] : memref<8x256xf32, #tpu.memory_space<vmem>>, vector<8x256xf32>
    tpu.vector_store %arg22[%c0_6, %c0_7], %13 {strides = array<i32>} : memref<8x256xf32, #tpu.memory_space<vmem>>, vector<8x256xf32>,
    %15 = arith.extui %8 : i1 to i32
    %c0_i32_8 = arith.constant 0 : i32
    %16 = arith.cmpi ne, %15, %c0_i32_8 : i32
    scf.if %16 {
      %c0_24 = arith.constant 0 : index
      %c0_25 = arith.constant 0 : index
      %37 = vector.load %arg3[%c0_24, %c0_25] : memref<8x64xf32, #tpu.memory_space<vmem>>, vector<8x64xf32>
      %c0_26 = arith.constant 0 : index
      %c0_27 = arith.constant 0 : index
      %38 = vector.load %arg5[%c0_26, %c0_27] : memref<64x256xf32, #tpu.memory_space<vmem>>, vector<64x256xf32>
      %cst_28 = arith.constant dense<0.000000e+00> : vector<8x256xf32>
      %39 = tpu.matmul %37, %38, %cst_28 {dimension_numbers = #tpu.dot_dimension_numbers<[1], [0], [0], [1], [0, 0, 1, 1], [], []>} : vector<8x64xf32>, vector<64x256xf32>, vector<8x256xf32> -> vector<8x256xf32>
      %c0_29 = arith.constant 0 : index
      %c0_30 = arith.constant 0 : index
      %40 = vector.load %arg22[%c0_29, %c0_30] : memref<8x256xf32, #tpu.memory_space<vmem>>, vector<8x256xf32>
      %c2_i32 = arith.constant 2 : i32
      %41 = vector.broadcast %c2_i32 : i32 to vector<8x1xi32>
      %42 = arith.cmpi eq, %12, %41 : vector<8x1xi32>
      %cst_31 = arith.constant 0.000000e+00 : f32
      %43 = vector.shape_cast %42 : vector<8x1xi1> to vector<8x1xi1>
      %44 = vector.broadcast %43 : vector<8x1xi1> to vector<8x256xi1>
      %45 = vector.broadcast %cst_31 : f32 to vector<8x256xf32>
      %46 = arith.select %44, %39, %45 : vector<8x256xi1>, vector<8x256xf32>
      %47 = arith.addf %40, %46 : vector<8x256xf32>
      %c0_32 = arith.constant 0 : index
      %c0_33 = arith.constant 0 : index
      %48 = vector.load %arg22[%c0_32, %c0_33] : memref<8x256xf32, #tpu.memory_space<vmem>>, vector<8x256xf32>
      tpu.vector_store %arg22[%c0_32, %c0_33], %47 {strides = array<i32>} : memref<8x256xf32, #tpu.memory_space<vmem>>, vector<8x256xf32>,
    } else {
    }
    %17 = arith.extui %5 : i1 to i32
    %c0_i32_9 = arith.constant 0 : i32
    %18 = arith.cmpi ne, %17, %c0_i32_9 : i32
    scf.if %18 {
      %c0_24 = arith.constant 0 : index
      %c0_25 = arith.constant 0 : index
      %37 = vector.load %arg19[%c0_24, %c0_25] : memref<8x160xf32, #tpu.memory_space<vmem>>, vector<8x160xf32>
      %c0_26 = arith.constant 0 : index
      %c0_27 = arith.constant 0 : index
      %38 = vector.load %arg8[%c0_26, %c0_27] : memref<160x256xf32, #tpu.memory_space<vmem>>, vector<160x256xf32>
      %cst_28 = arith.constant dense<0.000000e+00> : vector<8x256xf32>
      %39 = tpu.matmul %37, %38, %cst_28 {dimension_numbers = #tpu.dot_dimension_numbers<[1], [0], [0], [1], [0, 0, 1, 1], [], []>} : vector<8x160xf32>, vector<160x256xf32>, vector<8x256xf32> -> vector<8x256xf32>
      %c0_29 = arith.constant 0 : index
      %c0_30 = arith.constant 0 : index
      %40 = vector.load %arg9[%c0_29, %c0_30] : memref<1x256xf32, #tpu.memory_space<vmem>>, vector<1x256xf32>
      %41 = vector.broadcast %40 : vector<1x256xf32> to vector<8x256xf32>
      %42 = arith.addf %39, %41 : vector<8x256xf32>
      %c0_31 = arith.constant 0 : index
      %c0_32 = arith.constant 0 : index
      %43 = vector.load %arg22[%c0_31, %c0_32] : memref<8x256xf32, #tpu.memory_space<vmem>>, vector<8x256xf32>
      %c1_i32 = arith.constant 1 : i32
      %44 = vector.broadcast %c1_i32 : i32 to vector<8x1xi32>
      %45 = arith.cmpi eq, %12, %44 : vector<8x1xi32>
      %cst_33 = arith.constant 0.000000e+00 : f32
      %46 = vector.shape_cast %45 : vector<8x1xi1> to vector<8x1xi1>
      %47 = vector.broadcast %46 : vector<8x1xi1> to vector<8x256xi1>
      %48 = vector.broadcast %cst_33 : f32 to vector<8x256xf32>
      %49 = arith.select %47, %42, %48 : vector<8x256xi1>, vector<8x256xf32>
      %50 = arith.addf %43, %49 : vector<8x256xf32>
      %c0_34 = arith.constant 0 : index
      %c0_35 = arith.constant 0 : index
      %51 = vector.load %arg22[%c0_34, %c0_35] : memref<8x256xf32, #tpu.memory_space<vmem>>, vector<8x256xf32>
      tpu.vector_store %arg22[%c0_34, %c0_35], %50 {strides = array<i32>} : memref<8x256xf32, #tpu.memory_space<vmem>>, vector<8x256xf32>,
    } else {
    }
    %19 = arith.extui %2 : i1 to i32
    %c0_i32_10 = arith.constant 0 : i32
    %20 = arith.cmpi ne, %19, %c0_i32_10 : i32
    scf.if %20 {
      %c0_24 = arith.constant 0 : index
      %c0_25 = arith.constant 0 : index
      %37 = vector.load %arg20[%c0_24, %c0_25] : memref<8x80xf32, #tpu.memory_space<vmem>>, vector<8x80xf32>
      %c0_26 = arith.constant 0 : index
      %c0_27 = arith.constant 0 : index
      %38 = vector.load %arg12[%c0_26, %c0_27] : memref<80x256xf32, #tpu.memory_space<vmem>>, vector<80x256xf32>
      %cst_28 = arith.constant dense<0.000000e+00> : vector<8x256xf32>
      %39 = tpu.matmul %37, %38, %cst_28 {dimension_numbers = #tpu.dot_dimension_numbers<[1], [0], [0], [1], [0, 0, 1, 1], [], []>} : vector<8x80xf32>, vector<80x256xf32>, vector<8x256xf32> -> vector<8x256xf32>
      %c0_29 = arith.constant 0 : index
      %c0_30 = arith.constant 0 : index
      %40 = vector.load %arg13[%c0_29, %c0_30] : memref<1x256xf32, #tpu.memory_space<vmem>>, vector<1x256xf32>
      %41 = vector.broadcast %40 : vector<1x256xf32> to vector<8x256xf32>
      %42 = arith.addf %39, %41 : vector<8x256xf32>
      %c0_31 = arith.constant 0 : index
      %c0_32 = arith.constant 0 : index
      %43 = vector.load %arg22[%c0_31, %c0_32] : memref<8x256xf32, #tpu.memory_space<vmem>>, vector<8x256xf32>
      %c0_i32_33 = arith.constant 0 : i32
      %44 = vector.broadcast %c0_i32_33 : i32 to vector<8x1xi32>
      %45 = arith.cmpi eq, %12, %44 : vector<8x1xi32>
      %cst_34 = arith.constant 0.000000e+00 : f32
      %46 = vector.shape_cast %45 : vector<8x1xi1> to vector<8x1xi1>
      %47 = vector.broadcast %46 : vector<8x1xi1> to vector<8x256xi1>
      %48 = vector.broadcast %cst_34 : f32 to vector<8x256xf32>
      %49 = arith.select %47, %42, %48 : vector<8x256xi1>, vector<8x256xf32>
      %50 = arith.addf %43, %49 : vector<8x256xf32>
      %c0_35 = arith.constant 0 : index
      %c0_36 = arith.constant 0 : index
      %51 = vector.load %arg22[%c0_35, %c0_36] : memref<8x256xf32, #tpu.memory_space<vmem>>, vector<8x256xf32>
      tpu.vector_store %arg22[%c0_35, %c0_36], %50 {strides = array<i32>} : memref<8x256xf32, #tpu.memory_space<vmem>>, vector<8x256xf32>,
    } else {
    }
    %c0_11 = arith.constant 0 : index
    %c0_12 = arith.constant 0 : index
    %21 = vector.load %arg21[%c0_11, %c0_12] : memref<8x64xf32, #tpu.memory_space<vmem>>, vector<8x64xf32>
    %c0_13 = arith.constant 0 : index
    %c0_14 = arith.constant 0 : index
    %22 = vector.load %arg16[%c0_13, %c0_14] : memref<64x256xf32, #tpu.memory_space<vmem>>, vector<64x256xf32>
    %cst_15 = arith.constant dense<0.000000e+00> : vector<8x256xf32>
    %23 = tpu.matmul %21, %22, %cst_15 {dimension_numbers = #tpu.dot_dimension_numbers<[1], [0], [0], [1], [0, 0, 1, 1], [], []>} : vector<8x64xf32>, vector<64x256xf32>, vector<8x256xf32> -> vector<8x256xf32>
    %c0_16 = arith.constant 0 : index
    %c0_17 = arith.constant 0 : index
    %24 = vector.load %arg17[%c0_16, %c0_17] : memref<1x256xf32, #tpu.memory_space<vmem>>, vector<1x256xf32>
    %25 = vector.broadcast %24 : vector<1x256xf32> to vector<8x256xf32>
    %26 = arith.addf %23, %25 : vector<8x256xf32>
    %27 = arith.negf %26 : vector<8x256xf32>
    %28 = math.exp %27 : vector<8x256xf32>
    %cst_18 = arith.constant 1.000000e+00 : f32
    %29 = vector.broadcast %cst_18 : f32 to vector<8x256xf32>
    %30 = arith.addf %29, %28 : vector<8x256xf32>
    %31 = arith.divf %29, %30 : vector<8x256xf32>
    %c0_19 = arith.constant 0 : index
    %c0_20 = arith.constant 0 : index
    %32 = vector.load %arg22[%c0_19, %c0_20] : memref<8x256xf32, #tpu.memory_space<vmem>>, vector<8x256xf32>
    %cst_21 = arith.constant 1.000000e+00 : f32
    %33 = vector.broadcast %cst_21 : f32 to vector<8x256xf32>
    %34 = arith.addf %33, %31 : vector<8x256xf32>
    %35 = arith.mulf %32, %34 : vector<8x256xf32>
    %c0_22 = arith.constant 0 : index
    %c0_23 = arith.constant 0 : index
    %36 = vector.load %arg18[%c0_22, %c0_23] : memref<8x256xf32, #tpu.memory_space<vmem>>, vector<8x256xf32>
    tpu.vector_store %arg18[%c0_22, %c0_23], %35 {strides = array<i32>} : memref<8x256xf32, #tpu.memory_space<vmem>>, vector<8x256xf32>,
    return
  }
  func.func @transform_0(%arg0: i32, %arg1: i32, %arg2: memref<2x3xi32, #tpu.memory_space<smem>>) -> (i32, i32) {
    %c0_i32 = arith.constant 0 : i32
    %c0_i32_0 = arith.constant 0 : i32
    return %arg0, %c0_i32 : i32, i32
  }
  func.func @transform_1(%arg0: i32, %arg1: i32, %arg2: memref<2x3xi32, #tpu.memory_space<smem>>) -> (i32, i32) {
    %c0_i32 = arith.constant 0 : i32
    %c0_i32_0 = arith.constant 0 : i32
    return %arg0, %c0_i32 : i32, i32
  }
  func.func @transform_2(%arg0: i32, %arg1: i32, %arg2: memref<2x3xi32, #tpu.memory_space<smem>>) -> (i32, i32) {
    %c0_i32 = arith.constant 0 : i32
    %c0_i32_0 = arith.constant 0 : i32
    return %c0_i32, %arg1 : i32, i32
  }
  func.func @transform_3(%arg0: i32, %arg1: i32, %arg2: memref<2x3xi32, #tpu.memory_space<smem>>) -> (i32, i32) {
    %c0_i32 = arith.constant 0 : i32
    %c0_i32_0 = arith.constant 0 : i32
    %c0_i32_1 = arith.constant 0 : i32
    return %c0_i32, %c0_i32_0 : i32, i32
  }
  func.func @transform_4(%arg0: i32, %arg1: i32, %arg2: memref<2x3xi32, #tpu.memory_space<smem>>) -> (i32, i32) {
    %c0_i32 = arith.constant 0 : i32
    %c0_i32_0 = arith.constant 0 : i32
    %c0_i32_1 = arith.constant 0 : i32
    return %c0_i32, %c0_i32_0 : i32, i32
  }
  func.func @transform_5(%arg0: i32, %arg1: i32, %arg2: memref<2x3xi32, #tpu.memory_space<smem>>) -> (i32, i32) {
    %c0_i32 = arith.constant 0 : i32
    %c0_i32_0 = arith.constant 0 : i32
    return %c0_i32, %arg1 : i32, i32
  }
  func.func @transform_6(%arg0: i32, %arg1: i32, %arg2: memref<2x3xi32, #tpu.memory_space<smem>>) -> (i32, i32) {
    %c0_i32 = arith.constant 0 : i32
    %c0_i32_0 = arith.constant 0 : i32
    return %c0_i32, %arg1 : i32, i32
  }
  func.func @transform_7(%arg0: i32, %arg1: i32, %arg2: memref<2x3xi32, #tpu.memory_space<smem>>) -> (i32, i32) {
    %c0_i32 = arith.constant 0 : i32
    %c0_i32_0 = arith.constant 0 : i32
    %c0_i32_1 = arith.constant 0 : i32
    return %c0_i32, %c0_i32_0 : i32, i32
  }
  func.func @transform_8(%arg0: i32, %arg1: i32, %arg2: memref<2x3xi32, #tpu.memory_space<smem>>) -> (i32, i32) {
    %c0_i32 = arith.constant 0 : i32
    %c0_i32_0 = arith.constant 0 : i32
    %c0_i32_1 = arith.constant 0 : i32
    return %c0_i32, %c0_i32_0 : i32, i32
  }
  func.func @transform_9(%arg0: i32, %arg1: i32, %arg2: memref<2x3xi32, #tpu.memory_space<smem>>) -> (i32, i32) {
    %c0_i32 = arith.constant 0 : i32
    %c0_i32_0 = arith.constant 0 : i32
    return %c0_i32, %arg1 : i32, i32
  }
  func.func @transform_10(%arg0: i32, %arg1: i32, %arg2: memref<2x3xi32, #tpu.memory_space<smem>>) -> (i32, i32) {
    %c0_i32 = arith.constant 0 : i32
    %c0_i32_0 = arith.constant 0 : i32
    return %c0_i32, %arg1 : i32, i32
  }
  func.func @transform_11(%arg0: i32, %arg1: i32, %arg2: memref<2x3xi32, #tpu.memory_space<smem>>) -> (i32, i32) {
    %c0_i32 = arith.constant 0 : i32
    %c0_i32_0 = arith.constant 0 : i32
    %c0_i32_1 = arith.constant 0 : i32
    return %c0_i32, %c0_i32_0 : i32, i32
  }
  func.func @transform_12(%arg0: i32, %arg1: i32, %arg2: memref<2x3xi32, #tpu.memory_space<smem>>) -> (i32, i32) {
    %c0_i32 = arith.constant 0 : i32
    %c0_i32_0 = arith.constant 0 : i32
    %c0_i32_1 = arith.constant 0 : i32
    return %c0_i32, %c0_i32_0 : i32, i32
  }
  func.func @transform_13(%arg0: i32, %arg1: i32, %arg2: memref<2x3xi32, #tpu.memory_space<smem>>) -> (i32, i32) {
    %c0_i32 = arith.constant 0 : i32
    %c0_i32_0 = arith.constant 0 : i32
    return %c0_i32, %arg1 : i32, i32
  }
  func.func @transform_14(%arg0: i32, %arg1: i32, %arg2: memref<2x3xi32, #tpu.memory_space<smem>>) -> (i32, i32) {
    %c0_i32 = arith.constant 0 : i32
    %c0_i32_0 = arith.constant 0 : i32
    return %c0_i32, %arg1 : i32, i32
  }
  func.func @transform_15(%arg0: i32, %arg1: i32, %arg2: memref<2x3xi32, #tpu.memory_space<smem>>) -> (i32, i32) {
    %c0_i32 = arith.constant 0 : i32
    return %arg0, %arg1 : i32, i32
  }
}

</mosaic_0001>

<bundles_post_ra>
// kernel: tpu_custom_call.1
= control target key start
LH: loop header
LB: loop body
LE: loop exit
PB: predicated region body
PF: predicated region fallthrough
CT: control target
= control target key end

     0   :  { %s3521_s0 = inlined_call_operand.hbm [shape: s32[2,3], index: 0, kind: input, shape index: {}]   ;;  %s3522_s1 = inlined_call_operand.vmem [shape: f32[16,64], index: 1, kind: input, shape index: {}]   ;;  %s3523_s2 = inlined_call_operand.vmem [shape: s32[16,1], index: 2, kind: input, shape index: {}]   ;;  %s3524_s3 = inlined_call_operand.hbm [shape: f32[64,768], index: 3, kind: input, shape index: {}]   ;;  %s3525_s4 = inlined_call_operand.hbm [shape: f32[64,160], index: 4, kind: input, shape index: {}]   ;;  %s3526_s5 = inlined_call_operand.hbm [shape: f32[1,160], index: 5, kind: input, shape index: {}]   ;;  %s3527_s6 = inlined_call_operand.hbm [shape: f32[160,768], index: 6, kind: input, shape index: {}]   ;;  %s3528_s7 = inlined_call_operand.vmem [shape: f32[1,768], index: 7, kind: input, shape index: {}]   ;;  %s3529_s8 = inlined_call_operand.hbm [shape: f32[64,80], index: 8, kind: input, shape index: {}]   ;;  %s3530_s9 = inlined_call_operand.vmem [shape: f32[1,80], index: 9, kind: input, shape index: {}]   ;;  %s3531_s10 = inlined_call_operand.hbm [shape: f32[80,768], index: 10, kind: input, shape index: {}]   ;;  %s3532_s11 = inlined_call_operand.vmem [shape: f32[1,768], index: 11, kind: input, shape index: {}]   ;;  %s3533_s12 = inlined_call_operand.hbm [shape: f32[64,64], index: 12, kind: input, shape index: {}]   ;;  %s3534_s13 = inlined_call_operand.vmem [shape: f32[1,64], index: 13, kind: input, shape index: {}]   ;;  %s3535_s14 = inlined_call_operand.hbm [shape: f32[64,768], index: 14, kind: input, shape index: {}]   ;;  %s3536_s15 = inlined_call_operand.vmem [shape: f32[1,768], index: 15, kind: input, shape index: {}]   ;;  %s3537_s16 = inlined_call_operand.hbm [shape: f32[16,768], index: 16, kind: output, shape index: {}]  }
   0x1   :  { %3569 = sst [smem:[#allocation49_spill]] %s3521_s0 }
   0x2   :  { %3570 = sst [smem:[#allocation50_spill]] %s3522_s1  ;;  %s3586_s23 = sld [smem:[#allocation49_spill]] }
   0x3   :  { %3571 = sst [smem:[#allocation51_spill]] %s3523_s2 }
   0x4   :  { %3572 = sst [smem:[#allocation52_spill]] %s3524_s3 }
   0x5   :  { %3573 = sst [smem:[#allocation53_spill]] %s3525_s4 }
   0x6   :  { %3574 = sst [smem:[#allocation54_spill]] %s3526_s5 }
   0x7   :  { %3575 = sst [smem:[#allocation55_spill]] %s3527_s6 }
   0x8   :  { %3576 = sst [smem:[#allocation56_spill]] %s3528_s7 }
   0x9   :  { %3577 = sst [smem:[#allocation57_spill]] %s3529_s8 }
   0xa   :  { %3578 = sst [smem:[#allocation58_spill]] %s3530_s9  ;;  %s2327_s9 = scalar_lea.hbm %s3586_s23, 32 }
   0xb   :  { %3579 = sst [smem:[#allocation59_spill]] %s3531_s10  ;;  %p2328_p0 = scmp.ne.s32.totalorder %s3586_s23, %s2327_s9 }
   0xc   :  { %3580 = sst [smem:[#allocation60_spill]] %s3532_s11  ;;  %p2331_p1 = scmp.lt.u32.totalorder %s2327_s9, %s3586_s23 }
   0xd   :  { %3581 = sst [smem:[#allocation61_spill]] %s3533_s12 }
   0xe   :  { %3582 = sst [smem:[#allocation62_spill]] %s3534_s13  ;;  %p2333_p2 = pnand %p2331_p1, %p2328_p0 }
   0xf   :  { %3583 = sst [smem:[#allocation63_spill]] %s3535_s14 }
  0x10   :  { %3584 = sst [smem:[#allocation64_spill]] %s3536_s15 }
  0x11   :  { %3585 = sst [smem:[#allocation65_spill]] %s3537_s16 }
  0x12   :  { %2336 = shalt.err (!%p2333_p2)  }
  0x13   :  { %s2719_s28 = smov [#allocation7]  }
  0x14   :  { %22 = dma.hbm_to_smem %s3586_s23, 32, %s2719_s28, [#allocation6] }
  0x15   :  { %2641 = dma.done.wait [#allocation6], 32 }
  0x16   :  { %2642 = vsyncadd [#allocation6], 4294967264 }
  0x17   :  { %24 = sfence }
  0x18   :  { %25 = vsyncpa [#allocation9], 0 }
  0x19   :  { %27 = vsyncpa [#allocation9 + $0x1], 0 }
  0x1a   :  { %28 = vsyncpa [#allocation12], 0 }
  0x1b   :  { %29 = vsyncpa [#allocation15], 0 }
  0x1c   :  { %31 = vsyncpa [#allocation15 + $0x1], 0 }
  0x1d   :  { %32 = vsyncpa [#allocation18], 0 }
  0x1e   :  { %34 = vsyncpa [#allocation18 + $0x1], 0 }
  0x1f   :  { %35 = vsyncpa [#allocation21], 0 }
  0x20   :  { %37 = vsyncpa [#allocation21 + $0x1], 0 }
  0x21   :  { %38 = vsyncpa [#allocation10], 0 }
  0x22   :  { %40 = vsyncpa [#allocation10 + $0x1], 0  ;;  %s2844_s9 = smov 0   ;;  %s2846_s0 = smov 0  }
  0x23   :  { %s2848_s17 = smov 0   ;;  %s2850_s18 = smov 0  }
  0x24   :  { %s2852_s19 = smov 0   ;;  %s2854_s20 = smov 0  }
  0x25   :  { %s2856_s21 = smov 0   ;;  %s2858_s22 = smov 0  }
  0x26   :  { %s2860_s23 = smov 0   ;;  %s2862_s24 = smov 0  }
  0x27   :  { %s2864_s25 = smov 0  }
  0x28 LB: > { %3587 = sst [smem:[#allocation32_spill]] %s2677_s9  ;;  %s2898_s26 = sadd.s32 4294967295, %s2717_s25   ;;  %s2717_s25 = sphi %s2864_s25, %s46_s25   ;;  %s2713_s24 = sphi %s2862_s24, %s3671_s24   ;;  %s2709_s23 = sphi %s2860_s23, %s3670_s23   ;;  %s2705_s22 = sphi %s2858_s22, %s3669_s22   ;;  %s2701_s21 = sphi %s2856_s21, %s3668_s21   ;;  %s2697_s20 = sphi %s2854_s20, %s3667_s20   ;;  %s2693_s19 = sphi %s2852_s19, %s3666_s19   ;;  %s2689_s18 = sphi %s2850_s18, %s3665_s18   ;;  %s2685_s17 = sphi %s2848_s17, %s3673_s17   ;;  %s2681_s0 = sphi %s2846_s0, %s3672_s0   ;;  %s2677_s9 = sphi %s2844_s9, %s3663_s9  }
  0x29   : > { %3588 = sst [smem:[#allocation33_spill]] %s2681_s0  ;;  %s1883_s27 = sadd.s32 4294967294, %s2717_s25  }
  0x2a   : > { %3589 = sst [smem:[#allocation34_spill]] %s2693_s19  ;;  %p124_p3 = scmp.ne.s32.totalorder %s2697_s20, %s2693_s19 }
  0x2b   : > { %3590 = sst [smem:[#allocation35_spill]] %s2697_s20  ;;  %p125_p4 = scmp.eq.s32.totalorder %s2717_s25, 0 }
  0x2c   : > { %3591 = sst [smem:[#allocation36_spill]] %s2701_s21  ;;  %p130_p5 = scmp.ne.s32.totalorder %s2693_s19, %s2689_s18 }
  0x2d   : > { %3592 = sst [smem:[#allocation37_spill]] %s2705_s22  ;;  %p3545_p6 = scmp.eq.s32.totalorder %s2898_s26, 0 }
  0x2e   : > { %3593 = sst [smem:[#allocation38_spill]] %s2709_s23  ;;  %p2906_p7 = por %p125_p4, %p124_p3 }
  0x2f   : > { %3594 = sst [smem:[#allocation39_spill]] %s2713_s24  ;;  %p2913_p8 = por %p3545_p6, %p130_p5 }
  0x30   : > { %3595 = sst [smem:[#allocation40_spill]] %s2898_s26  ;;  %p437_p9 = scmp.ne.s32.totalorder %s2685_s17, %s2681_s0 }
  0x31   : > { %s3596_s28 = scalar_select %p2906_p7, 1, 0 }
  0x32   : > { %s3597_s30 = scalar_select %p2913_p8, 1, 0 }
  0x33   : > { %p438_p10 = scmp.eq.s32.totalorder %s2898_s26, 5  ;;  %p443_p11 = scmp.ne.s32.totalorder %s2681_s0, %s2677_s9 }
  0x34   : > { %3598 = sst [smem:[#allocation41_spill]] %s3597_s30  ;;  %p444_p12 = scmp.eq.s32.totalorder %s1883_s27, 5 }
  0x35   : > { %p1884_p13 = scmp.ge.s32.totalorder %s2717_s25, 1  ;;  %p2923_p0 = por %p438_p10, %p437_p9 }
  0x36   : > { %p451_p1 = scmp.lt.s32.totalorder %s2717_s25, 7  ;;  %p2928_p2 = por %p444_p12, %p443_p11 }
  0x37   : > { %s3599_s16 = scalar_select %p2923_p0, 1, 0 }
  0x38   : > { %s3601_s18 = scalar_select %p2928_p2, 1, 0 }
  0x39   : > { %3600 = sst [smem:[#allocation42_spill]] %s3599_s16  ;;  %p2932_p3 = pnand %p1884_p13, %p451_p1 }
  0x3a   : > { %3602 = sst [smem:[#allocation43_spill]] %s3601_s18  ;;  %s2720_s13 = smov [#allocation11]  }
  0x3b   : > { %s3603_s29 = scalar_select %p2932_p3, 1, 0 }
  0x3c   : > { %s463_s15 = sshll.u32 %s2720_s13, 4  ;;  %p2159_p4 = pneg %p2932_p3  ;;  %s464_s15 = int_to_ptr.vmem [resolvable:$true] %s463_s15 }
  0x3d   : > { %3604 = sst [smem:[#allocation44_spill]] %s3603_s29  ;;  %s2721_s9 = smov [#allocation16]  }
  0x3e   : > { %p2940_p5 = pnand %p2159_p4, %p3545_p6  ;;  %s487_s16 = sshll.u32 %s2721_s9, 4  ;;  %s2944_s16 = int_to_ptr.vmem [resolvable:$true] %s487_s16 }
  0x3f   : > { %s3606_s4 = sld [smem:[#allocation53_spill]] }
  0x40   : > { %p2954_p10 = pneg %p2940_p5 }
  0x45   : > { %s2337_s7 = scalar_lea.hbm %s3606_s4, 2048 }
  0x46   : > { %p2338_p9 = scmp.ne.s32.totalorder %s3606_s4, %s2337_s7  ;;  %p2344_p13 = scmp.lt.u32.totalorder %s2337_s7, %s3606_s4 }
  0x48   : > { %p2340_p11 = pnand %p2954_p10, %p2338_p9 }
  0x4a   : > { %p2341_p12 = pneg %p2340_p11 }
  0x4c   : > { %p2346_p1 = pnand %p2344_p13, %p2341_p12 }
  0x4e   : > { %2349 = shalt.err (!%p2346_p1)
}
  0x4f   : > { %s2350_s11 = scalar_lea.vmem %s464_s15, 2048  ;;  %p2358_p0 = scmp.lt.s32.totalorder %s464_s15, %s464_s15 }
  0x50   : > { %p2351_p4 = scmp.ne.s32.totalorder %s464_s15, %s2350_s11  ;;  %p2359_p8 = scmp.lt.s32.totalorder %s2350_s11, %s2350_s11 }
  0x52   : > { %p2353_p6 = pnand %p2351_p4, %p2954_p10  ;;  %p2360_p3 = por %p2359_p8, %p2358_p0 }
  0x54   : > { %p2354_p2 = pneg %p2353_p6 }
  0x56   : > { %p2361_p7 = pnand %p2360_p3, %p2354_p2 }
  0x58   : > { %2364 = shalt.err (!%p2361_p7)
}
  0x59   : > { %s3556_s1 = smov 256   ;;  %s3558_s2 = smov 16  }
  0x5a   : > { %2162 = dma.hbm_to_vmem [thread:$0]  (!%p2940_p5), %s3606_s4, 2048, %s464_s15, [#allocation12], %s3556_s1, %s3556_s1, %s3558_s2  }
  0x5b   : > { %s3608_s8 = sld [smem:[#allocation57_spill]] }
  0x61   : > { %s2365_s0 = scalar_lea.hbm %s3608_s8, 1024 }
  0x62   : > { %p2366_p6 = scmp.ne.s32.totalorder %s3608_s8, %s2365_s0  ;;  %p2372_p0 = scmp.lt.u32.totalorder %s2365_s0, %s3608_s8 }
  0x64   : > { %p2368_p7 = pnand %p2366_p6, %p2954_p10 }
  0x66   : > { %p2369_p8 = pneg %p2368_p7 }
  0x68   : > { %p2374_p2 = pnand %p2372_p0, %p2369_p8 }
  0x6a   : > { %2377 = shalt.err (!%p2374_p2)
}
  0x6b   : > { %s2378_s15 = scalar_lea.vmem %s2944_s16, 1024  ;;  %p2386_p12 = scmp.lt.s32.totalorder %s2944_s16, %s2944_s16 }
  0x6c   : > { %p2379_p3 = scmp.ne.s32.totalorder %s2944_s16, %s2378_s15  ;;  %p2387_p13 = scmp.lt.s32.totalorder %s2378_s15, %s2378_s15 }
  0x6e   : > { %p2381_p9 = pnand %p2379_p3, %p2954_p10  ;;  %p2388_p1 = por %p2387_p13, %p2386_p12 }
  0x70   : > { %p2382_p11 = pneg %p2381_p9 }
  0x72   : > { %p2389_p4 = pnand %p2388_p1, %p2382_p11 }
  0x74   : > { %2392 = shalt.err (!%p2389_p4)
}
  0x75   : > { %s2724_s22 = smov 128   ;;  %s2725_s0 = smov 8  }
  0x76   : > { %2168 = dma.hbm_to_vmem [thread:$0]  (!%p2940_p5), %s3608_s8, 1024, %s2944_s16, [#allocation15], %s2724_s22, %s2724_s22, %s2725_s0  }
  0x77   : > { %s2726_s7 = smov [#allocation19]   ;;  %s2727_s18 = smov [#allocation13]  }
  0x78   : > { %s503_s21 = sshll.u32 %s2726_s7, 4  ;;  %s477_s9 = sshll.u32 %s2727_s18, 4  ;;  %s504_s21 = int_to_ptr.vmem [resolvable:$true] %s503_s21  ;;  %s478_s9 = int_to_ptr.vmem [resolvable:$true] %s477_s9 }
  0x79   : > { %s3609_s12 = sld [smem:[#allocation61_spill]] }
  0x7f   : > { %s2393_s1 = scalar_lea.hbm %s3609_s12, 1024 }
  0x80   : > { %p2394_p6 = scmp.ne.s32.totalorder %s3609_s12, %s2393_s1  ;;  %p2400_p0 = scmp.lt.u32.totalorder %s2393_s1, %s3609_s12 }
  0x82   : > { %p2396_p7 = pnand %p2394_p6, %p2954_p10 }
  0x84   : > { %p2397_p8 = pneg %p2396_p7 }
  0x86   : > { %p2402_p2 = pnand %p2400_p0, %p2397_p8 }
  0x88   : > { %2405 = shalt.err (!%p2402_p2)
}
  0x89   : > { %s2406_s16 = scalar_lea.vmem %s504_s21, 1024  ;;  %p2414_p12 = scmp.lt.s32.totalorder %s504_s21, %s504_s21 }
  0x8a   : > { %p2407_p3 = scmp.ne.s32.totalorder %s504_s21, %s2406_s16  ;;  %p2415_p13 = scmp.lt.s32.totalorder %s2406_s16, %s2406_s16 }
  0x8c   : > { %p2409_p9 = pnand %p2407_p3, %p2954_p10  ;;  %p2416_p1 = por %p2415_p13, %p2414_p12 }
  0x8e   : > { %p2410_p11 = pneg %p2409_p9 }
  0x90   : > { %p2417_p4 = pnand %p2416_p1, %p2410_p11 }
  0x92   : > { %2420 = shalt.err (!%p2417_p4)
}
  0x93   : > { %2171 = dma.hbm_to_vmem [thread:$0]  (!%p2940_p5), %s3609_s12, 1024, %s504_s21, [#allocation18], %s2724_s22, %s2724_s22, %s2725_s0  }
  0x94   : > { %s3610_s5 = sld [smem:[#allocation54_spill]] }
  0x9a   : > { %s2421_s1 = scalar_lea.hbm %s3610_s5, 32 }
  0x9b   : > { %p2422_p6 = scmp.ne.s32.totalorder %s3610_s5, %s2421_s1  ;;  %p2428_p0 = scmp.lt.u32.totalorder %s2421_s1, %s3610_s5 }
  0x9d   : > { %p2424_p7 = pnand %p2422_p6, %p2954_p10 }
  0x9f   : > { %p2425_p8 = pneg %p2424_p7 }
  0xa1   : > { %p2430_p2 = pnand %p2428_p0, %p2425_p8 }
  0xa3   : > { %2433 = shalt.err (!%p2430_p2)
}
  0xa4   : > { %s2434_s11 = scalar_lea.vmem %s478_s9, 32  ;;  %p2442_p12 = scmp.lt.s32.totalorder %s478_s9, %s478_s9 }
  0xa5   : > { %p2435_p3 = scmp.ne.s32.totalorder %s478_s9, %s2434_s11  ;;  %p2443_p13 = scmp.lt.s32.totalorder %s2434_s11, %s2434_s11 }
  0xa7   : > { %p2437_p9 = pnand %p2435_p3, %p2954_p10  ;;  %p2444_p1 = por %p2443_p13, %p2442_p12 }
  0xa9   : > { %p2438_p11 = pneg %p2437_p9 }
  0xab   : > { %p2445_p4 = pnand %p2444_p1, %p2438_p11 }
  0xad   : > { %2448 = shalt.err (!%p2445_p4)
}
  0xae   : > { %2165 = dma.hbm_to_vmem [thread:$0]  (!%p2940_p5), %s3610_s5, 32, %s478_s9, [#allocation12]  }
  0xaf   : > { %s55_s13 = sadd.s32 1, %s2709_s23  ;;  %s58_s21 = sadd.s32 1, %s2713_s24 }
  0xb0   : > { %p56_p10 = scmp.ge.s32.totalorder %s55_s13, 3  ;;  %s117_s15 = sadd.s32 1, %s2697_s20 }
  0xb1   : > { %p2193_p6 = scmp.lt.s32.totalorder %s2717_s25, 6  ;;  %s3042_s16 = sand.u32 1, %s2697_s20  }
  0xb2   : > { %s3675_s13 = smov (%p56_p10, %s55_s13), 0  ;;  %s3677_s21 = smov (!%p56_p10, %s58_s21), %s2713_s24 }
  0xb3   : > { %3611 = sst [smem:[#allocation45_spill]] %s3675_s13  ;;  %s114_s27 = ssub.s32 %s2709_s23, %s3675_s13 }
  0xb4   : > { %p60_p5 = scmp.ge.s32.totalorder %s3677_s21, 2  ;;  %p115_p7 = scmp.eq.s32.totalorder %s114_s27, 0 }
  0xb5   : > { %s3562_s9 = sshll.u32 %s3042_s16, 7  ;;  %s3053_s29 = sshll.u32 %s2709_s23, 8 }
  0xb6   : > { %s3679_s21 = smov (%p60_p5, %s3677_s21), 0  ;;  %s3614_s3 = sld [smem:[#allocation52_spill]] }
  0xb7   : > { %3612 = sst [smem:[#allocation46_spill]] %s3679_s21  ;;  %s422_s2 = ssub.s32 %s2713_s24, %s3679_s21 }
  0xb8   : > { %s3048_s4 = scalar_select %p115_p7, %s2697_s20, %s117_s15  }
  0xb9   : > { %s424_s19 = sor.u32 %s422_s2, %s114_s27  ;;  %s538_s7 = scalar_lea.vmem [#allocation8], %s3562_s9 }
  0xba   : > { %3613 = sst [smem:[#allocation47_spill]] %s3048_s4  ;;  %p425_p8 = scmp.eq.s32.totalorder %s424_s19, 0 }
  0xbb   : > { %s545_s18 = sshll.u32 %s538_s7, 4  ;;  %p3615_p0 = scmp.ne.s32.totalorder %s3596_s28, 0  ;;  %s3076_s18 = int_to_ptr.vmem [resolvable:$true] %s545_s18 }
  0xbc   : > { %s3059_s30 = scalar_lea.hbm %s3614_s3, %s3053_s29  ;;  %s3617_s22 = sadd.s32 1, %s2685_s17 }
  0xbd   : > { %p3067_p2 = pnand %p2193_p6, %p3615_p0  ;;  %s535_s27 = scalar_lea.sflag [#allocation9], %s3042_s16 }
  0xbe   : > { %s3074_s0 = scalar_select %p425_p8, %s2685_s17, %s3617_s22  }
  0xbf   : > { %s2449_s2 = scalar_lea.hbm %s3059_s30, 2048  ;;  %p3084_p9 = pneg %p3067_p2 }
  0xc0   : > { %3618 = sst [smem:[#allocation48_spill]] %s3074_s0  ;;  %p2450_p3 = scmp.ne.s32.totalorder %s3059_s30, %s2449_s2 }
  0xc1   : > { %s2454_s26 = scalar_lea.hbm %s3614_s3, 6144  ;;  %p2455_p13 = scmp.lt.u32.totalorder %s3059_s30, %s3614_s3 }
  0xc2   : > { %p2452_p11 = pnand %p3084_p9, %p2450_p3  ;;  %p2456_p1 = scmp.lt.u32.totalorder %s2454_s26, %s2449_s2 }
  0xc3   : > { %p2458_p10 = scmp.lt.u32.totalorder %s2449_s2, %s3059_s30 }
  0xc4   : > { %p2453_p12 = pneg %p2452_p11  ;;  %p2457_p4 = por %p2456_p1, %p2455_p13 }
  0xc6   : > { %p2459_p6 = por %p2458_p10, %p2457_p4 }
  0xc8   : > { %p2460_p5 = pnand %p2459_p6, %p2453_p12 }
  0xca   : > { %2463 = shalt.err (!%p2460_p5)
}
  0xcb   : > { %s2464_s9 = scalar_lea.vmem %s3076_s18, 2048  ;;  %s2728_s28 = smov [#allocation8]  }
  0xcc   : > { %p2465_p7 = scmp.ne.s32.totalorder %s3076_s18, %s2464_s9  ;;  %s2469_s1 = sshll.u32 %s2728_s28, 4  ;;  %s2470_s1 = int_to_ptr.vmem [resolvable:$false] %s2469_s1 }
  0xcd   : > { %s2471_s7 = scalar_lea.vmem %s2470_s1, 4096  ;;  %p2472_p3 = scmp.lt.s32.totalorder %s3076_s18, %s2470_s1 }
  0xce   : > { %p2467_p8 = pnand %p2465_p7, %p3084_p9  ;;  %p2473_p11 = scmp.lt.s32.totalorder %s2471_s7, %s2464_s9 }
  0xd0   : > { %p2468_p0 = pneg %p2467_p8  ;;  %p2474_p13 = por %p2473_p11, %p2472_p3 }
  0xd2   : > { %p2475_p1 = pnand %p2474_p13, %p2468_p0 }
  0xd4   : > { %2478 = shalt.err (!%p2475_p1)
}
  0xd5   : > { %s2729_s2 = smov 768   ;;  %s3620_s26 = smov 16  }
  0xd6   : > { %s3621_s22 = smov 256   ;;  %s2128_s9 = smul.u32 320, %s3042_s16 }
  0xd7   : > { %2175 = dma.hbm_to_vmem [thread:$0]  (!%p3067_p2), %s3059_s30, 2048, %s3076_s18, %s535_s27, %s2729_s2, %s3621_s22, %s3620_s26  }
  0xd8   : > { %s3622_s6 = sld [smem:[#allocation55_spill]]  ;;  %s559_s3 = scalar_lea.vmem [#allocation14], %s2128_s9 }
  0xd9   : > { %s566_s5 = sshll.u32 %s559_s3, 4  ;;  %s3623_s10 = sld [smem:[#allocation59_spill]]  ;;  %s3126_s5 = int_to_ptr.vmem [resolvable:$true] %s566_s5 }
  0xda   : > { %s3624_s30 = sand.u32 1, %s2717_s25  }
  0xdb   : > { %s3130_s18 = scalar_lea.sflag [#allocation15], %s3624_s30 }
  0xde   : > { %s3117_s7 = scalar_lea.hbm %s3622_s6, %s3053_s29  ;;  %s2484_s9 = scalar_lea.hbm %s3622_s6, 15360 }
  0xdf   : > { %s3124_s21 = scalar_lea.hbm %s3623_s10, %s3053_s29  ;;  %s2479_s27 = scalar_lea.hbm %s3117_s7, 5120 }
  0xe0   : > { %p2480_p12 = scmp.ne.s32.totalorder %s3117_s7, %s2479_s27  ;;  %p2485_p6 = scmp.lt.u32.totalorder %s3117_s7, %s3622_s6 }
  0xe1   : > { %p2486_p5 = scmp.lt.u32.totalorder %s2484_s9, %s2479_s27  ;;  %p2488_p8 = scmp.lt.u32.totalorder %s2479_s27, %s3117_s7 }
  0xe2   : > { %p2482_p4 = pnand %p2480_p12, %p3084_p9 }
  0xe3   : > { %p2487_p7 = por %p2486_p5, %p2485_p6 }
  0xe4   : > { %p2483_p10 = pneg %p2482_p4 }
  0xe5   : > { %p2489_p0 = por %p2488_p8, %p2487_p7 }
  0xe7   : > { %p2490_p3 = pnand %p2489_p0, %p2483_p10 }
  0xe9   : > { %2493 = shalt.err (!%p2490_p3)
}
  0xea   : > { %s2494_s8 = scalar_lea.vmem %s3126_s5, 5120  ;;  %s2730_s12 = smov [#allocation14]  }
  0xeb   : > { %p2495_p11 = scmp.ne.s32.totalorder %s3126_s5, %s2494_s8  ;;  %s2499_s30 = sshll.u32 %s2730_s12, 4  ;;  %s2500_s30 = int_to_ptr.vmem [resolvable:$false] %s2499_s30 }
  0xec   : > { %s2501_s15 = scalar_lea.vmem %s2500_s30, 10240  ;;  %p2502_p12 = scmp.lt.s32.totalorder %s3126_s5, %s2500_s30 }
  0xed   : > { %p2497_p13 = pnand %p2495_p11, %p3084_p9  ;;  %p2503_p4 = scmp.lt.s32.totalorder %s2501_s15, %s2494_s8 }
  0xef   : > { %p2498_p1 = pneg %p2497_p13  ;;  %p2504_p6 = por %p2503_p4, %p2502_p12 }
  0xf1   : > { %p2505_p5 = pnand %p2504_p6, %p2498_p1 }
  0xf3   : > { %2508 = shalt.err (!%p2505_p5)
}
  0xf4   : > { %2178 = dma.hbm_to_vmem [thread:$0]  (!%p3067_p2), %s3117_s7, 5120, %s3126_s5, %s3130_s18, %s2729_s2, %s3621_s22, %s3620_s26  }
  0xf5   : > { %s3625_s27 = smul.u32 160, %s3042_s16  ;;  %s3626_s9 = sand.u32 1, %s2717_s25  }
  0xf6   : > { %s3163_s3 = scalar_lea.sflag [#allocation18], %s3626_s9  ;;  %s2509_s8 = scalar_lea.hbm %s3124_s21, 2560 }
  0xf7   : > { %s588_s28 = scalar_lea.vmem [#allocation17], %s3625_s27  ;;  %p2510_p10 = scmp.ne.s32.totalorder %s3124_s21, %s2509_s8 }
  0xf8   : > { %s595_s1 = sshll.u32 %s588_s28, 4  ;;  %s2514_s15 = scalar_lea.hbm %s3623_s10, 7680  ;;  %s3159_s1 = int_to_ptr.vmem [resolvable:$true] %s595_s1 }
  0xf9   : > { %p2512_p7 = pnand %p2510_p10, %p3084_p9  ;;  %p2515_p0 = scmp.lt.u32.totalorder %s3124_s21, %s3623_s10 }
  0xfa   : > { %p2516_p3 = scmp.lt.u32.totalorder %s2514_s15, %s2509_s8  ;;  %p2518_p13 = scmp.lt.u32.totalorder %s2509_s8, %s3124_s21 }
  0xfb   : > { %p2513_p8 = pneg %p2512_p7 }
  0xfc   : > { %p2517_p11 = por %p2516_p3, %p2515_p0 }
  0xfe   : > { %p2519_p1 = por %p2518_p13, %p2517_p11 }
 0x100   : > { %p2520_p12 = pnand %p2519_p1, %p2513_p8 }
 0x102   : > { %2523 = shalt.err (!%p2520_p12)
}
 0x103   : > { %s2524_s5 = scalar_lea.vmem %s3159_s1, 2560  ;;  %s2731_s7 = smov [#allocation17]  }
 0x104   : > { %p2525_p4 = scmp.ne.s32.totalorder %s3159_s1, %s2524_s5  ;;  %s2529_s18 = sshll.u32 %s2731_s7, 4  ;;  %s2530_s18 = int_to_ptr.vmem [resolvable:$false] %s2529_s18 }
 0x105   : > { %s2531_s6 = scalar_lea.vmem %s2530_s18, 5120  ;;  %p2532_p10 = scmp.lt.s32.totalorder %s3159_s1, %s2530_s18 }
 0x106   : > { %p2527_p6 = pnand %p2525_p4, %p3084_p9  ;;  %p2533_p7 = scmp.lt.s32.totalorder %s2531_s6, %s2524_s5 }
 0x108   : > { %p2528_p5 = pneg %p2527_p6  ;;  %p2534_p0 = por %p2533_p7, %p2532_p10 }
 0x10a   : > { %p2535_p3 = pnand %p2534_p0, %p2528_p5 }
 0x10c   : > { %2538 = shalt.err (!%p2535_p3)
}
 0x10d   : > { %2181 = dma.hbm_to_vmem [thread:$0]  (!%p3067_p2), %s3124_s21, 2560, %s3159_s1, %s3163_s3, %s2729_s2, %s3621_s22, %s3620_s26  }
 0x10e   : > { %s3627_s14 = sld [smem:[#allocation63_spill]]  ;;  %s3628_s9 = sshll.u32 %s3042_s16, 7 }
 0x10f   : > { %s617_s8 = scalar_lea.vmem [#allocation20], %s3628_s9  ;;  %s614_s30 = scalar_lea.sflag [#allocation21], %s3042_s16 }
 0x110   : > { %s624_s12 = sshll.u32 %s617_s8, 4  ;;  %s3198_s12 = int_to_ptr.vmem [resolvable:$true] %s624_s12 }
 0x114   : > { %s3194_s28 = scalar_lea.hbm %s3627_s14, %s3053_s29  ;;  %s2544_s29 = scalar_lea.hbm %s3627_s14, 6144 }
 0x115   : > { %s2539_s15 = scalar_lea.hbm %s3194_s28, 2048  ;;  %p2545_p1 = scmp.lt.u32.totalorder %s3194_s28, %s3627_s14 }
 0x116   : > { %p2540_p8 = scmp.ne.s32.totalorder %s3194_s28, %s2539_s15  ;;  %p2546_p12 = scmp.lt.u32.totalorder %s2544_s29, %s2539_s15 }
 0x117   : > { %p2548_p6 = scmp.lt.u32.totalorder %s2539_s15, %s3194_s28 }
 0x118   : > { %p2542_p11 = pnand %p2540_p8, %p3084_p9  ;;  %p2547_p4 = por %p2546_p12, %p2545_p1 }
 0x11a   : > { %p2543_p13 = pneg %p2542_p11  ;;  %p2549_p5 = por %p2548_p6, %p2547_p4 }
 0x11c   : > { %p2550_p10 = pnand %p2549_p5, %p2543_p13 }
 0x11e   : > { %2553 = shalt.err (!%p2550_p10)
}
 0x11f   : > { %s2554_s7 = scalar_lea.vmem %s3198_s12, 2048  ;;  %s2732_s18 = smov [#allocation20]  }
 0x120   : > { %p2555_p7 = scmp.ne.s32.totalorder %s3198_s12, %s2554_s7  ;;  %s2559_s6 = sshll.u32 %s2732_s18, 4  ;;  %s2560_s6 = int_to_ptr.vmem [resolvable:$false] %s2559_s6 }
 0x121   : > { %s2561_s13 = scalar_lea.vmem %s2560_s6, 4096  ;;  %p2562_p8 = scmp.lt.s32.totalorder %s3198_s12, %s2560_s6 }
 0x122   : > { %p2557_p0 = pnand %p2555_p7, %p3084_p9  ;;  %p2563_p11 = scmp.lt.s32.totalorder %s2561_s13, %s2554_s7 }
 0x124   : > { %p2558_p3 = pneg %p2557_p0  ;;  %p2564_p1 = por %p2563_p11, %p2562_p8 }
 0x126   : > { %p2565_p12 = pnand %p2564_p1, %p2558_p3 }
 0x128   : > { %2568 = shalt.err (!%p2565_p12)
}
 0x129   : > { %2184 = dma.hbm_to_vmem [thread:$0]  (!%p3067_p2), %s3194_s28, 2048, %s3198_s12, %s614_s30, %s2729_s2, %s3621_s22, %s3620_s26  }
 0x12a   : > { %s3629_s19 = sld [smem:[#allocation44_spill]] }
 0x130   : > { %p3630_p9 = scmp.ne.s32.totalorder %s3629_s19, 0 }
 0x131   : > { %s3631_s27 = sld [smem:[#allocation34_spill]] (!%p3630_p9)  ;;  %s3632_s9 = sld [smem:[#allocation41_spill]] (!%p3630_p9) }
 0x132   : > { %644 = sbr.rel (%p3630_p9) target bundleno = 2073 (0x819), region = 80 }
 0x137   : > { %s646_s8 = sand.u32 (!%p3630_p9), 1, %s3631_s27   ;;  %p3633_p13 = scmp.ne.s32.totalorder (!%p3630_p9), %s3632_s9, 0 }
 0x138   : > { %s1901_s15 = sshll.u32 (!%p3630_p9), %s646_s8, 7  ;;  %s647_s21 = scalar_lea.sflag (!%p3630_p9), [#allocation9], %s646_s8 }
 0x139   : > { %s3230_s1 = scalar_lea.vmem [#allocation8], %s1901_s15 }
 0x13a   : > { %2644 = dma.done.wait (%p3633_p13), %s647_s21, 2048  }
 0x13b   : > { %2646 = vsyncadd (%p3633_p13), %s647_s21, 4294965248  ;;  %s3634_s11 = sld [smem:[#allocation40_spill]] }
 0x141   : > { %p3635_p4 = scmp.eq.s32.totalorder %s3634_s11, 0 }
 0x143   : > { %2648 = dma.done.wait (%p3635_p4), [#allocation12], 2080   ;;  %p3636_p2 = pmov %p3635_p4 }
 0x144   : > { %s663_s16 = sand.u32 1, %s3634_s11   ;;  %s2130_s2 = smul.u32 320, %s646_s8 }
 0x145   : > { %2650 = vsyncadd (%p3636_p2), [#allocation12], 4294965216  ;;  %s664_s26 = scalar_lea.sflag [#allocation15], %s663_s16 }
 0x146   : > { %s3241_s22 = scalar_lea.vmem [#allocation14], %s2130_s2 }
 0x147   : > { %2652 = dma.done.wait (%p3633_p13), %s664_s26, 5120  }
 0x148   : > { %2654 = vsyncadd (%p3633_p13), %s664_s26, 4294962176  ;;  %p3637_p6 = pmov %p3636_p2 }
 0x149   : > { %p3638_p5 = pmov %p3636_p2 }
 0x14a   : > { %2656 = dma.done.wait (%p3637_p6), [#allocation15], 1024  }
 0x14b   : > { %2658 = vsyncadd (%p3638_p5), [#allocation15], 4294966272  ;;  %s2131_s28 = smul.u32 160, %s646_s8  ;;  %s677_s12 = scalar_lea.sflag [#allocation18], %s663_s16 }
 0x14d   : > { %s3251_s30 = scalar_lea.vmem [#allocation17], %s2131_s28 }
 0x14e   : > { %2660 = dma.done.wait (%p3633_p13), %s677_s12, 2560  }
 0x14f   : > { %2662 = vsyncadd (%p3633_p13), %s677_s12, 4294964736  ;;  %p3639_p10 = pmov %p3636_p2 }
 0x150   : > { %p3640_p7 = pmov %p3636_p2 }
 0x151   : > { %2664 = dma.done.wait (%p3639_p10), [#allocation18], 1024  }
 0x152   : > { %2666 = vsyncadd (%p3640_p7), [#allocation18], 4294966272  ;;  %s690_s29 = scalar_lea.sflag [#allocation21], %s646_s8  ;;  %s3261_s3 = scalar_lea.vmem [#allocation20], %s1901_s15 }
 0x153   : > { %2668 = dma.done.wait (%p3633_p13), %s690_s29, 2048  }
 0x154   : > { %2670 = vsyncadd (%p3633_p13), %s690_s29, 4294965248  ;;  %s3641_s5 = sld [smem:[#allocation37_spill]]  ;;  %s3642_s7 = sld [smem:[#allocation33_spill]] }
 0x155   : > { %s3643_s18 = sld [smem:[#allocation36_spill]]  ;;  %s3644_s28 = sld [smem:[#allocation50_spill]] }
 0x156   : > { %s3646_s14 = sld [smem:[#allocation56_spill]]  ;;  %s3647_s4 = sld [smem:[#allocation60_spill]] }
 0x157   : > { %s3648_s20 = sld [smem:[#allocation64_spill]] }
 0x15a   : > { %s1913_s6 = sshll.u32 %s3641_s5, 7  ;;  %s3565_s13 = sand.u32 1, %s3642_s7  }
 0x15b   : > { %s3269_s19 = sld [smem:[#allocation7 + %s1913_s6]]  ;;  %s806_s27 = sadd.s32 1, %s1913_s6 }
 0x15c   : > { %s3271_s21 = sld [smem:[#allocation7 + %s806_s27]]  ;;  %s809_s8 = sadd.s32 2, %s1913_s6 }
 0x15d   : > { %s3273_s15 = sld [smem:[#allocation7 + %s809_s8]]  ;;  %s1907_s11 = sshll.u32 %s3565_s13, 4 }
 0x15e   : > { %p775_p0 = scmp.lt.s32.totalorder %s3641_s5, 1  ;;  %s3279_s9 = sshll.u32 %s3643_s18, 1 }
 0x15f   : > { %p786_p3 = scmp.lt.s32.totalorder %s3279_s9, 5  ;;  %s3645_s6 = sld [smem:[#allocation51_spill]] }
 0x160   : > { %s3681_s5 = smov (!%p775_p0, %s3641_s5), 1  ;;  %s3308_s29 = scalar_lea.vmem [#allocation22], %s1907_s11 }
 0x161   : > { %s1908_s16 = sshll.u32 %s3681_s5, 3  ;;  %p1914_p8 = scmp.ne.s32.totalorder %s3643_s18, 0 }
 0x162   : > { %s3286_s12 = scalar_lea.vmem %s3644_s28, %s1908_s16  ;;  %v817_v0 = vld [vmem:[#allocation19] sm:$0xff] (!%p1914_p8)  ;;  %v818_v1 = vld [vmem:[#allocation19 + $0x8] sm:$0xff] (!%p1914_p8)  ;;  %v819_v2 = vld [vmem:[#allocation19 + $0x10] sm:$0xff] (!%p1914_p8)  ;;  %v2733_v3 = vmov (!%p1914_p8), 0.0|0.0   ;;  %vm2734_vm0 = vmmov (!%p1914_p8), 0   ;;  %v2735_v6 = vmov (!%p1914_p8), 0.0  }
 0x163   : > { %s3294_s7 = scalar_select %p786_p3, %s3279_s9, 5 }
 0x164   : > { %815 = sbr.rel (%p1914_p8) target bundleno = 1052 (0x41c), region = 116  ;;  %1996 = vmatprep.subr.bf16.mxu0 (!%p1914_p8), %v2733_v3  ;;  %v1997_v4 = vpack.c.bf16 (!%p1914_p8), %v818_v1, %v817_v0  ;;  %v820_v5 = vld [vmem:[#allocation19 + $0x18] sm:$0xff] (!%p1914_p8)  ;;  %1974 = vmatprep.mubr.msk.f32.mxu0 (!%p1914_p8), %vm2734_vm0, %v2735_v6  ;;  %v821_v8 = vld [vmem:[#allocation19 + $0x20] sm:$0xff] (!%p1914_p8)  ;;  %v822_v9 = vld [vmem:[#allocation19 + $0x28] sm:$0xff] (!%p1914_p8)  ;;  %vm832_vm1 = vcmask (!%p1914_p8), 523264   ;;  %p1917_p11 = scmp.le.s32.totalorder (!%p1914_p8), %s3271_s21, 0 }
 0x165   : > { %s3291_s8 = scalar_lea.vmem %s3645_s6, %s1908_s16  ;;  %s788_s24 = scalar_lea.vmem %s3646_s14, %s3294_s7  ;;  %v2000_v7 = vpack.c.bf16 (!%p1914_p8), %v820_v5, %v819_v2  ;;  %v2003_v10 = vpack.c.bf16 (!%p1914_p8), %v822_v9, %v821_v8  ;;  %v823_v11 = vld [vmem:[#allocation19 + $0x30] sm:$0xff] (!%p1914_p8)  ;;  %v824_v12 = vld [vmem:[#allocation19 + $0x38] sm:$0xff] (!%p1914_p8) }
 0x166   : > { %s794_s2 = scalar_lea.vmem %s3647_s4, %s3294_s7  ;;  %s800_s0 = scalar_lea.vmem %s3648_s20, %s3294_s7  ;;  %1998 = vmatpush3.bf16.msra.mxu0 (!%p1914_p8), %v1997_v4  ;;  %v2006_v13 = vpack.c.bf16 (!%p1914_p8), %v824_v12, %v823_v11  ;;  %v3312_v14 = vld [vmem:[%s3286_s12] sm:$0xff] (!%p1914_p8) }
 0x167   : > { %1999 = vmatprep.subr.bf16.mxu0 (!%p1914_p8), %v2733_v3  ;;  %s3649_s20 = sld [smem:[#allocation62_spill]] (!%p1914_p8) }
 0x16a   : > { %2001 = vmatpush3.bf16.msra.mxu0 (!%p1914_p8), %v2000_v7 }
 0x16b   : > { %2002 = vmatprep.subr.bf16.mxu0 %v2733_v3  ;;  %v916_v24 = vld [vmem:[#allocation11 + $0x8] sm:$0xff] (!%p1917_p11)  ;;  %v918_v25 = vld [vmem:[#allocation11 + $0x18] sm:$0xff] (!%p1917_p11)  ;;  %v915_v26 = vld [vmem:[#allocation11] sm:$0xff] (!%p1917_p11)  ;;  %v2736_v31 = vmov (!%p1917_p11), 0.0   ;;  %v933_v49 = vlaneseq (!%p1917_p11)  ;;  %vm1025_vm2 = vcmask (!%p1917_p11), 261120  }
 0x16c   : > { %v2008_v27 = vpack.c.bf16 (!%p1917_p11), %v918_v25, %v916_v24  ;;  %v917_v28 = vld [vmem:[#allocation11 + $0x10] sm:$0xff] (!%p1917_p11)  ;;  %v920_v29 = vld [vmem:[#allocation11 + $0x28] sm:$0xff] (!%p1917_p11)  ;;  %v922_v30 = vld [vmem:[#allocation11 + $0x38] sm:$0xff] (!%p1917_p11) }
 0x16d   : > { %v1915_v15 = vld [vmem:[%s3649_s20] ss:$0 sm:$0xff]  ;;  %v2010_v32 = vpack.c.bf16 (!%p1917_p11), %v917_v28, %v915_v26  ;;  %v2012_v33 = vpack.c.bf16 (!%p1917_p11), %v922_v30, %v920_v29  ;;  %v919_v34 = vld [vmem:[#allocation11 + $0x20] sm:$0xff] (!%p1917_p11)  ;;  %v924_v36 = vld [vmem:[#allocation11 + $0x48] sm:$0xff] (!%p1917_p11)  ;;  %v934_v50 = vshrl.u32 (!%p1917_p11), %v933_v49, 7 }
 0x16e   : > { %2004 = vmatpush3.bf16.msra.mxu0 %v2003_v10  ;;  %v921_v35 = vld [vmem:[#allocation11 + $0x30] sm:$0xff] (!%p1917_p11)  ;;  %v926_v37 = vld [vmem:[#allocation11 + $0x58] sm:$0xff] (!%p1917_p11)  ;;  %v923_v40 = vld [vmem:[#allocation11 + $0x40] sm:$0xff] (!%p1917_p11) }
 0x16f   : > { %2005 = vmatprep.subr.bf16.mxu0 %v2733_v3  ;;  %v2014_v38 = vpack.c.bf16 (!%p1917_p11), %v921_v35, %v919_v34  ;;  %v2016_v39 = vpack.c.bf16 (!%p1917_p11), %v926_v37, %v924_v36  ;;  %v925_v41 = vld [vmem:[#allocation11 + $0x50] sm:$0xff] (!%p1917_p11)  ;;  %v928_v42 = vld [vmem:[#allocation11 + $0x68] sm:$0xff] (!%p1917_p11)  ;;  %v930_v43 = vld [vmem:[#allocation11 + $0x78] sm:$0xff] (!%p1917_p11)  ;;  %v935_v51 = vsub.s32 (!%p1917_p11), 0, %v934_v50  ;;  %v939_v53 = vsub.s32 (!%p1917_p11), 1, %v934_v50 }
 0x170   : > { %v2018_v44 = vpack.c.bf16 (!%p1917_p11), %v925_v41, %v923_v40  ;;  %v2020_v45 = vpack.c.bf16 (!%p1917_p11), %v930_v43, %v928_v42  ;;  %v927_v46 = vld [vmem:[#allocation11 + $0x60] sm:$0xff] (!%p1917_p11)  ;;  %v929_v47 = vld [vmem:[#allocation11 + $0x70] sm:$0xff] (!%p1917_p11) }
 0x171   : > { %v2022_v48 = vpack.c.bf16 (!%p1917_p11), %v929_v47, %v927_v46  ;;  %v931_v52 = vld [vmem:[#allocation13] sm:$0x3] (!%p1917_p11) }
 0x172   : > { %2007 = vmatpush3.bf16.msra.mxu0 %v2006_v13  ;;  %v936_v54 = vrot.slane (!%p1917_p11), %v931_v52, %v935_v51  ;;  %v940_v55 = vrot.slane (!%p1917_p11), %v931_v52, %v939_v53 }
 0x173   : > { %2009 = vmatprep.subr.bf16.mxu0 (!%p1917_p11), %v2008_v27 }
 0x175   : > { %1975 = vmatmul.mubr.msk.f32.vlgmr.msra.gmra.mrb[0].mxu0 %vm832_vm1, %v3312_v14 }
 0x176   : > { %1007 = vmatprep.mubr.f32.mxu0 (!%p1917_p11), %v2736_v31  ;;  %2011 = vmatpush1.bf16.msra.mxu0 (!%p1917_p11), %v2010_v32 }
 0x177   : > { %2013 = vmatprep.subr.bf16.mxu0 (!%p1917_p11), %v2012_v33 }
 0x17a   : > { %2015 = vmatpush1.bf16.msra.mxu0 (!%p1917_p11), %v2014_v38 }
 0x17b   : > { %2017 = vmatprep.subr.bf16.mxu0 (!%p1917_p11), %v2016_v39 }
 0x17e   : > { %2019 = vmatpush1.bf16.msra.mxu0 (!%p1917_p11), %v2018_v44 }
 0x17f   : > { %2021 = vmatprep.subr.bf16.mxu0 (!%p1917_p11), %v2020_v45 }
 0x182   : > { %2023 = vmatpush1.bf16.msra.mxu0 (!%p1917_p11), %v2022_v48 }
 0x248   : > { %v902_v16 = vpop.f32.mrb[0].mxu0 }
 0x249   : > { %v903_v17 = vadd.f32 %v1915_v15, %v902_v16  ;;  %v1976_v18 = vpop.f32.mrb[1].mxu0  ;;  %1918 = vmatmul.mubr.msk.f32.vlgmr.msra.gmra.mrb[0].mxu0 (!%p1917_p11), %vm832_vm1, %v3312_v14 }
 0x24b   : > { %v907_v19 = vmul.f32 0.70710677, %v903_v17  ;;  %v906_v21 = vmul.f32 0.5, %v903_v17 }
 0x24d   : > { %2310 = verf.f32 %v907_v19 }
 0x256   : > { %914 = sbr.rel (%p1917_p11) target bundleno = 818 (0x332), region = 120 }
 0x257   : > { %v2311_v20 = vpop.eup %2310 }
 0x258   : > { %v909_v22 = vadd.f32 1.0, %v2311_v20 }
 0x25a   : > { %v910_v23 = vmul.f32 %v909_v22, %v906_v21 }
 0x25c   : > { %911 = vst.msk [vmem:[#allocation4] sm:$0xff] %vm832_vm1, %v910_v23 }
 0x31c   : > { %v1009_v56 = vpop.f32.mrb[0].mxu0 }
 0x31d   : > { %v1010_v57 = vadd.f32 %v1009_v56, %v936_v54  ;;  %v1011_v58 = vpop.f32.mrb[1].mxu0 }
 0x31e   : > { %v1012_v59 = vadd.f32 %v1011_v58, %v940_v55 }
 0x31f   : > { %v1016_v60 = vmul.f32 0.70710677, %v1010_v57  ;;  %v1014_v0 = vmul.f32 0.5, %v1010_v57 }
 0x320   : > { %v1017_v61 = vmul.f32 0.70710677, %v1012_v59  ;;  %v1015_v2 = vmul.f32 0.5, %v1012_v59 }
 0x321   : > { %2312 = verf.f32 %v1016_v60 }
 0x322   : > { %2314 = verf.f32 %v1017_v61 }
 0x32b   : > { %v2313_v62 = vpop.eup %2312 }
 0x32c   : > { %v2315_v63 = vpop.eup %2314  ;;  %v1020_v1 = vadd.f32 1.0, %v2313_v62 }
 0x32d   : > { %v1021_v3 = vadd.f32 1.0, %v2315_v63 }
 0x32e   : > { %v1022_v4 = vmul.f32 %v1020_v1, %v1014_v0 }
 0x32f   : > { %v1023_v5 = vmul.f32 %v1021_v3, %v1015_v2 }
 0x330   : > { %1024 = vst [vmem:[#allocation2] sm:$0xff] %v1022_v4 }
 0x331   : > { %1026 = vst.msk [vmem:[#allocation2 + $0x8] sm:$0xff] %vm1025_vm2, %v1023_v5 }
 0x332 PF: > { %p1919_p1 = scmp.le.s32.totalorder %s3269_s19, 0 }
 0x333   : > { %v1030_v6 = vld [vmem:[#allocation16] sm:$0xff] (!%p1919_p1)  ;;  %v1031_v7 = vld [vmem:[#allocation16 + $0x8] sm:$0xff] (!%p1919_p1)  ;;  %v1032_v8 = vld [vmem:[#allocation16 + $0x10] sm:$0xff] (!%p1919_p1)  ;;  %v2737_v9 = vmov (!%p1919_p1), 0.0|0.0   ;;  %vm2738_vm3 = vmmov (!%p1919_p1), 0   ;;  %v2739_v12 = vmov (!%p1919_p1), 0.0  }
 0x334   : > { %1029 = sbr.rel (%p1919_p1) target bundleno = 1052 (0x41c), region = 124  ;;  %2024 = vmatprep.subr.bf16.mxu0 (!%p1919_p1), %v2737_v9  ;;  %v2025_v10 = vpack.c.bf16 (!%p1919_p1), %v1031_v7, %v1030_v6  ;;  %v1033_v11 = vld [vmem:[#allocation16 + $0x18] sm:$0xff] (!%p1919_p1)  ;;  %1993 = vmatprep.mubr.msk.f32.mxu0 (!%p1919_p1), %vm2738_vm3, %v2739_v12  ;;  %v1034_v15 = vld [vmem:[#allocation16 + $0x20] sm:$0xff] (!%p1919_p1)  ;;  %v1035_v16 = vld [vmem:[#allocation16 + $0x28] sm:$0xff] (!%p1919_p1)  ;;  %s3650_s18 = sld [smem:[#allocation58_spill]] (!%p1919_p1)  ;;  %vm1115_vm4 = vcmask (!%p1919_p1), 654336  }
 0x335   : > { %v2028_v13 = vpack.c.bf16 (!%p1919_p1), %v1033_v11, %v1032_v8  ;;  %v2031_v17 = vpack.c.bf16 (!%p1919_p1), %v1035_v16, %v1034_v15  ;;  %v1036_v18 = vld [vmem:[#allocation16 + $0x30] sm:$0xff] (!%p1919_p1)  ;;  %v1037_v19 = vld [vmem:[#allocation16 + $0x38] sm:$0xff] (!%p1919_p1) }
 0x336   : > { %2026 = vmatpush3.bf16.msra.mxu0 (!%p1919_p1), %v2025_v10  ;;  %v2034_v20 = vpack.c.bf16 (!%p1919_p1), %v1037_v19, %v1036_v18 }
 0x337   : > { %2027 = vmatprep.subr.bf16.mxu0 (!%p1919_p1), %v2737_v9 }
 0x33a   : > { %2029 = vmatpush3.bf16.msra.mxu0 (!%p1919_p1), %v2028_v13  ;;  %v1920_v21 = vld [vmem:[%s3650_s18] ss:$0 sm:$0xff] (!%p1919_p1) }
 0x33b   : > { %2030 = vmatprep.subr.bf16.mxu0 %v2737_v9 }
 0x33e   : > { %2032 = vmatpush3.bf16.msra.mxu0 %v2031_v17 }
 0x33f   : > { %2033 = vmatprep.subr.bf16.mxu0 %v2737_v9 }
 0x342   : > { %2035 = vmatpush3.bf16.msra.mxu0 %v2034_v20 }
 0x345   : > { %1994 = vmatmul.mubr.msk.f32.vlgmr.msra.gmra.mrb[0].mxu0 %vm832_vm1, %v3312_v14 }
 0x418   : > { %v1111_v22 = vpop.f32.mrb[0].mxu0 }
 0x419   : > { %v1112_v23 = vadd.f32 %v1920_v21, %v1111_v22  ;;  %v1995_v24 = vpop.f32.mrb[1].mxu0 }
 0x41b   : > { %1116 = vst.msk [vmem:[#allocation3] sm:$0xff] %vm1115_vm4, %v1112_v23 }
 0x41c PF: > { %v3330_v25 = vld [vmem:[%s3291_s8] sm:$0xff]  ;;  %v2740_v26 = vmov 0.0   ;;  %p1922_p12 = scmp.le.s32.totalorder %s3273_s15, 0 }
 0x41d   : > { %1118 = vst [vmem:[#allocation5] sm:$0xff] %v2740_v26  ;;  %1119 = vst [vmem:[#allocation5 + $0x8] sm:$0xff] %v2740_v26  ;;  %v1125_v14 = vld [vmem:[%s3230_s1 + $0x8] sm:$0xff] (!%p1922_p12)  ;;  %v1127_v27 = vld [vmem:[%s3230_s1 + $0x18] sm:$0xff] (!%p1922_p12)  ;;  %v2741_v33 = vmov (!%p1922_p12), 0.0   ;;  %v2742_v34 = vmov (!%p1922_p12), 0  }
 0x41e   : > { %1122 = sbr.rel (%p1922_p12) target bundleno = 1289 (0x509), region = 128  ;;  %v1124_v28 = vld [vmem:[%s3230_s1] sm:$0xff] (!%p1922_p12)  ;;  %v2036_v29 = vpack.c.bf16 (!%p1922_p12), %v1127_v27, %v1125_v14  ;;  %v1126_v30 = vld [vmem:[%s3230_s1 + $0x10] sm:$0xff] (!%p1922_p12)  ;;  %v1129_v31 = vld [vmem:[%s3230_s1 + $0x28] sm:$0xff] (!%p1922_p12)  ;;  %1208 = vmatprep.mubr.f32.mxu0 (!%p1922_p12), %v2741_v33  ;;  %2316 = vset.pattern.permute.xlu0 (!%p1922_p12), %v2742_v34  ;;  %vm1217_vm5 = vcmp.eq.s32.totalorder (!%p1922_p12), %v3330_v25, 2  ;;  %vm1140_vm6 = vcmask (!%p1922_p12), 523264  }
 0x41f   : > { %v1131_v32 = vld [vmem:[%s3230_s1 + $0x38] sm:$0xff] (!%p1922_p12)  ;;  %v2038_v35 = vpack.c.bf16 (!%p1922_p12), %v1126_v30, %v1124_v28  ;;  %v1128_v37 = vld [vmem:[%s3230_s1 + $0x20] sm:$0xff] (!%p1922_p12)  ;;  %v1130_v38 = vld [vmem:[%s3230_s1 + $0x30] sm:$0xff] (!%p1922_p12)  ;;  %v1218_v40 = vsel (!%p1922_p12), %vm1217_vm5, 1, %v2742_v34 }
 0x420   : > { %v2040_v36 = vpack.c.bf16 (!%p1922_p12), %v1131_v32, %v1129_v31  ;;  %v1133_v39 = vld [vmem:[%s3230_s1 + $0x48] sm:$0xff] (!%p1922_p12)  ;;  %2037 = vmatprep.subr.bf16.mxu0 (!%p1922_p12), %v2036_v29  ;;  %v1135_v41 = vld [vmem:[%s3230_s1 + $0x58] sm:$0xff] (!%p1922_p12)  ;;  %1220 = vperm.xlu0 (!%p1922_p12), %2316, %v1218_v40   ;;  %v2042_v42 = vpack.c.bf16 (!%p1922_p12), %v1130_v38, %v1128_v37  ;;  %v1132_v44 = vld [vmem:[%s3230_s1 + $0x40] sm:$0xff] (!%p1922_p12) }
 0x421   : > { %2039 = vmatpush1.bf16.msra.mxu0 (!%p1922_p12), %v2038_v35  ;;  %v2044_v43 = vpack.c.bf16 (!%p1922_p12), %v1135_v41, %v1133_v39  ;;  %v1134_v45 = vld [vmem:[%s3230_s1 + $0x50] sm:$0xff] (!%p1922_p12)  ;;  %v1137_v46 = vld [vmem:[%s3230_s1 + $0x68] sm:$0xff] (!%p1922_p12)  ;;  %v1139_v47 = vld [vmem:[%s3230_s1 + $0x78] sm:$0xff] (!%p1922_p12) }
 0x422   : > { %2041 = vmatprep.subr.bf16.mxu0 (!%p1922_p12), %v2040_v36  ;;  %v2046_v48 = vpack.c.bf16 (!%p1922_p12), %v1134_v45, %v1132_v44  ;;  %v2048_v49 = vpack.c.bf16 (!%p1922_p12), %v1139_v47, %v1137_v46  ;;  %v1136_v50 = vld [vmem:[%s3230_s1 + $0x60] sm:$0xff] (!%p1922_p12)  ;;  %v1138_v51 = vld [vmem:[%s3230_s1 + $0x70] sm:$0xff] (!%p1922_p12) }
 0x423   : > { %v2050_v52 = vpack.c.bf16 (!%p1922_p12), %v1138_v51, %v1136_v50  ;;  %v1123_v53 = vld [vmem:[%s3286_s12] sm:$0xff] (!%p1922_p12) }
 0x424   : > { %v1215_v55 = vld [vmem:[#allocation5] sm:$0xff] (!%p1922_p12)  ;;  %v1216_v57 = vld [vmem:[#allocation5 + $0x8] sm:$0xff] (!%p1922_p12) }
 0x425   : > { %2043 = vmatpush1.bf16.msra.mxu0 %v2042_v42 }
 0x426   : > { %2045 = vmatprep.subr.bf16.mxu0 %v2044_v43 }
 0x429   : > { %2047 = vmatpush1.bf16.msra.mxu0 %v2046_v48 }
 0x42a   : > { %2049 = vmatprep.subr.bf16.mxu0 %v2048_v49 }
 0x42d   : > { %2051 = vmatpush1.bf16.msra.mxu0 %v2050_v52 }
 0x430   : > { %1923 = vmatmul.mubr.msk.f32.vlgmr.msra.gmra.mrb[0].mxu0 %vm1140_vm6, %v1123_v53 }
 0x49f   : > { %v1221_v54 = vpop.permute.xlu0 %1220 }
 0x4a0   : > { %vm1222_vm7 = vcmp.eq.s32.totalorder %v1221_v54, 1 }
 0x503   : > { %v1210_v56 = vpop.f32.mrb[0].mxu0 }
 0x504   : > { %v1223_v58 = vsel %vm1222_vm7, %v1210_v56, 0.0  ;;  %v1212_v59 = vpop.f32.mrb[1].mxu0 }
 0x505   : > { %v1225_v60 = vadd.f32 %v1223_v58, %v1215_v55  ;;  %v1224_v61 = vsel %vm1222_vm7, %v1212_v59, 0.0 }
 0x506   : > { %v1226_v62 = vadd.f32 %v1224_v61, %v1216_v57 }
 0x507   : > { %1227 = vst [vmem:[#allocation5] sm:$0xff] %v1225_v60 }
 0x508   : > { %1228 = vst [vmem:[#allocation5 + $0x8] sm:$0xff] %v1226_v62 }
 0x509 PF: > { %p1924_p9 = scmp.le.s32.totalorder %s3271_s21, 0 }
 0x50a   : > { %v1235_v63 = vld [vmem:[%s3241_s22 + $0x8] sm:$0xff] (!%p1924_p9)  ;;  %v1237_v0 = vld [vmem:[%s3241_s22 + $0x18] sm:$0xff] (!%p1924_p9)  ;;  %v1234_v1 = vld [vmem:[%s3241_s22] sm:$0xff] (!%p1924_p9)  ;;  %vm1363_vm8 = vcmp.eq.s32.totalorder (!%p1924_p9), %v3330_v25, 1  ;;  %v2743_v6 = vmov (!%p1924_p9), 0   ;;  %vm1286_vm9 = vcmask (!%p1924_p9), 261120  }
 0x50b   : > { %1231 = sbr.rel (%p1924_p9) target bundleno = 1552 (0x610), region = 132  ;;  %v2052_v2 = vpack.c.bf16 (!%p1924_p9), %v1237_v0, %v1235_v63  ;;  %v1236_v3 = vld [vmem:[%s3241_s22 + $0x10] sm:$0xff] (!%p1924_p9)  ;;  %v1239_v4 = vld [vmem:[%s3241_s22 + $0x28] sm:$0xff] (!%p1924_p9)  ;;  %v1241_v5 = vld [vmem:[%s3241_s22 + $0x38] sm:$0xff] (!%p1924_p9)  ;;  %2317 = vset.pattern.permute.xlu0 (!%p1924_p9), %v2743_v6  ;;  %v1364_v7 = vsel (!%p1924_p9), %vm1363_vm8, 1, %v2743_v6 }
 0x50c   : > { %v2054_v8 = vpack.c.bf16 (!%p1924_p9), %v1236_v3, %v1234_v1  ;;  %v2056_v9 = vpack.c.bf16 (!%p1924_p9), %v1241_v5, %v1239_v4  ;;  %v1238_v10 = vld [vmem:[%s3241_s22 + $0x20] sm:$0xff] (!%p1924_p9)  ;;  %v1240_v11 = vld [vmem:[%s3241_s22 + $0x30] sm:$0xff] (!%p1924_p9)  ;;  %v1243_v12 = vld [vmem:[%s3241_s22 + $0x48] sm:$0xff] (!%p1924_p9)  ;;  %1366 = vperm.xlu0 (!%p1924_p9), %2317, %v1364_v7   ;;  %v1276_v1 = vlaneseq (!%p1924_p9) }
 0x50d   : > { %2053 = vmatprep.subr.bf16.mxu0 (!%p1924_p9), %v2052_v2  ;;  %v1245_v13 = vld [vmem:[%s3241_s22 + $0x58] sm:$0xff] (!%p1924_p9)  ;;  %v2058_v15 = vpack.c.bf16 (!%p1924_p9), %v1240_v11, %v1238_v10  ;;  %v1242_v17 = vld [vmem:[%s3241_s22 + $0x40] sm:$0xff] (!%p1924_p9)  ;;  %v1244_v18 = vld [vmem:[%s3241_s22 + $0x50] sm:$0xff] (!%p1924_p9) }
 0x50e   : > { %2055 = vmatpush1.bf16.msra.mxu0 (!%p1924_p9), %v2054_v8  ;;  %v2060_v16 = vpack.c.bf16 (!%p1924_p9), %v1245_v13, %v1243_v12  ;;  %v1247_v19 = vld [vmem:[%s3241_s22 + $0x68] sm:$0xff] (!%p1924_p9)  ;;  %v1249_v20 = vld [vmem:[%s3241_s22 + $0x78] sm:$0xff] (!%p1924_p9)  ;;  %v2062_v21 = vpack.c.bf16 (!%p1924_p9), %v1244_v18, %v1242_v17  ;;  %v1246_v23 = vld [vmem:[%s3241_s22 + $0x60] sm:$0xff] (!%p1924_p9)  ;;  %v1277_v2 = vshrl.u32 (!%p1924_p9), %v1276_v1, 7 }
 0x50f   : > { %2057 = vmatprep.subr.bf16.mxu0 (!%p1924_p9), %v2056_v9  ;;  %v2064_v22 = vpack.c.bf16 (!%p1924_p9), %v1249_v20, %v1247_v19  ;;  %v1248_v24 = vld [vmem:[%s3241_s22 + $0x70] sm:$0xff] (!%p1924_p9)  ;;  %v1251_v14 = vld [vmem:[%s3241_s22 + $0x88] sm:$0xff] (!%p1924_p9)  ;;  %v1253_v27 = vld [vmem:[%s3241_s22 + $0x98] sm:$0xff] (!%p1924_p9) }
 0x510   : > { %v2066_v28 = vpack.c.bf16 (!%p1924_p9), %v1248_v24, %v1246_v23  ;;  %v2068_v29 = vpack.c.bf16 (!%p1924_p9), %v1253_v27, %v1251_v14  ;;  %v1250_v30 = vld [vmem:[%s3241_s22 + $0x80] sm:$0xff] (!%p1924_p9)  ;;  %v1252_v31 = vld [vmem:[%s3241_s22 + $0x90] sm:$0xff] (!%p1924_p9)  ;;  %v1255_v33 = vld [vmem:[%s3241_s22 + $0xa8] sm:$0xff] (!%p1924_p9)  ;;  %v1278_v3 = vsub.s32 (!%p1924_p9), 0, %v1277_v2  ;;  %v1282_v5 = vsub.s32 (!%p1924_p9), 1, %v1277_v2 }
 0x511   : > { %v1233_v32 = vld [vmem:[#allocation2 + $0x8] sm:$0xff] (!%p1924_p9)  ;;  %v2070_v35 = vpack.c.bf16 (!%p1924_p9), %v1252_v31, %v1250_v30  ;;  %v1254_v37 = vld [vmem:[%s3241_s22 + $0xa0] sm:$0xff] (!%p1924_p9)  ;;  %v1259_v39 = vld [vmem:[%s3241_s22 + $0xc8] sm:$0xff] (!%p1924_p9) }
 0x512   : > { %2059 = vmatpush1.bf16.msra.mxu0 %v2058_v15  ;;  %v1257_v34 = vld [vmem:[%s3241_s22 + $0xb8] sm:$0xff]  ;;  %1925 = vmatprep.mubr.msk.f32.mxu0 %vm1286_vm9, %v1233_v32  ;;  %v1256_v38 = vld [vmem:[%s3241_s22 + $0xb0] sm:$0xff]  ;;  %v1258_v43 = vld [vmem:[%s3241_s22 + $0xc0] sm:$0xff] }
 0x513   : > { %2061 = vmatprep.subr.bf16.mxu0 %v2060_v16  ;;  %v2072_v36 = vpack.c.bf16 %v1257_v34, %v1255_v33  ;;  %v1261_v40 = vld [vmem:[%s3241_s22 + $0xd8] sm:$0xff]  ;;  %v2074_v41 = vpack.c.bf16 %v1256_v38, %v1254_v37  ;;  %v1260_v44 = vld [vmem:[%s3241_s22 + $0xd0] sm:$0xff]  ;;  %v1263_v45 = vld [vmem:[%s3241_s22 + $0xe8] sm:$0xff] }
 0x514   : > { %v2076_v42 = vpack.c.bf16 %v1261_v40, %v1259_v39  ;;  %v1265_v46 = vld [vmem:[%s3241_s22 + $0xf8] sm:$0xff]  ;;  %v2078_v47 = vpack.c.bf16 %v1260_v44, %v1258_v43  ;;  %v1262_v49 = vld [vmem:[%s3241_s22 + $0xe0] sm:$0xff]  ;;  %v1264_v50 = vld [vmem:[%s3241_s22 + $0xf0] sm:$0xff] }
 0x515   : > { %v2080_v48 = vpack.c.bf16 %v1265_v46, %v1263_v45  ;;  %v1267_v51 = vld [vmem:[%s3241_s22 + $0x108] sm:$0xff]  ;;  %v1269_v52 = vld [vmem:[%s3241_s22 + $0x118] sm:$0xff]  ;;  %v2082_v53 = vpack.c.bf16 %v1264_v50, %v1262_v49  ;;  %v1266_v55 = vld [vmem:[%s3241_s22 + $0x100] sm:$0xff] }
 0x516   : > { %2063 = vmatpush1.bf16.msra.mxu0 %v2062_v21  ;;  %v2084_v54 = vpack.c.bf16 %v1269_v52, %v1267_v51  ;;  %v1268_v56 = vld [vmem:[%s3241_s22 + $0x110] sm:$0xff]  ;;  %v1271_v57 = vld [vmem:[%s3241_s22 + $0x128] sm:$0xff]  ;;  %v1273_v58 = vld [vmem:[%s3241_s22 + $0x138] sm:$0xff] }
 0x517   : > { %2065 = vmatprep.subr.bf16.mxu0 %v2064_v22  ;;  %v2086_v59 = vpack.c.bf16 %v1268_v56, %v1266_v55  ;;  %v2088_v60 = vpack.c.bf16 %v1273_v58, %v1271_v57  ;;  %v1270_v61 = vld [vmem:[%s3241_s22 + $0x120] sm:$0xff]  ;;  %v1272_v62 = vld [vmem:[%s3241_s22 + $0x130] sm:$0xff]  ;;  %v1274_v4 = vld [vmem:[%s788_s24] sm:$0x3] }
 0x518   : > { %v2090_v63 = vpack.c.bf16 %v1272_v62, %v1270_v61  ;;  %v1232_v0 = vld [vmem:[#allocation2] sm:$0xff]  ;;  %v1279_v6 = vrot.slane %v1274_v4, %v1278_v3  ;;  %v1283_v8 = vrot.slane %v1274_v4, %v1282_v5  ;;  %v1362_v15 = vld [vmem:[#allocation5 + $0x8] sm:$0xff] }
 0x519   : > { %v1361_v11 = vld [vmem:[#allocation5] sm:$0xff] }
 0x51a   : > { %2067 = vmatpush1.bf16.msra.mxu0 %v2066_v28 }
 0x51b   : > { %2069 = vmatprep.subr.bf16.mxu0 %v2068_v29 }
 0x51e   : > { %2071 = vmatpush1.bf16.msra.mxu0 %v2070_v35 }
 0x51f   : > { %2073 = vmatprep.subr.bf16.mxu0 %v2072_v36 }
 0x522   : > { %2075 = vmatpush1.bf16.msra.mxu0 %v2074_v41 }
 0x523   : > { %2077 = vmatprep.subr.bf16.mxu0 %v2076_v42 }
 0x526   : > { %2079 = vmatpush1.bf16.msra.mxu0 %v2078_v47 }
 0x527   : > { %2081 = vmatprep.subr.bf16.mxu0 %v2080_v48 }
 0x52a   : > { %2083 = vmatpush1.bf16.msra.mxu0 %v2082_v53 }
 0x52b   : > { %2085 = vmatprep.subr.bf16.mxu0 %v2084_v54 }
 0x52e   : > { %2087 = vmatpush1.bf16.msra.mxu0 %v2086_v59 }
 0x52f   : > { %2089 = vmatprep.subr.bf16.mxu0 %v2088_v60 }
 0x532   : > { %2091 = vmatpush1.bf16.msra.mxu0 %v2090_v63 }
 0x535   : > { %1355 = vmatmul.mubr.f32.vlgmr.msra.gmra.mrb[0].mxu0 %v1232_v0 }
 0x58b   : > { %v1367_v7 = vpop.permute.xlu0 %1366 }
 0x58c   : > { %vm1368_vm10 = vcmp.eq.s32.totalorder %v1367_v7, 1 }
 0x608   : > { %v1356_v9 = vpop.f32.mrb[0].mxu0 }
 0x609   : > { %v1357_v10 = vadd.f32 %v1356_v9, %v1279_v6  ;;  %v1358_v12 = vpop.f32.mrb[1].mxu0 }
 0x60a   : > { %v1359_v13 = vadd.f32 %v1358_v12, %v1283_v8 }
 0x60b   : > { %v1369_v16 = vsel %vm1368_vm10, %v1357_v10, 0.0 }
 0x60c   : > { %v1371_v17 = vadd.f32 %v1369_v16, %v1361_v11  ;;  %v1370_v18 = vsel %vm1368_vm10, %v1359_v13, 0.0 }
 0x60d   : > { %v1372_v19 = vadd.f32 %v1370_v18, %v1362_v15 }
 0x60e   : > { %1373 = vst [vmem:[#allocation5] sm:$0xff] %v1371_v17 }
 0x60f   : > { %1374 = vst [vmem:[#allocation5 + $0x8] sm:$0xff] %v1372_v19 }
 0x610 PF: > { %p1926_p13 = scmp.le.s32.totalorder %s3269_s19, 0 }
 0x611   : > { %v1380_v20 = vld [vmem:[%s3251_s30 + $0x8] sm:$0xff] (!%p1926_p13)  ;;  %v1382_v21 = vld [vmem:[%s3251_s30 + $0x18] sm:$0xff] (!%p1926_p13)  ;;  %v1379_v22 = vld [vmem:[%s3251_s30] sm:$0xff] (!%p1926_p13)  ;;  %v2744_v28 = vmov (!%p1926_p13), 0.0   ;;  %v2745_v29 = vmov (!%p1926_p13), 0   ;;  %vm1488_vm11 = vcmp.eq.s32.totalorder (!%p1926_p13), %v3330_v25, 0  ;;  %v1401_v54 = vlaneseq (!%p1926_p13) }
 0x612   : > { %1377 = sbr.rel (%p1926_p13) target bundleno = 1795 (0x703), region = 136  ;;  %v2092_v23 = vpack.c.bf16 (!%p1926_p13), %v1382_v21, %v1380_v20  ;;  %v1381_v24 = vld [vmem:[%s3251_s30 + $0x10] sm:$0xff] (!%p1926_p13)  ;;  %v1384_v14 = vld [vmem:[%s3251_s30 + $0x28] sm:$0xff] (!%p1926_p13)  ;;  %v1386_v27 = vld [vmem:[%s3251_s30 + $0x38] sm:$0xff] (!%p1926_p13)  ;;  %1479 = vmatprep.mubr.f32.mxu0 (!%p1926_p13), %v2744_v28  ;;  %2318 = vset.pattern.permute.xlu0 (!%p1926_p13), %v2745_v29  ;;  %v1489_v35 = vsel (!%p1926_p13), %vm1488_vm11, 1, %v2745_v29  ;;  %vm1411_vm12 = vcmask (!%p1926_p13), 654336  }
 0x613   : > { %v2094_v30 = vpack.c.bf16 (!%p1926_p13), %v1381_v24, %v1379_v22  ;;  %v2096_v31 = vpack.c.bf16 (!%p1926_p13), %v1386_v27, %v1384_v14  ;;  %v1383_v32 = vld [vmem:[%s3251_s30 + $0x20] sm:$0xff] (!%p1926_p13)  ;;  %v1385_v33 = vld [vmem:[%s3251_s30 + $0x30] sm:$0xff] (!%p1926_p13)  ;;  %v1388_v34 = vld [vmem:[%s3251_s30 + $0x48] sm:$0xff] (!%p1926_p13)  ;;  %1491 = vperm.xlu0 (!%p1926_p13), %2318, %v1489_v35   ;;  %v1402_v55 = vshrl.u32 (!%p1926_p13), %v1401_v54, 7 }
 0x614   : > { %2093 = vmatprep.subr.bf16.mxu0 (!%p1926_p13), %v2092_v23  ;;  %v1390_v36 = vld [vmem:[%s3251_s30 + $0x58] sm:$0xff] (!%p1926_p13)  ;;  %v2098_v37 = vpack.c.bf16 (!%p1926_p13), %v1385_v33, %v1383_v32  ;;  %v1387_v25 = vld [vmem:[%s3251_s30 + $0x40] sm:$0xff] (!%p1926_p13)  ;;  %v1389_v39 = vld [vmem:[%s3251_s30 + $0x50] sm:$0xff] (!%p1926_p13) }
 0x615   : > { %2095 = vmatpush1.bf16.msra.mxu0 (!%p1926_p13), %v2094_v30  ;;  %v2100_v38 = vpack.c.bf16 (!%p1926_p13), %v1390_v36, %v1388_v34  ;;  %v1392_v40 = vld [vmem:[%s3251_s30 + $0x68] sm:$0xff] (!%p1926_p13)  ;;  %v1394_v41 = vld [vmem:[%s3251_s30 + $0x78] sm:$0xff] (!%p1926_p13)  ;;  %v2102_v42 = vpack.c.bf16 (!%p1926_p13), %v1389_v39, %v1387_v25  ;;  %v1391_v44 = vld [vmem:[%s3251_s30 + $0x60] sm:$0xff] (!%p1926_p13)  ;;  %v1403_v56 = vsub.s32 (!%p1926_p13), 0, %v1402_v55  ;;  %v1407_v58 = vsub.s32 (!%p1926_p13), 1, %v1402_v55 }
 0x616   : > { %2097 = vmatprep.subr.bf16.mxu0 (!%p1926_p13), %v2096_v31  ;;  %v2104_v43 = vpack.c.bf16 (!%p1926_p13), %v1394_v41, %v1392_v40  ;;  %v1393_v45 = vld [vmem:[%s3251_s30 + $0x70] sm:$0xff] (!%p1926_p13)  ;;  %v1396_v46 = vld [vmem:[%s3251_s30 + $0x88] sm:$0xff] (!%p1926_p13)  ;;  %v1398_v47 = vld [vmem:[%s3251_s30 + $0x98] sm:$0xff] (!%p1926_p13) }
 0x617   : > { %v2106_v48 = vpack.c.bf16 (!%p1926_p13), %v1393_v45, %v1391_v44  ;;  %v2108_v49 = vpack.c.bf16 (!%p1926_p13), %v1398_v47, %v1396_v46  ;;  %v1395_v50 = vld [vmem:[%s3251_s30 + $0x80] sm:$0xff] (!%p1926_p13)  ;;  %v1397_v51 = vld [vmem:[%s3251_s30 + $0x90] sm:$0xff] (!%p1926_p13)  ;;  %v1399_v57 = vld [vmem:[%s794_s2] sm:$0x3] (!%p1926_p13) }
 0x618   : > { %v2110_v52 = vpack.c.bf16 (!%p1926_p13), %v1397_v51, %v1395_v50  ;;  %v1378_v53 = vld [vmem:[#allocation3] sm:$0xff] (!%p1926_p13)  ;;  %v1404_v59 = vrot.slane (!%p1926_p13), %v1399_v57, %v1403_v56  ;;  %v1408_v61 = vrot.slane (!%p1926_p13), %v1399_v57, %v1407_v58  ;;  %v1486_v0 = vld [vmem:[#allocation5] sm:$0xff] (!%p1926_p13)  ;;  %v1487_v3 = vld [vmem:[#allocation5 + $0x8] sm:$0xff] (!%p1926_p13) }
 0x619   : > { %2099 = vmatpush1.bf16.msra.mxu0 %v2098_v37 }
 0x61a   : > { %2101 = vmatprep.subr.bf16.mxu0 %v2100_v38 }
 0x61d   : > { %2103 = vmatpush1.bf16.msra.mxu0 %v2102_v42 }
 0x61e   : > { %2105 = vmatprep.subr.bf16.mxu0 %v2104_v43 }
 0x621   : > { %2107 = vmatpush1.bf16.msra.mxu0 %v2106_v48 }
 0x622   : > { %2109 = vmatprep.subr.bf16.mxu0 %v2108_v49 }
 0x625   : > { %2111 = vmatpush1.bf16.msra.mxu0 %v2110_v52 }
 0x628   : > { %1927 = vmatmul.mubr.msk.f32.vlgmr.msra.gmra.mrb[0].mxu0 %vm1411_vm12, %v1378_v53 }
 0x692   : > { %v1492_v60 = vpop.permute.xlu0 %1491 }
 0x693   : > { %vm1493_vm13 = vcmp.eq.s32.totalorder %v1492_v60, 1 }
 0x6fb   : > { %v1481_v62 = vpop.f32.mrb[0].mxu0 }
 0x6fc   : > { %v1482_v63 = vadd.f32 %v1481_v62, %v1404_v59  ;;  %v1483_v1 = vpop.f32.mrb[1].mxu0 }
 0x6fd   : > { %v1484_v2 = vadd.f32 %v1483_v1, %v1408_v61 }
 0x6fe   : > { %v1494_v4 = vsel %vm1493_vm13, %v1482_v63, 0.0 }
 0x6ff   : > { %v1496_v5 = vadd.f32 %v1494_v4, %v1486_v0  ;;  %v1495_v6 = vsel %vm1493_vm13, %v1484_v2, 0.0 }
 0x700   : > { %v1497_v7 = vadd.f32 %v1495_v6, %v1487_v3 }
 0x701   : > { %1498 = vst [vmem:[#allocation5] sm:$0xff] %v1496_v5 }
 0x702   : > { %1499 = vst [vmem:[#allocation5 + $0x8] sm:$0xff] %v1497_v7 }
 0x703 PF: > { %v1502_v8 = vld [vmem:[%s3261_s3 + $0x8] sm:$0xff]  ;;  %v1504_v9 = vld [vmem:[%s3261_s3 + $0x18] sm:$0xff]  ;;  %v1501_v10 = vld [vmem:[%s3261_s3] sm:$0xff]  ;;  %1597 = vmatprep.mubr.f32.mxu0 %v2740_v26  ;;  %vm1529_vm14 = vcmask 523264   ;;  %v1519_v34 = vlaneseq  ;;  %s3654_s16 = sld [smem:[#allocation37_spill]]  ;;  %s3656_s27 = sld [smem:[#allocation42_spill]] }
 0x704   : > { %v2112_v11 = vpack.c.bf16 %v1504_v9, %v1502_v8  ;;  %v1503_v12 = vld [vmem:[%s3261_s3 + $0x10] sm:$0xff]  ;;  %v1506_v13 = vld [vmem:[%s3261_s3 + $0x28] sm:$0xff]  ;;  %v1508_v15 = vld [vmem:[%s3261_s3 + $0x38] sm:$0xff]  ;;  %s1641_s8 = sshll.u32 %s3308_s29, 4  ;;  %s3657_s2 = sld [smem:[#allocation65_spill]]  ;;  %s3457_s8 = int_to_ptr.vmem [resolvable:$true] %s1641_s8 }
 0x705   : > { %v2114_v16 = vpack.c.bf16 %v1503_v12, %v1501_v10  ;;  %v2116_v17 = vpack.c.bf16 %v1508_v15, %v1506_v13  ;;  %v1505_v18 = vld [vmem:[%s3261_s3 + $0x20] sm:$0xff]  ;;  %v1507_v19 = vld [vmem:[%s3261_s3 + $0x30] sm:$0xff]  ;;  %v1510_v20 = vld [vmem:[%s3261_s3 + $0x48] sm:$0xff]  ;;  %v1520_v35 = vshrl.u32 %v1519_v34, 7  ;;  %s2569_s10 = scalar_lea.vmem %s3457_s8, 256  ;;  %s2746_s14 = smov [#allocation22]  }
 0x706   : > { %2113 = vmatprep.subr.bf16.mxu0 %v2112_v11  ;;  %v1512_v21 = vld [vmem:[%s3261_s3 + $0x58] sm:$0xff]  ;;  %v2118_v22 = vpack.c.bf16 %v1507_v19, %v1505_v18  ;;  %v1509_v23 = vld [vmem:[%s3261_s3 + $0x40] sm:$0xff]  ;;  %v1511_v24 = vld [vmem:[%s3261_s3 + $0x50] sm:$0xff]  ;;  %p2570_p4 = scmp.ne.s32.totalorder %s3457_s8, %s2569_s10  ;;  %s2573_s20 = sshll.u32 %s2746_s14, 4  ;;  %s2574_s20 = int_to_ptr.vmem [resolvable:$false] %s2573_s20 }
 0x707   : > { %2115 = vmatpush1.bf16.msra.mxu0 %v2114_v16  ;;  %v2120_v26 = vpack.c.bf16 %v1512_v21, %v1510_v20  ;;  %v1514_v14 = vld [vmem:[%s3261_s3 + $0x68] sm:$0xff]  ;;  %v1516_v27 = vld [vmem:[%s3261_s3 + $0x78] sm:$0xff]  ;;  %v2122_v28 = vpack.c.bf16 %v1511_v24, %v1509_v23  ;;  %v1513_v30 = vld [vmem:[%s3261_s3 + $0x60] sm:$0xff]  ;;  %v1521_v36 = vsub.s32 0, %v1520_v35  ;;  %v1525_v38 = vsub.s32 1, %v1520_v35  ;;  %s2575_s23 = scalar_lea.vmem %s2574_s20, 512  ;;  %p2576_p10 = scmp.lt.s32.totalorder %s3457_s8, %s2574_s20 }
 0x708   : > { %2117 = vmatprep.subr.bf16.mxu0 %v2116_v17  ;;  %v2124_v29 = vpack.c.bf16 %v1516_v27, %v1514_v14  ;;  %v1515_v31 = vld [vmem:[%s3261_s3 + $0x70] sm:$0xff]  ;;  %v1500_v33 = vld [vmem:[#allocation4] sm:$0xff]  ;;  %v1517_v37 = vld [vmem:[%s800_s0] sm:$0x3]  ;;  %s3655_s3 = sld [smem:[#allocation33_spill]]  ;;  %p2577_p7 = scmp.lt.s32.totalorder %s2575_s23, %s2569_s10 }
 0x709   : > { %v2126_v32 = vpack.c.bf16 %v1515_v31, %v1513_v30  ;;  %v1522_v25 = vrot.slane %v1517_v37, %v1521_v36  ;;  %v1526_v39 = vrot.slane %v1517_v37, %v1525_v38  ;;  %s2132_s0 = smul.u32 6, %s3654_s16  ;;  %v1616_v51 = vld [vmem:[#allocation5] sm:$0xff]  ;;  %v1617_v54 = vld [vmem:[#allocation5 + $0x8] sm:$0xff]  ;;  %p3659_p2 = scmp.ne.s32.totalorder %s3656_s27, 0 }
 0x70a   : > { %p2578_p0 = por %p2577_p7, %p2576_p10 }
 0x70b   : > { %2119 = vmatpush1.bf16.msra.mxu0 %v2118_v22  ;;  %s1637_s12 = sadd.s32 %s2132_s0, %s3279_s9  ;;  %p2571_p6 = pnand %p2570_p4, %p3659_p2 }
 0x70c   : > { %2121 = vmatprep.subr.bf16.mxu0 %v2120_v26  ;;  %s1933_s6 = sshll.u32 %s1637_s12, 7 }
 0x70d   : > { %s3455_s26 = scalar_lea.hbm %s3657_s2, %s1933_s6  ;;  %p2572_p5 = pneg %p2571_p6 }
 0x70e   : > { %s3658_s9 = sand.u32 1, %s3655_s3  }
 0x70f   : > { %2123 = vmatpush1.bf16.msra.mxu0 %v2122_v28  ;;  %s1625_s28 = scalar_lea.sflag [#allocation10], %s3658_s9  ;;  %p2579_p3 = pnand %p2578_p0, %p2572_p5 }
 0x710   : > { %2125 = vmatprep.subr.bf16.mxu0 %v2124_v29 }
 0x713   : > { %2127 = vmatpush1.bf16.msra.mxu0 %v2126_v32 }
 0x716   : > { %1928 = vmatmul.mubr.msk.f32.vlgmr.msra.gmra.mrb[0].mxu0 %vm1529_vm14, %v1500_v33 }
 0x7e9   : > { %v1599_v40 = vpop.f32.mrb[0].mxu0 }
 0x7ea   : > { %v1600_v41 = vadd.f32 %v1599_v40, %v1522_v25  ;;  %v1601_v42 = vpop.f32.mrb[1].mxu0 }
 0x7eb   : > { %v1602_v43 = vadd.f32 %v1601_v42, %v1526_v39 }
 0x7ec   : > { %v1929_v44 = vmul.f32 -1.442695, %v1600_v41 }
 0x7ed   : > { %v1930_v45 = vmul.f32 -1.442695, %v1602_v43 }
 0x7ee   : > { %2319 = vpow2.f32 %v1929_v44 }
 0x7ef   : > { %2321 = vpow2.f32 %v1930_v45 }
 0x7f8   : > { %v2320_v46 = vpop.eup %2319 }
 0x7f9   : > { %v2322_v47 = vpop.eup %2321  ;;  %v1610_v48 = vadd.f32 1.0, %v2320_v46 }
 0x7fa   : > { %v1611_v49 = vadd.f32 1.0, %v2322_v47 }
 0x7fb   : > { %2323 = vrcp.f32 %v1610_v48 }
 0x7fc   : > { %2325 = vrcp.f32 %v1611_v49 }
 0x805   : > { %v2324_v50 = vpop.eup %2323 }
 0x806   : > { %v2326_v52 = vpop.eup %2325  ;;  %v1618_v53 = vadd.f32 1.0, %v2324_v50 }
 0x807   : > { %v1619_v55 = vadd.f32 1.0, %v2326_v52 }
 0x808   : > { %v1620_v56 = vmul.f32 %v1618_v53, %v1616_v51 }
 0x809   : > { %v1621_v57 = vmul.f32 %v1619_v55, %v1617_v54 }
 0x80a   : > { %1622 = vst [vmem:[%s3308_s29] sm:$0xff] %v1620_v56 }
 0x80b   : > { %1623 = vst [vmem:[%s3308_s29 + $0x8] sm:$0xff] %v1621_v57 }
 0x80c   : > { %2582 = shalt.err (!%p2579_p3)
}
 0x80d   : > { %s2583_s29 = scalar_lea.hbm %s3455_s26, 256  ;;  %s2587_s1 = scalar_lea.hbm %s3657_s2, 1536 }
 0x80e   : > { %p2584_p8 = scmp.ne.s32.totalorder %s3455_s26, %s2583_s29  ;;  %p2588_p12 = scmp.lt.u32.totalorder %s3455_s26, %s3657_s2 }
 0x80f   : > { %p2589_p9 = scmp.lt.u32.totalorder %s2587_s1, %s2583_s29  ;;  %p2591_p4 = scmp.lt.u32.totalorder %s2583_s29, %s3455_s26 }
 0x810   : > { %p2585_p11 = pnand %p2584_p8, %p3659_p2 }
 0x811   : > { %p2590_p13 = por %p2589_p9, %p2588_p12 }
 0x812   : > { %p2586_p1 = pneg %p2585_p11 }
 0x813   : > { %p2592_p6 = por %p2591_p4, %p2590_p13 }
 0x815   : > { %p2593_p5 = pnand %p2592_p6, %p2586_p1 }
 0x817   : > { %2596 = shalt.err (!%p2593_p5)
}
 0x818   : > { %2157 = dma.vmem_to_hbm [thread:$0]  (%p3659_p2), %s3457_s8, 256, %s3455_s26, %s1625_s28  }
 0x819 PF: > { %s3660_s24 = sld [smem:[#allocation32_spill]]  ;;  %s3661_s22 = sld [smem:[#allocation43_spill]] }
 0x81a   : > { %p2198_p10 = scmp.ge.s32.totalorder %s2717_s25, 2 }
 0x81f   : > { %s1653_s19 = sand.u32 1, %s3660_s24   ;;  %p3662_p7 = scmp.ne.s32.totalorder %s3661_s22, 0 }
 0x820   : > { %s1654_s30 = scalar_lea.sflag [#allocation10], %s1653_s19 }
 0x821   : > { %p2186_p0 = pnand %p2198_p10, %p3662_p7 }
 0x823   : > { %2672 = dma.done.wait (!%p2186_p0), %s1654_s30, 256  }
 0x824   : > { %2674 = vsyncadd (!%p2186_p0), %s1654_s30, 4294967040  ;;  %s46_s25 = sadd.s32 1, %s2717_s25   ;;  %s3663_s9 = sld [smem:[#allocation33_spill]] }
 0x825   : > { %p43_p3 = scmp.ge.s32.totalorder %s46_s25, 8   ;;  %s3664_s15 = sld [smem:[#allocation48_spill]] }
 0x826   : > { %s3665_s18 = sld [smem:[#allocation34_spill]]  ;;  %s3666_s19 = sld [smem:[#allocation35_spill]] }
 0x827   : > { %s3667_s20 = sld [smem:[#allocation47_spill]]  ;;  %s3668_s21 = sld [smem:[#allocation38_spill]] }
 0x828   : > { %s3669_s22 = sld [smem:[#allocation39_spill]]  ;;  %s3670_s23 = sld [smem:[#allocation45_spill]] }
 0x829   : > { %s3671_s24 = sld [smem:[#allocation46_spill]]  ;;  %s3672_s0 = smov %s2685_s17 }
 0x82a   :  { %45 = sbr.rel (!%p43_p3) target bundleno = 40 (0x28), region = 219 }
 0x82b   : > { %s3673_s17 = smov %s3664_s15 }
 0x831   :  { %1659 = vsyncpa [#allocation9], 1 }
 0x832   :  { %1661 = vsyncpa [#allocation9 + $0x1], 1 }
 0x833   :  { %1662 = vsyncpa [#allocation12], 1 }
 0x834   :  { %1663 = vsyncpa [#allocation15], 1 }
 0x835   :  { %1665 = vsyncpa [#allocation15 + $0x1], 1 }
 0x836   :  { %1666 = vsyncpa [#allocation18], 1 }
 0x837   :  { %1668 = vsyncpa [#allocation18 + $0x1], 1 }
 0x838   :  { %1669 = vsyncpa [#allocation21], 1 }
 0x839   :  { %1671 = vsyncpa [#allocation21 + $0x1], 1 }
 0x83a   :  { %1672 = vsyncpa [#allocation10], 1 }
 0x83b   :  { %1674 = vsyncpa [#allocation10 + $0x1], 1 }

// kernel: tpu_custom_call.1
= control target key start
LH: loop header
LB: loop body
LE: loop exit
PB: predicated region body
PF: predicated region fallthrough
CT: control target
= control target key end

     0   :  { %s3521_s0 = inlined_call_operand.hbm [shape: s32[2,3], index: 0, kind: input, shape index: {}]   ;;  %s3522_s1 = inlined_call_operand.vmem [shape: f32[16,64], index: 1, kind: input, shape index: {}]   ;;  %s3523_s2 = inlined_call_operand.vmem [shape: s32[16,1], index: 2, kind: input, shape index: {}]   ;;  %s3524_s3 = inlined_call_operand.hbm [shape: f32[64,768], index: 3, kind: input, shape index: {}]   ;;  %s3525_s4 = inlined_call_operand.hbm [shape: f32[64,160], index: 4, kind: input, shape index: {}]   ;;  %s3526_s5 = inlined_call_operand.hbm [shape: f32[1,160], index: 5, kind: input, shape index: {}]   ;;  %s3527_s6 = inlined_call_operand.hbm [shape: f32[160,768], index: 6, kind: input, shape index: {}]   ;;  %s3528_s7 = inlined_call_operand.vmem [shape: f32[1,768], index: 7, kind: input, shape index: {}]   ;;  %s3529_s8 = inlined_call_operand.hbm [shape: f32[64,80], index: 8, kind: input, shape index: {}]   ;;  %s3530_s9 = inlined_call_operand.vmem [shape: f32[1,80], index: 9, kind: input, shape index: {}]   ;;  %s3531_s10 = inlined_call_operand.hbm [shape: f32[80,768], index: 10, kind: input, shape index: {}]   ;;  %s3532_s11 = inlined_call_operand.vmem [shape: f32[1,768], index: 11, kind: input, shape index: {}]   ;;  %s3533_s12 = inlined_call_operand.hbm [shape: f32[64,64], index: 12, kind: input, shape index: {}]   ;;  %s3534_s13 = inlined_call_operand.vmem [shape: f32[1,64], index: 13, kind: input, shape index: {}]   ;;  %s3535_s14 = inlined_call_operand.hbm [shape: f32[64,768], index: 14, kind: input, shape index: {}]   ;;  %s3536_s15 = inlined_call_operand.vmem [shape: f32[1,768], index: 15, kind: input, shape index: {}]   ;;  %s3537_s16 = inlined_call_operand.hbm [shape: f32[16,768], index: 16, kind: output, shape index: {}]  }
   0x1   :  { %3569 = sst [smem:[#allocation49_spill]] %s3521_s0 }
   0x2   :  { %3570 = sst [smem:[#allocation50_spill]] %s3522_s1  ;;  %s3586_s23 = sld [smem:[#allocation49_spill]] }
   0x3   :  { %3571 = sst [smem:[#allocation51_spill]] %s3523_s2 }
   0x4   :  { %3572 = sst [smem:[#allocation52_spill]] %s3524_s3 }
   0x5   :  { %3573 = sst [smem:[#allocation53_spill]] %s3525_s4 }
   0x6   :  { %3574 = sst [smem:[#allocation54_spill]] %s3526_s5 }
   0x7   :  { %3575 = sst [smem:[#allocation55_spill]] %s3527_s6 }
   0x8   :  { %3576 = sst [smem:[#allocation56_spill]] %s3528_s7 }
   0x9   :  { %3577 = sst [smem:[#allocation57_spill]] %s3529_s8 }
   0xa   :  { %3578 = sst [smem:[#allocation58_spill]] %s3530_s9  ;;  %s2327_s9 = scalar_lea.hbm %s3586_s23, 32 }
   0xb   :  { %3579 = sst [smem:[#allocation59_spill]] %s3531_s10  ;;  %p2328_p0 = scmp.ne.s32.totalorder %s3586_s23, %s2327_s9 }
   0xc   :  { %3580 = sst [smem:[#allocation60_spill]] %s3532_s11  ;;  %p2331_p1 = scmp.lt.u32.totalorder %s2327_s9, %s3586_s23 }
   0xd   :  { %3581 = sst [smem:[#allocation61_spill]] %s3533_s12 }
   0xe   :  { %3582 = sst [smem:[#allocation62_spill]] %s3534_s13  ;;  %p2333_p2 = pnand %p2331_p1, %p2328_p0 }
   0xf   :  { %3583 = sst [smem:[#allocation63_spill]] %s3535_s14 }
  0x10   :  { %3584 = sst [smem:[#allocation64_spill]] %s3536_s15 }
  0x11   :  { %3585 = sst [smem:[#allocation65_spill]] %s3537_s16 }
  0x12   :  { %2336 = shalt.err (!%p2333_p2)  }
  0x13   :  { %s2719_s28 = smov [#allocation7]  }
  0x14   :  { %22 = dma.hbm_to_smem %s3586_s23, 32, %s2719_s28, [#allocation6] }
  0x15   :  { %2641 = dma.done.wait [#allocation6], 32 }
  0x16   :  { %2642 = vsyncadd [#allocation6], 4294967264 }
  0x17   :  { %24 = sfence }
  0x18   :  { %25 = vsyncpa [#allocation9], 0 }
  0x19   :  { %27 = vsyncpa [#allocation9 + $0x1], 0 }
  0x1a   :  { %28 = vsyncpa [#allocation12], 0 }
  0x1b   :  { %29 = vsyncpa [#allocation15], 0 }
  0x1c   :  { %31 = vsyncpa [#allocation15 + $0x1], 0 }
  0x1d   :  { %32 = vsyncpa [#allocation18], 0 }
  0x1e   :  { %34 = vsyncpa [#allocation18 + $0x1], 0 }
  0x1f   :  { %35 = vsyncpa [#allocation21], 0 }
  0x20   :  { %37 = vsyncpa [#allocation21 + $0x1], 0 }
  0x21   :  { %38 = vsyncpa [#allocation10], 0 }
  0x22   :  { %40 = vsyncpa [#allocation10 + $0x1], 0  ;;  %s2844_s9 = smov 0   ;;  %s2846_s0 = smov 0  }
  0x23   :  { %s2848_s17 = smov 0   ;;  %s2850_s18 = smov 0  }
  0x24   :  { %s2852_s19 = smov 0   ;;  %s2854_s20 = smov 0  }
  0x25   :  { %s2856_s21 = smov 0   ;;  %s2858_s22 = smov 0  }
  0x26   :  { %s2860_s23 = smov 0   ;;  %s2862_s24 = smov 0  }
  0x27   :  { %s2864_s25 = smov 0  }
  0x28 LB: > { %3587 = sst [smem:[#allocation32_spill]] %s2677_s9  ;;  %s2898_s26 = sadd.s32 4294967295, %s2717_s25   ;;  %s2717_s25 = sphi %s2864_s25, %s46_s25   ;;  %s2713_s24 = sphi %s2862_s24, %s3671_s24   ;;  %s2709_s23 = sphi %s2860_s23, %s3670_s23   ;;  %s2705_s22 = sphi %s2858_s22, %s3669_s22   ;;  %s2701_s21 = sphi %s2856_s21, %s3668_s21   ;;  %s2697_s20 = sphi %s2854_s20, %s3667_s20   ;;  %s2693_s19 = sphi %s2852_s19, %s3666_s19   ;;  %s2689_s18 = sphi %s2850_s18, %s3665_s18   ;;  %s2685_s17 = sphi %s2848_s17, %s3673_s17   ;;  %s2681_s0 = sphi %s2846_s0, %s3672_s0   ;;  %s2677_s9 = sphi %s2844_s9, %s3663_s9  }
  0x29   : > { %3588 = sst [smem:[#allocation33_spill]] %s2681_s0  ;;  %s1883_s27 = sadd.s32 4294967294, %s2717_s25  }
  0x2a   : > { %3589 = sst [smem:[#allocation34_spill]] %s2693_s19  ;;  %p124_p3 = scmp.ne.s32.totalorder %s2697_s20, %s2693_s19 }
  0x2b   : > { %3590 = sst [smem:[#allocation35_spill]] %s2697_s20  ;;  %p125_p4 = scmp.eq.s32.totalorder %s2717_s25, 0 }
  0x2c   : > { %3591 = sst [smem:[#allocation36_spill]] %s2701_s21  ;;  %p130_p5 = scmp.ne.s32.totalorder %s2693_s19, %s2689_s18 }
  0x2d   : > { %3592 = sst [smem:[#allocation37_spill]] %s2705_s22  ;;  %p3545_p6 = scmp.eq.s32.totalorder %s2898_s26, 0 }
  0x2e   : > { %3593 = sst [smem:[#allocation38_spill]] %s2709_s23  ;;  %p2906_p7 = por %p125_p4, %p124_p3 }
  0x2f   : > { %3594 = sst [smem:[#allocation39_spill]] %s2713_s24  ;;  %p2913_p8 = por %p3545_p6, %p130_p5 }
  0x30   : > { %3595 = sst [smem:[#allocation40_spill]] %s2898_s26  ;;  %p437_p9 = scmp.ne.s32.totalorder %s2685_s17, %s2681_s0 }
  0x31   : > { %s3596_s28 = scalar_select %p2906_p7, 1, 0 }
  0x32   : > { %s3597_s30 = scalar_select %p2913_p8, 1, 0 }
  0x33   : > { %p438_p10 = scmp.eq.s32.totalorder %s2898_s26, 5  ;;  %p443_p11 = scmp.ne.s32.totalorder %s2681_s0, %s2677_s9 }
  0x34   : > { %3598 = sst [smem:[#allocation41_spill]] %s3597_s30  ;;  %p444_p12 = scmp.eq.s32.totalorder %s1883_s27, 5 }
  0x35   : > { %p1884_p13 = scmp.ge.s32.totalorder %s2717_s25, 1  ;;  %p2923_p0 = por %p438_p10, %p437_p9 }
  0x36   : > { %p451_p1 = scmp.lt.s32.totalorder %s2717_s25, 7  ;;  %p2928_p2 = por %p444_p12, %p443_p11 }
  0x37   : > { %s3599_s16 = scalar_select %p2923_p0, 1, 0 }
  0x38   : > { %s3601_s18 = scalar_select %p2928_p2, 1, 0 }
  0x39   : > { %3600 = sst [smem:[#allocation42_spill]] %s3599_s16  ;;  %p2932_p3 = pnand %p1884_p13, %p451_p1 }
  0x3a   : > { %3602 = sst [smem:[#allocation43_spill]] %s3601_s18  ;;  %s2720_s13 = smov [#allocation11]  }
  0x3b   : > { %s3603_s29 = scalar_select %p2932_p3, 1, 0 }
  0x3c   : > { %s463_s15 = sshll.u32 %s2720_s13, 4  ;;  %p2159_p4 = pneg %p2932_p3  ;;  %s464_s15 = int_to_ptr.vmem [resolvable:$true] %s463_s15 }
  0x3d   : > { %3604 = sst [smem:[#allocation44_spill]] %s3603_s29  ;;  %s2721_s9 = smov [#allocation16]  }
  0x3e   : > { %p2940_p5 = pnand %p2159_p4, %p3545_p6  ;;  %s487_s16 = sshll.u32 %s2721_s9, 4  ;;  %s2944_s16 = int_to_ptr.vmem [resolvable:$true] %s487_s16 }
  0x3f   : > { %s3606_s4 = sld [smem:[#allocation53_spill]] }
  0x40   : > { %p2954_p10 = pneg %p2940_p5 }
  0x45   : > { %s2337_s7 = scalar_lea.hbm %s3606_s4, 2048 }
  0x46   : > { %p2338_p9 = scmp.ne.s32.totalorder %s3606_s4, %s2337_s7  ;;  %p2344_p13 = scmp.lt.u32.totalorder %s2337_s7, %s3606_s4 }
  0x48   : > { %p2340_p11 = pnand %p2954_p10, %p2338_p9 }
  0x4a   : > { %p2341_p12 = pneg %p2340_p11 }
  0x4c   : > { %p2346_p1 = pnand %p2344_p13, %p2341_p12 }
  0x4e   : > { %2349 = shalt.err (!%p2346_p1)
}
  0x4f   : > { %s2350_s11 = scalar_lea.vmem %s464_s15, 2048  ;;  %p2358_p0 = scmp.lt.s32.totalorder %s464_s15, %s464_s15 }
  0x50   : > { %p2351_p4 = scmp.ne.s32.totalorder %s464_s15, %s2350_s11  ;;  %p2359_p8 = scmp.lt.s32.totalorder %s2350_s11, %s2350_s11 }
  0x52   : > { %p2353_p6 = pnand %p2351_p4, %p2954_p10  ;;  %p2360_p3 = por %p2359_p8, %p2358_p0 }
  0x54   : > { %p2354_p2 = pneg %p2353_p6 }
  0x56   : > { %p2361_p7 = pnand %p2360_p3, %p2354_p2 }
  0x58   : > { %2364 = shalt.err (!%p2361_p7)
}
  0x59   : > { %s3556_s1 = smov 256   ;;  %s3558_s2 = smov 16  }
  0x5a   : > { %2162 = dma.hbm_to_vmem [thread:$0]  (!%p2940_p5), %s3606_s4, 2048, %s464_s15, [#allocation12], %s3556_s1, %s3556_s1, %s3558_s2  }
  0x5b   : > { %s3608_s8 = sld [smem:[#allocation57_spill]] }
  0x61   : > { %s2365_s0 = scalar_lea.hbm %s3608_s8, 1024 }
  0x62   : > { %p2366_p6 = scmp.ne.s32.totalorder %s3608_s8, %s2365_s0  ;;  %p2372_p0 = scmp.lt.u32.totalorder %s2365_s0, %s3608_s8 }
  0x64   : > { %p2368_p7 = pnand %p2366_p6, %p2954_p10 }
  0x66   : > { %p2369_p8 = pneg %p2368_p7 }
  0x68   : > { %p2374_p2 = pnand %p2372_p0, %p2369_p8 }
  0x6a   : > { %2377 = shalt.err (!%p2374_p2)
}
  0x6b   : > { %s2378_s15 = scalar_lea.vmem %s2944_s16, 1024  ;;  %p2386_p12 = scmp.lt.s32.totalorder %s2944_s16, %s2944_s16 }
  0x6c   : > { %p2379_p3 = scmp.ne.s32.totalorder %s2944_s16, %s2378_s15  ;;  %p2387_p13 = scmp.lt.s32.totalorder %s2378_s15, %s2378_s15 }
  0x6e   : > { %p2381_p9 = pnand %p2379_p3, %p2954_p10  ;;  %p2388_p1 = por %p2387_p13, %p2386_p12 }
  0x70   : > { %p2382_p11 = pneg %p2381_p9 }
  0x72   : > { %p2389_p4 = pnand %p2388_p1, %p2382_p11 }
  0x74   : > { %2392 = shalt.err (!%p2389_p4)
}
  0x75   : > { %s2724_s22 = smov 128   ;;  %s2725_s0 = smov 8  }
  0x76   : > { %2168 = dma.hbm_to_vmem [thread:$0]  (!%p2940_p5), %s3608_s8, 1024, %s2944_s16, [#allocation15], %s2724_s22, %s2724_s22, %s2725_s0  }
  0x77   : > { %s2726_s7 = smov [#allocation19]   ;;  %s2727_s18 = smov [#allocation13]  }
  0x78   : > { %s503_s21 = sshll.u32 %s2726_s7, 4  ;;  %s477_s9 = sshll.u32 %s2727_s18, 4  ;;  %s504_s21 = int_to_ptr.vmem [resolvable:$true] %s503_s21  ;;  %s478_s9 = int_to_ptr.vmem [resolvable:$true] %s477_s9 }
  0x79   : > { %s3609_s12 = sld [smem:[#allocation61_spill]] }
  0x7f   : > { %s2393_s1 = scalar_lea.hbm %s3609_s12, 1024 }
  0x80   : > { %p2394_p6 = scmp.ne.s32.totalorder %s3609_s12, %s2393_s1  ;;  %p2400_p0 = scmp.lt.u32.totalorder %s2393_s1, %s3609_s12 }
  0x82   : > { %p2396_p7 = pnand %p2394_p6, %p2954_p10 }
  0x84   : > { %p2397_p8 = pneg %p2396_p7 }
  0x86   : > { %p2402_p2 = pnand %p2400_p0, %p2397_p8 }
  0x88   : > { %2405 = shalt.err (!%p2402_p2)
}
  0x89   : > { %s2406_s16 = scalar_lea.vmem %s504_s21, 1024  ;;  %p2414_p12 = scmp.lt.s32.totalorder %s504_s21, %s504_s21 }
  0x8a   : > { %p2407_p3 = scmp.ne.s32.totalorder %s504_s21, %s2406_s16  ;;  %p2415_p13 = scmp.lt.s32.totalorder %s2406_s16, %s2406_s16 }
  0x8c   : > { %p2409_p9 = pnand %p2407_p3, %p2954_p10  ;;  %p2416_p1 = por %p2415_p13, %p2414_p12 }
  0x8e   : > { %p2410_p11 = pneg %p2409_p9 }
  0x90   : > { %p2417_p4 = pnand %p2416_p1, %p2410_p11 }
  0x92   : > { %2420 = shalt.err (!%p2417_p4)
}
  0x93   : > { %2171 = dma.hbm_to_vmem [thread:$0]  (!%p2940_p5), %s3609_s12, 1024, %s504_s21, [#allocation18], %s2724_s22, %s2724_s22, %s2725_s0  }
  0x94   : > { %s3610_s5 = sld [smem:[#allocation54_spill]] }
  0x9a   : > { %s2421_s1 = scalar_lea.hbm %s3610_s5, 32 }
  0x9b   : > { %p2422_p6 = scmp.ne.s32.totalorder %s3610_s5, %s2421_s1  ;;  %p2428_p0 = scmp.lt.u32.totalorder %s2421_s1, %s3610_s5 }
  0x9d   : > { %p2424_p7 = pnand %p2422_p6, %p2954_p10 }
  0x9f   : > { %p2425_p8 = pneg %p2424_p7 }
  0xa1   : > { %p2430_p2 = pnand %p2428_p0, %p2425_p8 }
  0xa3   : > { %2433 = shalt.err (!%p2430_p2)
}
  0xa4   : > { %s2434_s11 = scalar_lea.vmem %s478_s9, 32  ;;  %p2442_p12 = scmp.lt.s32.totalorder %s478_s9, %s478_s9 }
  0xa5   : > { %p2435_p3 = scmp.ne.s32.totalorder %s478_s9, %s2434_s11  ;;  %p2443_p13 = scmp.lt.s32.totalorder %s2434_s11, %s2434_s11 }
  0xa7   : > { %p2437_p9 = pnand %p2435_p3, %p2954_p10  ;;  %p2444_p1 = por %p2443_p13, %p2442_p12 }
  0xa9   : > { %p2438_p11 = pneg %p2437_p9 }
  0xab   : > { %p2445_p4 = pnand %p2444_p1, %p2438_p11 }
  0xad   : > { %2448 = shalt.err (!%p2445_p4)
}
  0xae   : > { %2165 = dma.hbm_to_vmem [thread:$0]  (!%p2940_p5), %s3610_s5, 32, %s478_s9, [#allocation12]  }
  0xaf   : > { %s55_s13 = sadd.s32 1, %s2709_s23  ;;  %s58_s21 = sadd.s32 1, %s2713_s24 }
  0xb0   : > { %p56_p10 = scmp.ge.s32.totalorder %s55_s13, 3  ;;  %s117_s15 = sadd.s32 1, %s2697_s20 }
  0xb1   : > { %p2193_p6 = scmp.lt.s32.totalorder %s2717_s25, 6  ;;  %s3042_s16 = sand.u32 1, %s2697_s20  }
  0xb2   : > { %s3675_s13 = smov (%p56_p10, %s55_s13), 0  ;;  %s3677_s21 = smov (!%p56_p10, %s58_s21), %s2713_s24 }
  0xb3   : > { %3611 = sst [smem:[#allocation45_spill]] %s3675_s13  ;;  %s114_s27 = ssub.s32 %s2709_s23, %s3675_s13 }
  0xb4   : > { %p60_p5 = scmp.ge.s32.totalorder %s3677_s21, 2  ;;  %p115_p7 = scmp.eq.s32.totalorder %s114_s27, 0 }
  0xb5   : > { %s3562_s9 = sshll.u32 %s3042_s16, 7  ;;  %s3053_s29 = sshll.u32 %s2709_s23, 8 }
  0xb6   : > { %s3679_s21 = smov (%p60_p5, %s3677_s21), 0  ;;  %s3614_s3 = sld [smem:[#allocation52_spill]] }
  0xb7   : > { %3612 = sst [smem:[#allocation46_spill]] %s3679_s21  ;;  %s422_s2 = ssub.s32 %s2713_s24, %s3679_s21 }
  0xb8   : > { %s3048_s4 = scalar_select %p115_p7, %s2697_s20, %s117_s15  }
  0xb9   : > { %s424_s19 = sor.u32 %s422_s2, %s114_s27  ;;  %s538_s7 = scalar_lea.vmem [#allocation8], %s3562_s9 }
  0xba   : > { %3613 = sst [smem:[#allocation47_spill]] %s3048_s4  ;;  %p425_p8 = scmp.eq.s32.totalorder %s424_s19, 0 }
  0xbb   : > { %s545_s18 = sshll.u32 %s538_s7, 4  ;;  %p3615_p0 = scmp.ne.s32.totalorder %s3596_s28, 0  ;;  %s3076_s18 = int_to_ptr.vmem [resolvable:$true] %s545_s18 }
  0xbc   : > { %s3059_s30 = scalar_lea.hbm %s3614_s3, %s3053_s29  ;;  %s3617_s22 = sadd.s32 1, %s2685_s17 }
  0xbd   : > { %p3067_p2 = pnand %p2193_p6, %p3615_p0  ;;  %s535_s27 = scalar_lea.sflag [#allocation9], %s3042_s16 }
  0xbe   : > { %s3074_s0 = scalar_select %p425_p8, %s2685_s17, %s3617_s22  }
  0xbf   : > { %s2449_s2 = scalar_lea.hbm %s3059_s30, 2048  ;;  %p3084_p9 = pneg %p3067_p2 }
  0xc0   : > { %3618 = sst [smem:[#allocation48_spill]] %s3074_s0  ;;  %p2450_p3 = scmp.ne.s32.totalorder %s3059_s30, %s2449_s2 }
  0xc1   : > { %s2454_s26 = scalar_lea.hbm %s3614_s3, 6144  ;;  %p2455_p13 = scmp.lt.u32.totalorder %s3059_s30, %s3614_s3 }
  0xc2   : > { %p2452_p11 = pnand %p3084_p9, %p2450_p3  ;;  %p2456_p1 = scmp.lt.u32.totalorder %s2454_s26, %s2449_s2 }
  0xc3   : > { %p2458_p10 = scmp.lt.u32.totalorder %s2449_s2, %s3059_s30 }
  0xc4   : > { %p2453_p12 = pneg %p2452_p11  ;;  %p2457_p4 = por %p2456_p1, %p2455_p13 }
  0xc6   : > { %p2459_p6 = por %p2458_p10, %p2457_p4 }
  0xc8   : > { %p2460_p5 = pnand %p2459_p6, %p2453_p12 }
  0xca   : > { %2463 = shalt.err (!%p2460_p5)
}
  0xcb   : > { %s2464_s9 = scalar_lea.vmem %s3076_s18, 2048  ;;  %s2728_s28 = smov [#allocation8]  }
  0xcc   : > { %p2465_p7 = scmp.ne.s32.totalorder %s3076_s18, %s2464_s9  ;;  %s2469_s1 = sshll.u32 %s2728_s28, 4  ;;  %s2470_s1 = int_to_ptr.vmem [resolvable:$false] %s2469_s1 }
  0xcd   : > { %s2471_s7 = scalar_lea.vmem %s2470_s1, 4096  ;;  %p2472_p3 = scmp.lt.s32.totalorder %s3076_s18, %s2470_s1 }
  0xce   : > { %p2467_p8 = pnand %p2465_p7, %p3084_p9  ;;  %p2473_p11 = scmp.lt.s32.totalorder %s2471_s7, %s2464_s9 }
  0xd0   : > { %p2468_p0 = pneg %p2467_p8  ;;  %p2474_p13 = por %p2473_p11, %p2472_p3 }
  0xd2   : > { %p2475_p1 = pnand %p2474_p13, %p2468_p0 }
  0xd4   : > { %2478 = shalt.err (!%p2475_p1)
}
  0xd5   : > { %s2729_s2 = smov 768   ;;  %s3620_s26 = smov 16  }
  0xd6   : > { %s3621_s22 = smov 256   ;;  %s2128_s9 = smul.u32 320, %s3042_s16 }
  0xd7   : > { %2175 = dma.hbm_to_vmem [thread:$0]  (!%p3067_p2), %s3059_s30, 2048, %s3076_s18, %s535_s27, %s2729_s2, %s3621_s22, %s3620_s26  }
  0xd8   : > { %s3622_s6 = sld [smem:[#allocation55_spill]]  ;;  %s559_s3 = scalar_lea.vmem [#allocation14], %s2128_s9 }
  0xd9   : > { %s566_s5 = sshll.u32 %s559_s3, 4  ;;  %s3623_s10 = sld [smem:[#allocation59_spill]]  ;;  %s3126_s5 = int_to_ptr.vmem [resolvable:$true] %s566_s5 }
  0xda   : > { %s3624_s30 = sand.u32 1, %s2717_s25  }
  0xdb   : > { %s3130_s18 = scalar_lea.sflag [#allocation15], %s3624_s30 }
  0xde   : > { %s3117_s7 = scalar_lea.hbm %s3622_s6, %s3053_s29  ;;  %s2484_s9 = scalar_lea.hbm %s3622_s6, 15360 }
  0xdf   : > { %s3124_s21 = scalar_lea.hbm %s3623_s10, %s3053_s29  ;;  %s2479_s27 = scalar_lea.hbm %s3117_s7, 5120 }
  0xe0   : > { %p2480_p12 = scmp.ne.s32.totalorder %s3117_s7, %s2479_s27  ;;  %p2485_p6 = scmp.lt.u32.totalorder %s3117_s7, %s3622_s6 }
  0xe1   : > { %p2486_p5 = scmp.lt.u32.totalorder %s2484_s9, %s2479_s27  ;;  %p2488_p8 = scmp.lt.u32.totalorder %s2479_s27, %s3117_s7 }
  0xe2   : > { %p2482_p4 = pnand %p2480_p12, %p3084_p9 }
  0xe3   : > { %p2487_p7 = por %p2486_p5, %p2485_p6 }
  0xe4   : > { %p2483_p10 = pneg %p2482_p4 }
  0xe5   : > { %p2489_p0 = por %p2488_p8, %p2487_p7 }
  0xe7   : > { %p2490_p3 = pnand %p2489_p0, %p2483_p10 }
  0xe9   : > { %2493 = shalt.err (!%p2490_p3)
}
  0xea   : > { %s2494_s8 = scalar_lea.vmem %s3126_s5, 5120  ;;  %s2730_s12 = smov [#allocation14]  }
  0xeb   : > { %p2495_p11 = scmp.ne.s32.totalorder %s3126_s5, %s2494_s8  ;;  %s2499_s30 = sshll.u32 %s2730_s12, 4  ;;  %s2500_s30 = int_to_ptr.vmem [resolvable:$false] %s2499_s30 }
  0xec   : > { %s2501_s15 = scalar_lea.vmem %s2500_s30, 10240  ;;  %p2502_p12 = scmp.lt.s32.totalorder %s3126_s5, %s2500_s30 }
  0xed   : > { %p2497_p13 = pnand %p2495_p11, %p3084_p9  ;;  %p2503_p4 = scmp.lt.s32.totalorder %s2501_s15, %s2494_s8 }
  0xef   : > { %p2498_p1 = pneg %p2497_p13  ;;  %p2504_p6 = por %p2503_p4, %p2502_p12 }
  0xf1   : > { %p2505_p5 = pnand %p2504_p6, %p2498_p1 }
  0xf3   : > { %2508 = shalt.err (!%p2505_p5)
}
  0xf4   : > { %2178 = dma.hbm_to_vmem [thread:$0]  (!%p3067_p2), %s3117_s7, 5120, %s3126_s5, %s3130_s18, %s2729_s2, %s3621_s22, %s3620_s26  }
  0xf5   : > { %s3625_s27 = smul.u32 160, %s3042_s16  ;;  %s3626_s9 = sand.u32 1, %s2717_s25  }
  0xf6   : > { %s3163_s3 = scalar_lea.sflag [#allocation18], %s3626_s9  ;;  %s2509_s8 = scalar_lea.hbm %s3124_s21, 2560 }
  0xf7   : > { %s588_s28 = scalar_lea.vmem [#allocation17], %s3625_s27  ;;  %p2510_p10 = scmp.ne.s32.totalorder %s3124_s21, %s2509_s8 }
  0xf8   : > { %s595_s1 = sshll.u32 %s588_s28, 4  ;;  %s2514_s15 = scalar_lea.hbm %s3623_s10, 7680  ;;  %s3159_s1 = int_to_ptr.vmem [resolvable:$true] %s595_s1 }
  0xf9   : > { %p2512_p7 = pnand %p2510_p10, %p3084_p9  ;;  %p2515_p0 = scmp.lt.u32.totalorder %s3124_s21, %s3623_s10 }
  0xfa   : > { %p2516_p3 = scmp.lt.u32.totalorder %s2514_s15, %s2509_s8  ;;  %p2518_p13 = scmp.lt.u32.totalorder %s2509_s8, %s3124_s21 }
  0xfb   : > { %p2513_p8 = pneg %p2512_p7 }
  0xfc   : > { %p2517_p11 = por %p2516_p3, %p2515_p0 }
  0xfe   : > { %p2519_p1 = por %p2518_p13, %p2517_p11 }
 0x100   : > { %p2520_p12 = pnand %p2519_p1, %p2513_p8 }
 0x102   : > { %2523 = shalt.err (!%p2520_p12)
}
 0x103   : > { %s2524_s5 = scalar_lea.vmem %s3159_s1, 2560  ;;  %s2731_s7 = smov [#allocation17]  }
 0x104   : > { %p2525_p4 = scmp.ne.s32.totalorder %s3159_s1, %s2524_s5  ;;  %s2529_s18 = sshll.u32 %s2731_s7, 4  ;;  %s2530_s18 = int_to_ptr.vmem [resolvable:$false] %s2529_s18 }
 0x105   : > { %s2531_s6 = scalar_lea.vmem %s2530_s18, 5120  ;;  %p2532_p10 = scmp.lt.s32.totalorder %s3159_s1, %s2530_s18 }
 0x106   : > { %p2527_p6 = pnand %p2525_p4, %p3084_p9  ;;  %p2533_p7 = scmp.lt.s32.totalorder %s2531_s6, %s2524_s5 }
 0x108   : > { %p2528_p5 = pneg %p2527_p6  ;;  %p2534_p0 = por %p2533_p7, %p2532_p10 }
 0x10a   : > { %p2535_p3 = pnand %p2534_p0, %p2528_p5 }
 0x10c   : > { %2538 = shalt.err (!%p2535_p3)
}
 0x10d   : > { %2181 = dma.hbm_to_vmem [thread:$0]  (!%p3067_p2), %s3124_s21, 2560, %s3159_s1, %s3163_s3, %s2729_s2, %s3621_s22, %s3620_s26  }
 0x10e   : > { %s3627_s14 = sld [smem:[#allocation63_spill]]  ;;  %s3628_s9 = sshll.u32 %s3042_s16, 7 }
 0x10f   : > { %s617_s8 = scalar_lea.vmem [#allocation20], %s3628_s9  ;;  %s614_s30 = scalar_lea.sflag [#allocation21], %s3042_s16 }
 0x110   : > { %s624_s12 = sshll.u32 %s617_s8, 4  ;;  %s3198_s12 = int_to_ptr.vmem [resolvable:$true] %s624_s12 }
 0x114   : > { %s3194_s28 = scalar_lea.hbm %s3627_s14, %s3053_s29  ;;  %s2544_s29 = scalar_lea.hbm %s3627_s14, 6144 }
 0x115   : > { %s2539_s15 = scalar_lea.hbm %s3194_s28, 2048  ;;  %p2545_p1 = scmp.lt.u32.totalorder %s3194_s28, %s3627_s14 }
 0x116   : > { %p2540_p8 = scmp.ne.s32.totalorder %s3194_s28, %s2539_s15  ;;  %p2546_p12 = scmp.lt.u32.totalorder %s2544_s29, %s2539_s15 }
 0x117   : > { %p2548_p6 = scmp.lt.u32.totalorder %s2539_s15, %s3194_s28 }
 0x118   : > { %p2542_p11 = pnand %p2540_p8, %p3084_p9  ;;  %p2547_p4 = por %p2546_p12, %p2545_p1 }
 0x11a   : > { %p2543_p13 = pneg %p2542_p11  ;;  %p2549_p5 = por %p2548_p6, %p2547_p4 }
 0x11c   : > { %p2550_p10 = pnand %p2549_p5, %p2543_p13 }
 0x11e   : > { %2553 = shalt.err (!%p2550_p10)
}
 0x11f   : > { %s2554_s7 = scalar_lea.vmem %s3198_s12, 2048  ;;  %s2732_s18 = smov [#allocation20]  }
 0x120   : > { %p2555_p7 = scmp.ne.s32.totalorder %s3198_s12, %s2554_s7  ;;  %s2559_s6 = sshll.u32 %s2732_s18, 4  ;;  %s2560_s6 = int_to_ptr.vmem [resolvable:$false] %s2559_s6 }
 0x121   : > { %s2561_s13 = scalar_lea.vmem %s2560_s6, 4096  ;;  %p2562_p8 = scmp.lt.s32.totalorder %s3198_s12, %s2560_s6 }
 0x122   : > { %p2557_p0 = pnand %p2555_p7, %p3084_p9  ;;  %p2563_p11 = scmp.lt.s32.totalorder %s2561_s13, %s2554_s7 }
 0x124   : > { %p2558_p3 = pneg %p2557_p0  ;;  %p2564_p1 = por %p2563_p11, %p2562_p8 }
 0x126   : > { %p2565_p12 = pnand %p2564_p1, %p2558_p3 }
 0x128   : > { %2568 = shalt.err (!%p2565_p12)
}
 0x129   : > { %2184 = dma.hbm_to_vmem [thread:$0]  (!%p3067_p2), %s3194_s28, 2048, %s3198_s12, %s614_s30, %s2729_s2, %s3621_s22, %s3620_s26  }
 0x12a   : > { %s3629_s19 = sld [smem:[#allocation44_spill]] }
 0x130   : > { %p3630_p9 = scmp.ne.s32.totalorder %s3629_s19, 0 }
 0x131   : > { %s3631_s27 = sld [smem:[#allocation34_spill]] (!%p3630_p9)  ;;  %s3632_s9 = sld [smem:[#allocation41_spill]] (!%p3630_p9) }
 0x132   : > { %644 = sbr.rel (%p3630_p9) target bundleno = 2073 (0x819), region = 80 }
 0x137   : > { %s646_s8 = sand.u32 (!%p3630_p9), 1, %s3631_s27   ;;  %p3633_p13 = scmp.ne.s32.totalorder (!%p3630_p9), %s3632_s9, 0 }
 0x138   : > { %s1901_s15 = sshll.u32 (!%p3630_p9), %s646_s8, 7  ;;  %s647_s21 = scalar_lea.sflag (!%p3630_p9), [#allocation9], %s646_s8 }
 0x139   : > { %s3230_s1 = scalar_lea.vmem [#allocation8], %s1901_s15 }
 0x13a   : > { %2644 = dma.done.wait (%p3633_p13), %s647_s21, 2048  }
 0x13b   : > { %2646 = vsyncadd (%p3633_p13), %s647_s21, 4294965248  ;;  %s3634_s11 = sld [smem:[#allocation40_spill]] }
 0x141   : > { %p3635_p4 = scmp.eq.s32.totalorder %s3634_s11, 0 }
 0x143   : > { %2648 = dma.done.wait (%p3635_p4), [#allocation12], 2080   ;;  %p3636_p2 = pmov %p3635_p4 }
 0x144   : > { %s663_s16 = sand.u32 1, %s3634_s11   ;;  %s2130_s2 = smul.u32 320, %s646_s8 }
 0x145   : > { %2650 = vsyncadd (%p3636_p2), [#allocation12], 4294965216  ;;  %s664_s26 = scalar_lea.sflag [#allocation15], %s663_s16 }
 0x146   : > { %s3241_s22 = scalar_lea.vmem [#allocation14], %s2130_s2 }
 0x147   : > { %2652 = dma.done.wait (%p3633_p13), %s664_s26, 5120  }
 0x148   : > { %2654 = vsyncadd (%p3633_p13), %s664_s26, 4294962176  ;;  %p3637_p6 = pmov %p3636_p2 }
 0x149   : > { %p3638_p5 = pmov %p3636_p2 }
 0x14a   : > { %2656 = dma.done.wait (%p3637_p6), [#allocation15], 1024  }
 0x14b   : > { %2658 = vsyncadd (%p3638_p5), [#allocation15], 4294966272  ;;  %s2131_s28 = smul.u32 160, %s646_s8  ;;  %s677_s12 = scalar_lea.sflag [#allocation18], %s663_s16 }
 0x14d   : > { %s3251_s30 = scalar_lea.vmem [#allocation17], %s2131_s28 }
 0x14e   : > { %2660 = dma.done.wait (%p3633_p13), %s677_s12, 2560  }
 0x14f   : > { %2662 = vsyncadd (%p3633_p13), %s677_s12, 4294964736  ;;  %p3639_p10 = pmov %p3636_p2 }
 0x150   : > { %p3640_p7 = pmov %p3636_p2 }
 0x151   : > { %2664 = dma.done.wait (%p3639_p10), [#allocation18], 1024  }
 0x152   : > { %2666 = vsyncadd (%p3640_p7), [#allocation18], 4294966272  ;;  %s690_s29 = scalar_lea.sflag [#allocation21], %s646_s8  ;;  %s3261_s3 = scalar_lea.vmem [#allocation20], %s1901_s15 }
 0x153   : > { %2668 = dma.done.wait (%p3633_p13), %s690_s29, 2048  }
 0x154   : > { %2670 = vsyncadd (%p3633_p13), %s690_s29, 4294965248  ;;  %s3641_s5 = sld [smem:[#allocation37_spill]]  ;;  %s3642_s7 = sld [smem:[#allocation33_spill]] }
 0x155   : > { %s3643_s18 = sld [smem:[#allocation36_spill]]  ;;  %s3644_s28 = sld [smem:[#allocation50_spill]] }
 0x156   : > { %s3646_s14 = sld [smem:[#allocation56_spill]]  ;;  %s3647_s4 = sld [smem:[#allocation60_spill]] }
 0x157   : > { %s3648_s20 = sld [smem:[#allocation64_spill]] }
 0x15a   : > { %s1913_s6 = sshll.u32 %s3641_s5, 7  ;;  %s3565_s13 = sand.u32 1, %s3642_s7  }
 0x15b   : > { %s3269_s19 = sld [smem:[#allocation7 + %s1913_s6]]  ;;  %s806_s27 = sadd.s32 1, %s1913_s6 }
 0x15c   : > { %s3271_s21 = sld [smem:[#allocation7 + %s806_s27]]  ;;  %s809_s8 = sadd.s32 2, %s1913_s6 }
 0x15d   : > { %s3273_s15 = sld [smem:[#allocation7 + %s809_s8]]  ;;  %s1907_s11 = sshll.u32 %s3565_s13, 4 }
 0x15e   : > { %p775_p0 = scmp.lt.s32.totalorder %s3641_s5, 1  ;;  %s3279_s9 = sshll.u32 %s3643_s18, 1 }
 0x15f   : > { %p786_p3 = scmp.lt.s32.totalorder %s3279_s9, 5  ;;  %s3645_s6 = sld [smem:[#allocation51_spill]] }
 0x160   : > { %s3681_s5 = smov (!%p775_p0, %s3641_s5), 1  ;;  %s3308_s29 = scalar_lea.vmem [#allocation22], %s1907_s11 }
 0x161   : > { %s1908_s16 = sshll.u32 %s3681_s5, 3  ;;  %p1914_p8 = scmp.ne.s32.totalorder %s3643_s18, 0 }
 0x162   : > { %s3286_s12 = scalar_lea.vmem %s3644_s28, %s1908_s16  ;;  %v817_v0 = vld [vmem:[#allocation19] sm:$0xff] (!%p1914_p8)  ;;  %v818_v1 = vld [vmem:[#allocation19 + $0x8] sm:$0xff] (!%p1914_p8)  ;;  %v819_v2 = vld [vmem:[#allocation19 + $0x10] sm:$0xff] (!%p1914_p8)  ;;  %v2733_v3 = vmov (!%p1914_p8), 0.0|0.0   ;;  %vm2734_vm0 = vmmov (!%p1914_p8), 0   ;;  %v2735_v6 = vmov (!%p1914_p8), 0.0  }
 0x163   : > { %s3294_s7 = scalar_select %p786_p3, %s3279_s9, 5 }
 0x164   : > { %815 = sbr.rel (%p1914_p8) target bundleno = 1052 (0x41c), region = 116  ;;  %1996 = vmatprep.subr.bf16.mxu0 (!%p1914_p8), %v2733_v3  ;;  %v1997_v4 = vpack.c.bf16 (!%p1914_p8), %v818_v1, %v817_v0  ;;  %v820_v5 = vld [vmem:[#allocation19 + $0x18] sm:$0xff] (!%p1914_p8)  ;;  %1974 = vmatprep.mubr.msk.f32.mxu0 (!%p1914_p8), %vm2734_vm0, %v2735_v6  ;;  %v821_v8 = vld [vmem:[#allocation19 + $0x20] sm:$0xff] (!%p1914_p8)  ;;  %v822_v9 = vld [vmem:[#allocation19 + $0x28] sm:$0xff] (!%p1914_p8)  ;;  %vm832_vm1 = vcmask (!%p1914_p8), 523264   ;;  %p1917_p11 = scmp.le.s32.totalorder (!%p1914_p8), %s3271_s21, 0 }
 0x165   : > { %s3291_s8 = scalar_lea.vmem %s3645_s6, %s1908_s16  ;;  %s788_s24 = scalar_lea.vmem %s3646_s14, %s3294_s7  ;;  %v2000_v7 = vpack.c.bf16 (!%p1914_p8), %v820_v5, %v819_v2  ;;  %v2003_v10 = vpack.c.bf16 (!%p1914_p8), %v822_v9, %v821_v8  ;;  %v823_v11 = vld [vmem:[#allocation19 + $0x30] sm:$0xff] (!%p1914_p8)  ;;  %v824_v12 = vld [vmem:[#allocation19 + $0x38] sm:$0xff] (!%p1914_p8) }
 0x166   : > { %s794_s2 = scalar_lea.vmem %s3647_s4, %s3294_s7  ;;  %s800_s0 = scalar_lea.vmem %s3648_s20, %s3294_s7  ;;  %1998 = vmatpush3.bf16.msra.mxu0 (!%p1914_p8), %v1997_v4  ;;  %v2006_v13 = vpack.c.bf16 (!%p1914_p8), %v824_v12, %v823_v11  ;;  %v3312_v14 = vld [vmem:[%s3286_s12] sm:$0xff] (!%p1914_p8) }
 0x167   : > { %1999 = vmatprep.subr.bf16.mxu0 (!%p1914_p8), %v2733_v3  ;;  %s3649_s20 = sld [smem:[#allocation62_spill]] (!%p1914_p8) }
 0x16a   : > { %2001 = vmatpush3.bf16.msra.mxu0 (!%p1914_p8), %v2000_v7 }
 0x16b   : > { %2002 = vmatprep.subr.bf16.mxu0 %v2733_v3  ;;  %v916_v24 = vld [vmem:[#allocation11 + $0x8] sm:$0xff] (!%p1917_p11)  ;;  %v918_v25 = vld [vmem:[#allocation11 + $0x18] sm:$0xff] (!%p1917_p11)  ;;  %v915_v26 = vld [vmem:[#allocation11] sm:$0xff] (!%p1917_p11)  ;;  %v2736_v31 = vmov (!%p1917_p11), 0.0   ;;  %v933_v49 = vlaneseq (!%p1917_p11)  ;;  %vm1025_vm2 = vcmask (!%p1917_p11), 261120  }
 0x16c   : > { %v2008_v27 = vpack.c.bf16 (!%p1917_p11), %v918_v25, %v916_v24  ;;  %v917_v28 = vld [vmem:[#allocation11 + $0x10] sm:$0xff] (!%p1917_p11)  ;;  %v920_v29 = vld [vmem:[#allocation11 + $0x28] sm:$0xff] (!%p1917_p11)  ;;  %v922_v30 = vld [vmem:[#allocation11 + $0x38] sm:$0xff] (!%p1917_p11) }
 0x16d   : > { %v1915_v15 = vld [vmem:[%s3649_s20] ss:$0 sm:$0xff]  ;;  %v2010_v32 = vpack.c.bf16 (!%p1917_p11), %v917_v28, %v915_v26  ;;  %v2012_v33 = vpack.c.bf16 (!%p1917_p11), %v922_v30, %v920_v29  ;;  %v919_v34 = vld [vmem:[#allocation11 + $0x20] sm:$0xff] (!%p1917_p11)  ;;  %v924_v36 = vld [vmem:[#allocation11 + $0x48] sm:$0xff] (!%p1917_p11)  ;;  %v934_v50 = vshrl.u32 (!%p1917_p11), %v933_v49, 7 }
 0x16e   : > { %2004 = vmatpush3.bf16.msra.mxu0 %v2003_v10  ;;  %v921_v35 = vld [vmem:[#allocation11 + $0x30] sm:$0xff] (!%p1917_p11)  ;;  %v926_v37 = vld [vmem:[#allocation11 + $0x58] sm:$0xff] (!%p1917_p11)  ;;  %v923_v40 = vld [vmem:[#allocation11 + $0x40] sm:$0xff] (!%p1917_p11) }
 0x16f   : > { %2005 = vmatprep.subr.bf16.mxu0 %v2733_v3  ;;  %v2014_v38 = vpack.c.bf16 (!%p1917_p11), %v921_v35, %v919_v34  ;;  %v2016_v39 = vpack.c.bf16 (!%p1917_p11), %v926_v37, %v924_v36  ;;  %v925_v41 = vld [vmem:[#allocation11 + $0x50] sm:$0xff] (!%p1917_p11)  ;;  %v928_v42 = vld [vmem:[#allocation11 + $0x68] sm:$0xff] (!%p1917_p11)  ;;  %v930_v43 = vld [vmem:[#allocation11 + $0x78] sm:$0xff] (!%p1917_p11)  ;;  %v935_v51 = vsub.s32 (!%p1917_p11), 0, %v934_v50  ;;  %v939_v53 = vsub.s32 (!%p1917_p11), 1, %v934_v50 }
 0x170   : > { %v2018_v44 = vpack.c.bf16 (!%p1917_p11), %v925_v41, %v923_v40  ;;  %v2020_v45 = vpack.c.bf16 (!%p1917_p11), %v930_v43, %v928_v42  ;;  %v927_v46 = vld [vmem:[#allocation11 + $0x60] sm:$0xff] (!%p1917_p11)  ;;  %v929_v47 = vld [vmem:[#allocation11 + $0x70] sm:$0xff] (!%p1917_p11) }
 0x171   : > { %v2022_v48 = vpack.c.bf16 (!%p1917_p11), %v929_v47, %v927_v46  ;;  %v931_v52 = vld [vmem:[#allocation13] sm:$0x3] (!%p1917_p11) }
 0x172   : > { %2007 = vmatpush3.bf16.msra.mxu0 %v2006_v13  ;;  %v936_v54 = vrot.slane (!%p1917_p11), %v931_v52, %v935_v51  ;;  %v940_v55 = vrot.slane (!%p1917_p11), %v931_v52, %v939_v53 }
 0x173   : > { %2009 = vmatprep.subr.bf16.mxu0 (!%p1917_p11), %v2008_v27 }
 0x175   : > { %1975 = vmatmul.mubr.msk.f32.vlgmr.msra.gmra.mrb[0].mxu0 %vm832_vm1, %v3312_v14 }
 0x176   : > { %1007 = vmatprep.mubr.f32.mxu0 (!%p1917_p11), %v2736_v31  ;;  %2011 = vmatpush1.bf16.msra.mxu0 (!%p1917_p11), %v2010_v32 }
 0x177   : > { %2013 = vmatprep.subr.bf16.mxu0 (!%p1917_p11), %v2012_v33 }
 0x17a   : > { %2015 = vmatpush1.bf16.msra.mxu0 (!%p1917_p11), %v2014_v38 }
 0x17b   : > { %2017 = vmatprep.subr.bf16.mxu0 (!%p1917_p11), %v2016_v39 }
 0x17e   : > { %2019 = vmatpush1.bf16.msra.mxu0 (!%p1917_p11), %v2018_v44 }
 0x17f   : > { %2021 = vmatprep.subr.bf16.mxu0 (!%p1917_p11), %v2020_v45 }
 0x182   : > { %2023 = vmatpush1.bf16.msra.mxu0 (!%p1917_p11), %v2022_v48 }
 0x248   : > { %v902_v16 = vpop.f32.mrb[0].mxu0 }
 0x249   : > { %v903_v17 = vadd.f32 %v1915_v15, %v902_v16  ;;  %v1976_v18 = vpop.f32.mrb[1].mxu0  ;;  %1918 = vmatmul.mubr.msk.f32.vlgmr.msra.gmra.mrb[0].mxu0 (!%p1917_p11), %vm832_vm1, %v3312_v14 }
 0x24b   : > { %v907_v19 = vmul.f32 0.70710677, %v903_v17  ;;  %v906_v21 = vmul.f32 0.5, %v903_v17 }
 0x24d   : > { %2310 = verf.f32 %v907_v19 }
 0x256   : > { %914 = sbr.rel (%p1917_p11) target bundleno = 818 (0x332), region = 120 }
 0x257   : > { %v2311_v20 = vpop.eup %2310 }
 0x258   : > { %v909_v22 = vadd.f32 1.0, %v2311_v20 }
 0x25a   : > { %v910_v23 = vmul.f32 %v909_v22, %v906_v21 }
 0x25c   : > { %911 = vst.msk [vmem:[#allocation4] sm:$0xff] %vm832_vm1, %v910_v23 }
 0x31c   : > { %v1009_v56 = vpop.f32.mrb[0].mxu0 }
 0x31d   : > { %v1010_v57 = vadd.f32 %v1009_v56, %v936_v54  ;;  %v1011_v58 = vpop.f32.mrb[1].mxu0 }
 0x31e   : > { %v1012_v59 = vadd.f32 %v1011_v58, %v940_v55 }
 0x31f   : > { %v1016_v60 = vmul.f32 0.70710677, %v1010_v57  ;;  %v1014_v0 = vmul.f32 0.5, %v1010_v57 }
 0x320   : > { %v1017_v61 = vmul.f32 0.70710677, %v1012_v59  ;;  %v1015_v2 = vmul.f32 0.5, %v1012_v59 }
 0x321   : > { %2312 = verf.f32 %v1016_v60 }
 0x322   : > { %2314 = verf.f32 %v1017_v61 }
 0x32b   : > { %v2313_v62 = vpop.eup %2312 }
 0x32c   : > { %v2315_v63 = vpop.eup %2314  ;;  %v1020_v1 = vadd.f32 1.0, %v2313_v62 }
 0x32d   : > { %v1021_v3 = vadd.f32 1.0, %v2315_v63 }
 0x32e   : > { %v1022_v4 = vmul.f32 %v1020_v1, %v1014_v0 }
 0x32f   : > { %v1023_v5 = vmul.f32 %v1021_v3, %v1015_v2 }
 0x330   : > { %1024 = vst [vmem:[#allocation2] sm:$0xff] %v1022_v4 }
 0x331   : > { %1026 = vst.msk [vmem:[#allocation2 + $0x8] sm:$0xff] %vm1025_vm2, %v1023_v5 }
 0x332 PF: > { %p1919_p1 = scmp.le.s32.totalorder %s3269_s19, 0 }
 0x333   : > { %v1030_v6 = vld [vmem:[#allocation16] sm:$0xff] (!%p1919_p1)  ;;  %v1031_v7 = vld [vmem:[#allocation16 + $0x8] sm:$0xff] (!%p1919_p1)  ;;  %v1032_v8 = vld [vmem:[#allocation16 + $0x10] sm:$0xff] (!%p1919_p1)  ;;  %v2737_v9 = vmov (!%p1919_p1), 0.0|0.0   ;;  %vm2738_vm3 = vmmov (!%p1919_p1), 0   ;;  %v2739_v12 = vmov (!%p1919_p1), 0.0  }
 0x334   : > { %1029 = sbr.rel (%p1919_p1) target bundleno = 1052 (0x41c), region = 124  ;;  %2024 = vmatprep.subr.bf16.mxu0 (!%p1919_p1), %v2737_v9  ;;  %v2025_v10 = vpack.c.bf16 (!%p1919_p1), %v1031_v7, %v1030_v6  ;;  %v1033_v11 = vld [vmem:[#allocation16 + $0x18] sm:$0xff] (!%p1919_p1)  ;;  %1993 = vmatprep.mubr.msk.f32.mxu0 (!%p1919_p1), %vm2738_vm3, %v2739_v12  ;;  %v1034_v15 = vld [vmem:[#allocation16 + $0x20] sm:$0xff] (!%p1919_p1)  ;;  %v1035_v16 = vld [vmem:[#allocation16 + $0x28] sm:$0xff] (!%p1919_p1)  ;;  %s3650_s18 = sld [smem:[#allocation58_spill]] (!%p1919_p1)  ;;  %vm1115_vm4 = vcmask (!%p1919_p1), 654336  }
 0x335   : > { %v2028_v13 = vpack.c.bf16 (!%p1919_p1), %v1033_v11, %v1032_v8  ;;  %v2031_v17 = vpack.c.bf16 (!%p1919_p1), %v1035_v16, %v1034_v15  ;;  %v1036_v18 = vld [vmem:[#allocation16 + $0x30] sm:$0xff] (!%p1919_p1)  ;;  %v1037_v19 = vld [vmem:[#allocation16 + $0x38] sm:$0xff] (!%p1919_p1) }
 0x336   : > { %2026 = vmatpush3.bf16.msra.mxu0 (!%p1919_p1), %v2025_v10  ;;  %v2034_v20 = vpack.c.bf16 (!%p1919_p1), %v1037_v19, %v1036_v18 }
 0x337   : > { %2027 = vmatprep.subr.bf16.mxu0 (!%p1919_p1), %v2737_v9 }
 0x33a   : > { %2029 = vmatpush3.bf16.msra.mxu0 (!%p1919_p1), %v2028_v13  ;;  %v1920_v21 = vld [vmem:[%s3650_s18] ss:$0 sm:$0xff] (!%p1919_p1) }
 0x33b   : > { %2030 = vmatprep.subr.bf16.mxu0 %v2737_v9 }
 0x33e   : > { %2032 = vmatpush3.bf16.msra.mxu0 %v2031_v17 }
 0x33f   : > { %2033 = vmatprep.subr.bf16.mxu0 %v2737_v9 }
 0x342   : > { %2035 = vmatpush3.bf16.msra.mxu0 %v2034_v20 }
 0x345   : > { %1994 = vmatmul.mubr.msk.f32.vlgmr.msra.gmra.mrb[0].mxu0 %vm832_vm1, %v3312_v14 }
 0x418   : > { %v1111_v22 = vpop.f32.mrb[0].mxu0 }
 0x419   : > { %v1112_v23 = vadd.f32 %v1920_v21, %v1111_v22  ;;  %v1995_v24 = vpop.f32.mrb[1].mxu0 }
 0x41b   : > { %1116 = vst.msk [vmem:[#allocation3] sm:$0xff] %vm1115_vm4, %v1112_v23 }
 0x41c PF: > { %v3330_v25 = vld [vmem:[%s3291_s8] sm:$0xff]  ;;  %v2740_v26 = vmov 0.0   ;;  %p1922_p12 = scmp.le.s32.totalorder %s3273_s15, 0 }
 0x41d   : > { %1118 = vst [vmem:[#allocation5] sm:$0xff] %v2740_v26  ;;  %1119 = vst [vmem:[#allocation5 + $0x8] sm:$0xff] %v2740_v26  ;;  %v1125_v14 = vld [vmem:[%s3230_s1 + $0x8] sm:$0xff] (!%p1922_p12)  ;;  %v1127_v27 = vld [vmem:[%s3230_s1 + $0x18] sm:$0xff] (!%p1922_p12)  ;;  %v2741_v33 = vmov (!%p1922_p12), 0.0   ;;  %v2742_v34 = vmov (!%p1922_p12), 0  }
 0x41e   : > { %1122 = sbr.rel (%p1922_p12) target bundleno = 1289 (0x509), region = 128  ;;  %v1124_v28 = vld [vmem:[%s3230_s1] sm:$0xff] (!%p1922_p12)  ;;  %v2036_v29 = vpack.c.bf16 (!%p1922_p12), %v1127_v27, %v1125_v14  ;;  %v1126_v30 = vld [vmem:[%s3230_s1 + $0x10] sm:$0xff] (!%p1922_p12)  ;;  %v1129_v31 = vld [vmem:[%s3230_s1 + $0x28] sm:$0xff] (!%p1922_p12)  ;;  %1208 = vmatprep.mubr.f32.mxu0 (!%p1922_p12), %v2741_v33  ;;  %2316 = vset.pattern.permute.xlu0 (!%p1922_p12), %v2742_v34  ;;  %vm1217_vm5 = vcmp.eq.s32.totalorder (!%p1922_p12), %v3330_v25, 2  ;;  %vm1140_vm6 = vcmask (!%p1922_p12), 523264  }
 0x41f   : > { %v1131_v32 = vld [vmem:[%s3230_s1 + $0x38] sm:$0xff] (!%p1922_p12)  ;;  %v2038_v35 = vpack.c.bf16 (!%p1922_p12), %v1126_v30, %v1124_v28  ;;  %v1128_v37 = vld [vmem:[%s3230_s1 + $0x20] sm:$0xff] (!%p1922_p12)  ;;  %v1130_v38 = vld [vmem:[%s3230_s1 + $0x30] sm:$0xff] (!%p1922_p12)  ;;  %v1218_v40 = vsel (!%p1922_p12), %vm1217_vm5, 1, %v2742_v34 }
 0x420   : > { %v2040_v36 = vpack.c.bf16 (!%p1922_p12), %v1131_v32, %v1129_v31  ;;  %v1133_v39 = vld [vmem:[%s3230_s1 + $0x48] sm:$0xff] (!%p1922_p12)  ;;  %2037 = vmatprep.subr.bf16.mxu0 (!%p1922_p12), %v2036_v29  ;;  %v1135_v41 = vld [vmem:[%s3230_s1 + $0x58] sm:$0xff] (!%p1922_p12)  ;;  %1220 = vperm.xlu0 (!%p1922_p12), %2316, %v1218_v40   ;;  %v2042_v42 = vpack.c.bf16 (!%p1922_p12), %v1130_v38, %v1128_v37  ;;  %v1132_v44 = vld [vmem:[%s3230_s1 + $0x40] sm:$0xff] (!%p1922_p12) }
 0x421   : > { %2039 = vmatpush1.bf16.msra.mxu0 (!%p1922_p12), %v2038_v35  ;;  %v2044_v43 = vpack.c.bf16 (!%p1922_p12), %v1135_v41, %v1133_v39  ;;  %v1134_v45 = vld [vmem:[%s3230_s1 + $0x50] sm:$0xff] (!%p1922_p12)  ;;  %v1137_v46 = vld [vmem:[%s3230_s1 + $0x68] sm:$0xff] (!%p1922_p12)  ;;  %v1139_v47 = vld [vmem:[%s3230_s1 + $0x78] sm:$0xff] (!%p1922_p12) }
 0x422   : > { %2041 = vmatprep.subr.bf16.mxu0 (!%p1922_p12), %v2040_v36  ;;  %v2046_v48 = vpack.c.bf16 (!%p1922_p12), %v1134_v45, %v1132_v44  ;;  %v2048_v49 = vpack.c.bf16 (!%p1922_p12), %v1139_v47, %v1137_v46  ;;  %v1136_v50 = vld [vmem:[%s3230_s1 + $0x60] sm:$0xff] (!%p1922_p12)  ;;  %v1138_v51 = vld [vmem:[%s3230_s1 + $0x70] sm:$0xff] (!%p1922_p12) }
 0x423   : > { %v2050_v52 = vpack.c.bf16 (!%p1922_p12), %v1138_v51, %v1136_v50  ;;  %v1123_v53 = vld [vmem:[%s3286_s12] sm:$0xff] (!%p1922_p12) }
 0x424   : > { %v1215_v55 = vld [vmem:[#allocation5] sm:$0xff] (!%p1922_p12)  ;;  %v1216_v57 = vld [vmem:[#allocation5 + $0x8] sm:$0xff] (!%p1922_p12) }
 0x425   : > { %2043 = vmatpush1.bf16.msra.mxu0 %v2042_v42 }
 0x426   : > { %2045 = vmatprep.subr.bf16.mxu0 %v2044_v43 }
 0x429   : > { %2047 = vmatpush1.bf16.msra.mxu0 %v2046_v48 }
 0x42a   : > { %2049 = vmatprep.subr.bf16.mxu0 %v2048_v49 }
 0x42d   : > { %2051 = vmatpush1.bf16.msra.mxu0 %v2050_v52 }
 0x430   : > { %1923 = vmatmul.mubr.msk.f32.vlgmr.msra.gmra.mrb[0].mxu0 %vm1140_vm6, %v1123_v53 }
 0x49f   : > { %v1221_v54 = vpop.permute.xlu0 %1220 }
 0x4a0   : > { %vm1222_vm7 = vcmp.eq.s32.totalorder %v1221_v54, 1 }
 0x503   : > { %v1210_v56 = vpop.f32.mrb[0].mxu0 }
 0x504   : > { %v1223_v58 = vsel %vm1222_vm7, %v1210_v56, 0.0  ;;  %v1212_v59 = vpop.f32.mrb[1].mxu0 }
 0x505   : > { %v1225_v60 = vadd.f32 %v1223_v58, %v1215_v55  ;;  %v1224_v61 = vsel %vm1222_vm7, %v1212_v59, 0.0 }
 0x506   : > { %v1226_v62 = vadd.f32 %v1224_v61, %v1216_v57 }
 0x507   : > { %1227 = vst [vmem:[#allocation5] sm:$0xff] %v1225_v60 }
 0x508   : > { %1228 = vst [vmem:[#allocation5 + $0x8] sm:$0xff] %v1226_v62 }
 0x509 PF: > { %p1924_p9 = scmp.le.s32.totalorder %s3271_s21, 0 }
 0x50a   : > { %v1235_v63 = vld [vmem:[%s3241_s22 + $0x8] sm:$0xff] (!%p1924_p9)  ;;  %v1237_v0 = vld [vmem:[%s3241_s22 + $0x18] sm:$0xff] (!%p1924_p9)  ;;  %v1234_v1 = vld [vmem:[%s3241_s22] sm:$0xff] (!%p1924_p9)  ;;  %vm1363_vm8 = vcmp.eq.s32.totalorder (!%p1924_p9), %v3330_v25, 1  ;;  %v2743_v6 = vmov (!%p1924_p9), 0   ;;  %vm1286_vm9 = vcmask (!%p1924_p9), 261120  }
 0x50b   : > { %1231 = sbr.rel (%p1924_p9) target bundleno = 1552 (0x610), region = 132  ;;  %v2052_v2 = vpack.c.bf16 (!%p1924_p9), %v1237_v0, %v1235_v63  ;;  %v1236_v3 = vld [vmem:[%s3241_s22 + $0x10] sm:$0xff] (!%p1924_p9)  ;;  %v1239_v4 = vld [vmem:[%s3241_s22 + $0x28] sm:$0xff] (!%p1924_p9)  ;;  %v1241_v5 = vld [vmem:[%s3241_s22 + $0x38] sm:$0xff] (!%p1924_p9)  ;;  %2317 = vset.pattern.permute.xlu0 (!%p1924_p9), %v2743_v6  ;;  %v1364_v7 = vsel (!%p1924_p9), %vm1363_vm8, 1, %v2743_v6 }
 0x50c   : > { %v2054_v8 = vpack.c.bf16 (!%p1924_p9), %v1236_v3, %v1234_v1  ;;  %v2056_v9 = vpack.c.bf16 (!%p1924_p9), %v1241_v5, %v1239_v4  ;;  %v1238_v10 = vld [vmem:[%s3241_s22 + $0x20] sm:$0xff] (!%p1924_p9)  ;;  %v1240_v11 = vld [vmem:[%s3241_s22 + $0x30] sm:$0xff] (!%p1924_p9)  ;;  %v1243_v12 = vld [vmem:[%s3241_s22 + $0x48] sm:$0xff] (!%p1924_p9)  ;;  %1366 = vperm.xlu0 (!%p1924_p9), %2317, %v1364_v7   ;;  %v1276_v1 = vlaneseq (!%p1924_p9) }
 0x50d   : > { %2053 = vmatprep.subr.bf16.mxu0 (!%p1924_p9), %v2052_v2  ;;  %v1245_v13 = vld [vmem:[%s3241_s22 + $0x58] sm:$0xff] (!%p1924_p9)  ;;  %v2058_v15 = vpack.c.bf16 (!%p1924_p9), %v1240_v11, %v1238_v10  ;;  %v1242_v17 = vld [vmem:[%s3241_s22 + $0x40] sm:$0xff] (!%p1924_p9)  ;;  %v1244_v18 = vld [vmem:[%s3241_s22 + $0x50] sm:$0xff] (!%p1924_p9) }
 0x50e   : > { %2055 = vmatpush1.bf16.msra.mxu0 (!%p1924_p9), %v2054_v8  ;;  %v2060_v16 = vpack.c.bf16 (!%p1924_p9), %v1245_v13, %v1243_v12  ;;  %v1247_v19 = vld [vmem:[%s3241_s22 + $0x68] sm:$0xff] (!%p1924_p9)  ;;  %v1249_v20 = vld [vmem:[%s3241_s22 + $0x78] sm:$0xff] (!%p1924_p9)  ;;  %v2062_v21 = vpack.c.bf16 (!%p1924_p9), %v1244_v18, %v1242_v17  ;;  %v1246_v23 = vld [vmem:[%s3241_s22 + $0x60] sm:$0xff] (!%p1924_p9)  ;;  %v1277_v2 = vshrl.u32 (!%p1924_p9), %v1276_v1, 7 }
 0x50f   : > { %2057 = vmatprep.subr.bf16.mxu0 (!%p1924_p9), %v2056_v9  ;;  %v2064_v22 = vpack.c.bf16 (!%p1924_p9), %v1249_v20, %v1247_v19  ;;  %v1248_v24 = vld [vmem:[%s3241_s22 + $0x70] sm:$0xff] (!%p1924_p9)  ;;  %v1251_v14 = vld [vmem:[%s3241_s22 + $0x88] sm:$0xff] (!%p1924_p9)  ;;  %v1253_v27 = vld [vmem:[%s3241_s22 + $0x98] sm:$0xff] (!%p1924_p9) }
 0x510   : > { %v2066_v28 = vpack.c.bf16 (!%p1924_p9), %v1248_v24, %v1246_v23  ;;  %v2068_v29 = vpack.c.bf16 (!%p1924_p9), %v1253_v27, %v1251_v14  ;;  %v1250_v30 = vld [vmem:[%s3241_s22 + $0x80] sm:$0xff] (!%p1924_p9)  ;;  %v1252_v31 = vld [vmem:[%s3241_s22 + $0x90] sm:$0xff] (!%p1924_p9)  ;;  %v1255_v33 = vld [vmem:[%s3241_s22 + $0xa8] sm:$0xff] (!%p1924_p9)  ;;  %v1278_v3 = vsub.s32 (!%p1924_p9), 0, %v1277_v2  ;;  %v1282_v5 = vsub.s32 (!%p1924_p9), 1, %v1277_v2 }
 0x511   : > { %v1233_v32 = vld [vmem:[#allocation2 + $0x8] sm:$0xff] (!%p1924_p9)  ;;  %v2070_v35 = vpack.c.bf16 (!%p1924_p9), %v1252_v31, %v1250_v30  ;;  %v1254_v37 = vld [vmem:[%s3241_s22 + $0xa0] sm:$0xff] (!%p1924_p9)  ;;  %v1259_v39 = vld [vmem:[%s3241_s22 + $0xc8] sm:$0xff] (!%p1924_p9) }
 0x512   : > { %2059 = vmatpush1.bf16.msra.mxu0 %v2058_v15  ;;  %v1257_v34 = vld [vmem:[%s3241_s22 + $0xb8] sm:$0xff]  ;;  %1925 = vmatprep.mubr.msk.f32.mxu0 %vm1286_vm9, %v1233_v32  ;;  %v1256_v38 = vld [vmem:[%s3241_s22 + $0xb0] sm:$0xff]  ;;  %v1258_v43 = vld [vmem:[%s3241_s22 + $0xc0] sm:$0xff] }
 0x513   : > { %2061 = vmatprep.subr.bf16.mxu0 %v2060_v16  ;;  %v2072_v36 = vpack.c.bf16 %v1257_v34, %v1255_v33  ;;  %v1261_v40 = vld [vmem:[%s3241_s22 + $0xd8] sm:$0xff]  ;;  %v2074_v41 = vpack.c.bf16 %v1256_v38, %v1254_v37  ;;  %v1260_v44 = vld [vmem:[%s3241_s22 + $0xd0] sm:$0xff]  ;;  %v1263_v45 = vld [vmem:[%s3241_s22 + $0xe8] sm:$0xff] }
 0x514   : > { %v2076_v42 = vpack.c.bf16 %v1261_v40, %v1259_v39  ;;  %v1265_v46 = vld [vmem:[%s3241_s22 + $0xf8] sm:$0xff]  ;;  %v2078_v47 = vpack.c.bf16 %v1260_v44, %v1258_v43  ;;  %v1262_v49 = vld [vmem:[%s3241_s22 + $0xe0] sm:$0xff]  ;;  %v1264_v50 = vld [vmem:[%s3241_s22 + $0xf0] sm:$0xff] }
 0x515   : > { %v2080_v48 = vpack.c.bf16 %v1265_v46, %v1263_v45  ;;  %v1267_v51 = vld [vmem:[%s3241_s22 + $0x108] sm:$0xff]  ;;  %v1269_v52 = vld [vmem:[%s3241_s22 + $0x118] sm:$0xff]  ;;  %v2082_v53 = vpack.c.bf16 %v1264_v50, %v1262_v49  ;;  %v1266_v55 = vld [vmem:[%s3241_s22 + $0x100] sm:$0xff] }
 0x516   : > { %2063 = vmatpush1.bf16.msra.mxu0 %v2062_v21  ;;  %v2084_v54 = vpack.c.bf16 %v1269_v52, %v1267_v51  ;;  %v1268_v56 = vld [vmem:[%s3241_s22 + $0x110] sm:$0xff]  ;;  %v1271_v57 = vld [vmem:[%s3241_s22 + $0x128] sm:$0xff]  ;;  %v1273_v58 = vld [vmem:[%s3241_s22 + $0x138] sm:$0xff] }
 0x517   : > { %2065 = vmatprep.subr.bf16.mxu0 %v2064_v22  ;;  %v2086_v59 = vpack.c.bf16 %v1268_v56, %v1266_v55  ;;  %v2088_v60 = vpack.c.bf16 %v1273_v58, %v1271_v57  ;;  %v1270_v61 = vld [vmem:[%s3241_s22 + $0x120] sm:$0xff]  ;;  %v1272_v62 = vld [vmem:[%s3241_s22 + $0x130] sm:$0xff]  ;;  %v1274_v4 = vld [vmem:[%s788_s24] sm:$0x3] }
 0x518   : > { %v2090_v63 = vpack.c.bf16 %v1272_v62, %v1270_v61  ;;  %v1232_v0 = vld [vmem:[#allocation2] sm:$0xff]  ;;  %v1279_v6 = vrot.slane %v1274_v4, %v1278_v3  ;;  %v1283_v8 = vrot.slane %v1274_v4, %v1282_v5  ;;  %v1362_v15 = vld [vmem:[#allocation5 + $0x8] sm:$0xff] }
 0x519   : > { %v1361_v11 = vld [vmem:[#allocation5] sm:$0xff] }
 0x51a   : > { %2067 = vmatpush1.bf16.msra.mxu0 %v2066_v28 }
 0x51b   : > { %2069 = vmatprep.subr.bf16.mxu0 %v2068_v29 }
 0x51e   : > { %2071 = vmatpush1.bf16.msra.mxu0 %v2070_v35 }
 0x51f   : > { %2073 = vmatprep.subr.bf16.mxu0 %v2072_v36 }
 0x522   : > { %2075 = vmatpush1.bf16.msra.mxu0 %v2074_v41 }
 0x523   : > { %2077 = vmatprep.subr.bf16.mxu0 %v2076_v42 }
 0x526   : > { %2079 = vmatpush1.bf16.msra.mxu0 %v2078_v47 }
 0x527   : > { %2081 = vmatprep.subr.bf16.mxu0 %v2080_v48 }
 0x52a   : > { %2083 = vmatpush1.bf16.msra.mxu0 %v2082_v53 }
 0x52b   : > { %2085 = vmatprep.subr.bf16.mxu0 %v2084_v54 }
 0x52e   : > { %2087 = vmatpush1.bf16.msra.mxu0 %v2086_v59 }
 0x52f   : > { %2089 = vmatprep.subr.bf16.mxu0 %v2088_v60 }
 0x532   : > { %2091 = vmatpush1.bf16.msra.mxu0 %v2090_v63 }
 0x535   : > { %1355 = vmatmul.mubr.f32.vlgmr.msra.gmra.mrb[0].mxu0 %v1232_v0 }
 0x58b   : > { %v1367_v7 = vpop.permute.xlu0 %1366 }
 0x58c   : > { %vm1368_vm10 = vcmp.eq.s32.totalorder %v1367_v7, 1 }
 0x608   : > { %v1356_v9 = vpop.f32.mrb[0].mxu0 }
 0x609   : > { %v1357_v10 = vadd.f32 %v1356_v9, %v1279_v6  ;;  %v1358_v12 = vpop.f32.mrb[1].mxu0 }
 0x60a   : > { %v1359_v13 = vadd.f32 %v1358_v12, %v1283_v8 }
 0x60b   : > { %v1369_v16 = vsel %vm1368_vm10, %v1357_v10, 0.0 }
 0x60c   : > { %v1371_v17 = vadd.f32 %v1369_v16, %v1361_v11  ;;  %v1370_v18 = vsel %vm1368_vm10, %v1359_v13, 0.0 }
 0x60d   : > { %v1372_v19 = vadd.f32 %v1370_v18, %v1362_v15 }
 0x60e   : > { %1373 = vst [vmem:[#allocation5] sm:$0xff] %v1371_v17 }
 0x60f   : > { %1374 = vst [vmem:[#allocation5 + $0x8] sm:$0xff] %v1372_v19 }
 0x610 PF: > { %p1926_p13 = scmp.le.s32.totalorder %s3269_s19, 0 }
 0x611   : > { %v1380_v20 = vld [vmem:[%s3251_s30 + $0x8] sm:$0xff] (!%p1926_p13)  ;;  %v1382_v21 = vld [vmem:[%s3251_s30 + $0x18] sm:$0xff] (!%p1926_p13)  ;;  %v1379_v22 = vld [vmem:[%s3251_s30] sm:$0xff] (!%p1926_p13)  ;;  %v2744_v28 = vmov (!%p1926_p13), 0.0   ;;  %v2745_v29 = vmov (!%p1926_p13), 0   ;;  %vm1488_vm11 = vcmp.eq.s32.totalorder (!%p1926_p13), %v3330_v25, 0  ;;  %v1401_v54 = vlaneseq (!%p1926_p13) }
 0x612   : > { %1377 = sbr.rel (%p1926_p13) target bundleno = 1795 (0x703), region = 136  ;;  %v2092_v23 = vpack.c.bf16 (!%p1926_p13), %v1382_v21, %v1380_v20  ;;  %v1381_v24 = vld [vmem:[%s3251_s30 + $0x10] sm:$0xff] (!%p1926_p13)  ;;  %v1384_v14 = vld [vmem:[%s3251_s30 + $0x28] sm:$0xff] (!%p1926_p13)  ;;  %v1386_v27 = vld [vmem:[%s3251_s30 + $0x38] sm:$0xff] (!%p1926_p13)  ;;  %1479 = vmatprep.mubr.f32.mxu0 (!%p1926_p13), %v2744_v28  ;;  %2318 = vset.pattern.permute.xlu0 (!%p1926_p13), %v2745_v29  ;;  %v1489_v35 = vsel (!%p1926_p13), %vm1488_vm11, 1, %v2745_v29  ;;  %vm1411_vm12 = vcmask (!%p1926_p13), 654336  }
 0x613   : > { %v2094_v30 = vpack.c.bf16 (!%p1926_p13), %v1381_v24, %v1379_v22  ;;  %v2096_v31 = vpack.c.bf16 (!%p1926_p13), %v1386_v27, %v1384_v14  ;;  %v1383_v32 = vld [vmem:[%s3251_s30 + $0x20] sm:$0xff] (!%p1926_p13)  ;;  %v1385_v33 = vld [vmem:[%s3251_s30 + $0x30] sm:$0xff] (!%p1926_p13)  ;;  %v1388_v34 = vld [vmem:[%s3251_s30 + $0x48] sm:$0xff] (!%p1926_p13)  ;;  %1491 = vperm.xlu0 (!%p1926_p13), %2318, %v1489_v35   ;;  %v1402_v55 = vshrl.u32 (!%p1926_p13), %v1401_v54, 7 }
 0x614   : > { %2093 = vmatprep.subr.bf16.mxu0 (!%p1926_p13), %v2092_v23  ;;  %v1390_v36 = vld [vmem:[%s3251_s30 + $0x58] sm:$0xff] (!%p1926_p13)  ;;  %v2098_v37 = vpack.c.bf16 (!%p1926_p13), %v1385_v33, %v1383_v32  ;;  %v1387_v25 = vld [vmem:[%s3251_s30 + $0x40] sm:$0xff] (!%p1926_p13)  ;;  %v1389_v39 = vld [vmem:[%s3251_s30 + $0x50] sm:$0xff] (!%p1926_p13) }
 0x615   : > { %2095 = vmatpush1.bf16.msra.mxu0 (!%p1926_p13), %v2094_v30  ;;  %v2100_v38 = vpack.c.bf16 (!%p1926_p13), %v1390_v36, %v1388_v34  ;;  %v1392_v40 = vld [vmem:[%s3251_s30 + $0x68] sm:$0xff] (!%p1926_p13)  ;;  %v1394_v41 = vld [vmem:[%s3251_s30 + $0x78] sm:$0xff] (!%p1926_p13)  ;;  %v2102_v42 = vpack.c.bf16 (!%p1926_p13), %v1389_v39, %v1387_v25  ;;  %v1391_v44 = vld [vmem:[%s3251_s30 + $0x60] sm:$0xff] (!%p1926_p13)  ;;  %v1403_v56 = vsub.s32 (!%p1926_p13), 0, %v1402_v55  ;;  %v1407_v58 = vsub.s32 (!%p1926_p13), 1, %v1402_v55 }
 0x616   : > { %2097 = vmatprep.subr.bf16.mxu0 (!%p1926_p13), %v2096_v31  ;;  %v2104_v43 = vpack.c.bf16 (!%p1926_p13), %v1394_v41, %v1392_v40  ;;  %v1393_v45 = vld [vmem:[%s3251_s30 + $0x70] sm:$0xff] (!%p1926_p13)  ;;  %v1396_v46 = vld [vmem:[%s3251_s30 + $0x88] sm:$0xff] (!%p1926_p13)  ;;  %v1398_v47 = vld [vmem:[%s3251_s30 + $0x98] sm:$0xff] (!%p1926_p13) }
 0x617   : > { %v2106_v48 = vpack.c.bf16 (!%p1926_p13), %v1393_v45, %v1391_v44  ;;  %v2108_v49 = vpack.c.bf16 (!%p1926_p13), %v1398_v47, %v1396_v46  ;;  %v1395_v50 = vld [vmem:[%s3251_s30 + $0x80] sm:$0xff] (!%p1926_p13)  ;;  %v1397_v51 = vld [vmem:[%s3251_s30 + $0x90] sm:$0xff] (!%p1926_p13)  ;;  %v1399_v57 = vld [vmem:[%s794_s2] sm:$0x3] (!%p1926_p13) }
 0x618   : > { %v2110_v52 = vpack.c.bf16 (!%p1926_p13), %v1397_v51, %v1395_v50  ;;  %v1378_v53 = vld [vmem:[#allocation3] sm:$0xff] (!%p1926_p13)  ;;  %v1404_v59 = vrot.slane (!%p1926_p13), %v1399_v57, %v1403_v56  ;;  %v1408_v61 = vrot.slane (!%p1926_p13), %v1399_v57, %v1407_v58  ;;  %v1486_v0 = vld [vmem:[#allocation5] sm:$0xff] (!%p1926_p13)  ;;  %v1487_v3 = vld [vmem:[#allocation5 + $0x8] sm:$0xff] (!%p1926_p13) }
 0x619   : > { %2099 = vmatpush1.bf16.msra.mxu0 %v2098_v37 }
 0x61a   : > { %2101 = vmatprep.subr.bf16.mxu0 %v2100_v38 }
 0x61d   : > { %2103 = vmatpush1.bf16.msra.mxu0 %v2102_v42 }
 0x61e   : > { %2105 = vmatprep.subr.bf16.mxu0 %v2104_v43 }
 0x621   : > { %2107 = vmatpush1.bf16.msra.mxu0 %v2106_v48 }
 0x622   : > { %2109 = vmatprep.subr.bf16.mxu0 %v2108_v49 }
 0x625   : > { %2111 = vmatpush1.bf16.msra.mxu0 %v2110_v52 }
 0x628   : > { %1927 = vmatmul.mubr.msk.f32.vlgmr.msra.gmra.mrb[0].mxu0 %vm1411_vm12, %v1378_v53 }
 0x692   : > { %v1492_v60 = vpop.permute.xlu0 %1491 }
 0x693   : > { %vm1493_vm13 = vcmp.eq.s32.totalorder %v1492_v60, 1 }
 0x6fb   : > { %v1481_v62 = vpop.f32.mrb[0].mxu0 }
 0x6fc   : > { %v1482_v63 = vadd.f32 %v1481_v62, %v1404_v59  ;;  %v1483_v1 = vpop.f32.mrb[1].mxu0 }
 0x6fd   : > { %v1484_v2 = vadd.f32 %v1483_v1, %v1408_v61 }
 0x6fe   : > { %v1494_v4 = vsel %vm1493_vm13, %v1482_v63, 0.0 }
 0x6ff   : > { %v1496_v5 = vadd.f32 %v1494_v4, %v1486_v0  ;;  %v1495_v6 = vsel %vm1493_vm13, %v1484_v2, 0.0 }
 0x700   : > { %v1497_v7 = vadd.f32 %v1495_v6, %v1487_v3 }
 0x701   : > { %1498 = vst [vmem:[#allocation5] sm:$0xff] %v1496_v5 }
 0x702   : > { %1499 = vst [vmem:[#allocation5 + $0x8] sm:$0xff] %v1497_v7 }
 0x703 PF: > { %v1502_v8 = vld [vmem:[%s3261_s3 + $0x8] sm:$0xff]  ;;  %v1504_v9 = vld [vmem:[%s3261_s3 + $0x18] sm:$0xff]  ;;  %v1501_v10 = vld [vmem:[%s3261_s3] sm:$0xff]  ;;  %1597 = vmatprep.mubr.f32.mxu0 %v2740_v26  ;;  %vm1529_vm14 = vcmask 523264   ;;  %v1519_v34 = vlaneseq  ;;  %s3654_s16 = sld [smem:[#allocation37_spill]]  ;;  %s3656_s27 = sld [smem:[#allocation42_spill]] }
 0x704   : > { %v2112_v11 = vpack.c.bf16 %v1504_v9, %v1502_v8  ;;  %v1503_v12 = vld [vmem:[%s3261_s3 + $0x10] sm:$0xff]  ;;  %v1506_v13 = vld [vmem:[%s3261_s3 + $0x28] sm:$0xff]  ;;  %v1508_v15 = vld [vmem:[%s3261_s3 + $0x38] sm:$0xff]  ;;  %s1641_s8 = sshll.u32 %s3308_s29, 4  ;;  %s3657_s2 = sld [smem:[#allocation65_spill]]  ;;  %s3457_s8 = int_to_ptr.vmem [resolvable:$true] %s1641_s8 }
 0x705   : > { %v2114_v16 = vpack.c.bf16 %v1503_v12, %v1501_v10  ;;  %v2116_v17 = vpack.c.bf16 %v1508_v15, %v1506_v13  ;;  %v1505_v18 = vld [vmem:[%s3261_s3 + $0x20] sm:$0xff]  ;;  %v1507_v19 = vld [vmem:[%s3261_s3 + $0x30] sm:$0xff]  ;;  %v1510_v20 = vld [vmem:[%s3261_s3 + $0x48] sm:$0xff]  ;;  %v1520_v35 = vshrl.u32 %v1519_v34, 7  ;;  %s2569_s10 = scalar_lea.vmem %s3457_s8, 256  ;;  %s2746_s14 = smov [#allocation22]  }
 0x706   : > { %2113 = vmatprep.subr.bf16.mxu0 %v2112_v11  ;;  %v1512_v21 = vld [vmem:[%s3261_s3 + $0x58] sm:$0xff]  ;;  %v2118_v22 = vpack.c.bf16 %v1507_v19, %v1505_v18  ;;  %v1509_v23 = vld [vmem:[%s3261_s3 + $0x40] sm:$0xff]  ;;  %v1511_v24 = vld [vmem:[%s3261_s3 + $0x50] sm:$0xff]  ;;  %p2570_p4 = scmp.ne.s32.totalorder %s3457_s8, %s2569_s10  ;;  %s2573_s20 = sshll.u32 %s2746_s14, 4  ;;  %s2574_s20 = int_to_ptr.vmem [resolvable:$false] %s2573_s20 }
 0x707   : > { %2115 = vmatpush1.bf16.msra.mxu0 %v2114_v16  ;;  %v2120_v26 = vpack.c.bf16 %v1512_v21, %v1510_v20  ;;  %v1514_v14 = vld [vmem:[%s3261_s3 + $0x68] sm:$0xff]  ;;  %v1516_v27 = vld [vmem:[%s3261_s3 + $0x78] sm:$0xff]  ;;  %v2122_v28 = vpack.c.bf16 %v1511_v24, %v1509_v23  ;;  %v1513_v30 = vld [vmem:[%s3261_s3 + $0x60] sm:$0xff]  ;;  %v1521_v36 = vsub.s32 0, %v1520_v35  ;;  %v1525_v38 = vsub.s32 1, %v1520_v35  ;;  %s2575_s23 = scalar_lea.vmem %s2574_s20, 512  ;;  %p2576_p10 = scmp.lt.s32.totalorder %s3457_s8, %s2574_s20 }
 0x708   : > { %2117 = vmatprep.subr.bf16.mxu0 %v2116_v17  ;;  %v2124_v29 = vpack.c.bf16 %v1516_v27, %v1514_v14  ;;  %v1515_v31 = vld [vmem:[%s3261_s3 + $0x70] sm:$0xff]  ;;  %v1500_v33 = vld [vmem:[#allocation4] sm:$0xff]  ;;  %v1517_v37 = vld [vmem:[%s800_s0] sm:$0x3]  ;;  %s3655_s3 = sld [smem:[#allocation33_spill]]  ;;  %p2577_p7 = scmp.lt.s32.totalorder %s2575_s23, %s2569_s10 }
 0x709   : > { %v2126_v32 = vpack.c.bf16 %v1515_v31, %v1513_v30  ;;  %v1522_v25 = vrot.slane %v1517_v37, %v1521_v36  ;;  %v1526_v39 = vrot.slane %v1517_v37, %v1525_v38  ;;  %s2132_s0 = smul.u32 6, %s3654_s16  ;;  %v1616_v51 = vld [vmem:[#allocation5] sm:$0xff]  ;;  %v1617_v54 = vld [vmem:[#allocation5 + $0x8] sm:$0xff]  ;;  %p3659_p2 = scmp.ne.s32.totalorder %s3656_s27, 0 }
 0x70a   : > { %p2578_p0 = por %p2577_p7, %p2576_p10 }
 0x70b   : > { %2119 = vmatpush1.bf16.msra.mxu0 %v2118_v22  ;;  %s1637_s12 = sadd.s32 %s2132_s0, %s3279_s9  ;;  %p2571_p6 = pnand %p2570_p4, %p3659_p2 }
 0x70c   : > { %2121 = vmatprep.subr.bf16.mxu0 %v2120_v26  ;;  %s1933_s6 = sshll.u32 %s1637_s12, 7 }
 0x70d   : > { %s3455_s26 = scalar_lea.hbm %s3657_s2, %s1933_s6  ;;  %p2572_p5 = pneg %p2571_p6 }
 0x70e   : > { %s3658_s9 = sand.u32 1, %s3655_s3  }
 0x70f   : > { %2123 = vmatpush1.bf16.msra.mxu0 %v2122_v28  ;;  %s1625_s28 = scalar_lea.sflag [#allocation10], %s3658_s9  ;;  %p2579_p3 = pnand %p2578_p0, %p2572_p5 }
 0x710   : > { %2125 = vmatprep.subr.bf16.mxu0 %v2124_v29 }
 0x713   : > { %2127 = vmatpush1.bf16.msra.mxu0 %v2126_v32 }
 0x716   : > { %1928 = vmatmul.mubr.msk.f32.vlgmr.msra.gmra.mrb[0].mxu0 %vm1529_vm14, %v1500_v33 }
 0x7e9   : > { %v1599_v40 = vpop.f32.mrb[0].mxu0 }
 0x7ea   : > { %v1600_v41 = vadd.f32 %v1599_v40, %v1522_v25  ;;  %v1601_v42 = vpop.f32.mrb[1].mxu0 }
 0x7eb   : > { %v1602_v43 = vadd.f32 %v1601_v42, %v1526_v39 }
 0x7ec   : > { %v1929_v44 = vmul.f32 -1.442695, %v1600_v41 }
 0x7ed   : > { %v1930_v45 = vmul.f32 -1.442695, %v1602_v43 }
 0x7ee   : > { %2319 = vpow2.f32 %v1929_v44 }
 0x7ef   : > { %2321 = vpow2.f32 %v1930_v45 }
 0x7f8   : > { %v2320_v46 = vpop.eup %2319 }
 0x7f9   : > { %v2322_v47 = vpop.eup %2321  ;;  %v1610_v48 = vadd.f32 1.0, %v2320_v46 }
 0x7fa   : > { %v1611_v49 = vadd.f32 1.0, %v2322_v47 }
 0x7fb   : > { %2323 = vrcp.f32 %v1610_v48 }
 0x7fc   : > { %2325 = vrcp.f32 %v1611_v49 }
 0x805   : > { %v2324_v50 = vpop.eup %2323 }
 0x806   : > { %v2326_v52 = vpop.eup %2325  ;;  %v1618_v53 = vadd.f32 1.0, %v2324_v50 }
 0x807   : > { %v1619_v55 = vadd.f32 1.0, %v2326_v52 }
 0x808   : > { %v1620_v56 = vmul.f32 %v1618_v53, %v1616_v51 }
 0x809   : > { %v1621_v57 = vmul.f32 %v1619_v55, %v1617_v54 }
 0x80a   : > { %1622 = vst [vmem:[%s3308_s29] sm:$0xff] %v1620_v56 }
 0x80b   : > { %1623 = vst [vmem:[%s3308_s29 + $0x8] sm:$0xff] %v1621_v57 }
 0x80c   : > { %2582 = shalt.err (!%p2579_p3)
}
 0x80d   : > { %s2583_s29 = scalar_lea.hbm %s3455_s26, 256  ;;  %s2587_s1 = scalar_lea.hbm %s3657_s2, 1536 }
 0x80e   : > { %p2584_p8 = scmp.ne.s32.totalorder %s3455_s26, %s2583_s29  ;;  %p2588_p12 = scmp.lt.u32.totalorder %s3455_s26, %s3657_s2 }
 0x80f   : > { %p2589_p9 = scmp.lt.u32.totalorder %s2587_s1, %s2583_s29  ;;  %p2591_p4 = scmp.lt.u32.totalorder %s2583_s29, %s3455_s26 }
 0x810   : > { %p2585_p11 = pnand %p2584_p8, %p3659_p2 }
 0x811   : > { %p2590_p13 = por %p2589_p9, %p2588_p12 }
 0x812   : > { %p2586_p1 = pneg %p2585_p11 }
 0x813   : > { %p2592_p6 = por %p2591_p4, %p2590_p13 }
 0x815   : > { %p2593_p5 = pnand %p2592_p6, %p2586_p1 }
 0x817   : > { %2596 = shalt.err (!%p2593_p5)
}
 0x818   : > { %2157 = dma.vmem_to_hbm [thread:$0]  (%p3659_p2), %s3457_s8, 256, %s3455_s26, %s1625_s28  }
 0x819 PF: > { %s3660_s24 = sld [smem:[#allocation32_spill]]  ;;  %s3661_s22 = sld [smem:[#allocation43_spill]] }
 0x81a   : > { %p2198_p10 = scmp.ge.s32.totalorder %s2717_s25, 2 }
 0x81f   : > { %s1653_s19 = sand.u32 1, %s3660_s24   ;;  %p3662_p7 = scmp.ne.s32.totalorder %s3661_s22, 0 }
 0x820   : > { %s1654_s30 = scalar_lea.sflag [#allocation10], %s1653_s19 }
 0x821   : > { %p2186_p0 = pnand %p2198_p10, %p3662_p7 }
 0x823   : > { %2672 = dma.done.wait (!%p2186_p0), %s1654_s30, 256  }
 0x824   : > { %2674 = vsyncadd (!%p2186_p0), %s1654_s30, 4294967040  ;;  %s46_s25 = sadd.s32 1, %s2717_s25   ;;  %s3663_s9 = sld [smem:[#allocation33_spill]] }
 0x825   : > { %p43_p3 = scmp.ge.s32.totalorder %s46_s25, 8   ;;  %s3664_s15 = sld [smem:[#allocation48_spill]] }
 0x826   : > { %s3665_s18 = sld [smem:[#allocation34_spill]]  ;;  %s3666_s19 = sld [smem:[#allocation35_spill]] }
 0x827   : > { %s3667_s20 = sld [smem:[#allocation47_spill]]  ;;  %s3668_s21 = sld [smem:[#allocation38_spill]] }
 0x828   : > { %s3669_s22 = sld [smem:[#allocation39_spill]]  ;;  %s3670_s23 = sld [smem:[#allocation45_spill]] }
 0x829   : > { %s3671_s24 = sld [smem:[#allocation46_spill]]  ;;  %s3672_s0 = smov %s2685_s17 }
 0x82a   :  { %45 = sbr.rel (!%p43_p3) target bundleno = 40 (0x28), region = 219 }
 0x82b   : > { %s3673_s17 = smov %s3664_s15 }
 0x831   :  { %1659 = vsyncpa [#allocation9], 1 }
 0x832   :  { %1661 = vsyncpa [#allocation9 + $0x1], 1 }
 0x833   :  { %1662 = vsyncpa [#allocation12], 1 }
 0x834   :  { %1663 = vsyncpa [#allocation15], 1 }
 0x835   :  { %1665 = vsyncpa [#allocation15 + $0x1], 1 }
 0x836   :  { %1666 = vsyncpa [#allocation18], 1 }
 0x837   :  { %1668 = vsyncpa [#allocation18 + $0x1], 1 }
 0x838   :  { %1669 = vsyncpa [#allocation21], 1 }
 0x839   :  { %1671 = vsyncpa [#allocation21 + $0x1], 1 }
 0x83a   :  { %1672 = vsyncpa [#allocation10], 1 }
 0x83b   :  { %1674 = vsyncpa [#allocation10 + $0x1], 1 }

</bundles_post_ra>
